<compile_context>
chip_gen: v7x
topology: tpu7x:2x2x1
jax: 0.10.0
libtpu: 0.0.40
codegen_flags: <defaults>
</compile_context>

<pallas_src>
import math
from functools import partial

import jax
import jax.numpy as jnp
from jax.experimental import pallas as pl
from jax.experimental.pallas import tpu as pltpu

# ----------------------------- configuration -----------------------------
INPUT_DIM = 10
OUTPUT_DIM = 10
T_P = 8                   # prediction horizon -> T (time_as_cond=True)
N_OBS_STEPS = 4
COND_DIM = 20
N_LAYER = 2
N_HEAD = 4
N_EMB = 32
HEAD_DIM = N_EMB // N_HEAD

T = T_P                   # decoder sequence length
T_COND = 1 + N_OBS_STEPS  # time token + obs tokens
NEG_INF = -1e30           # additive attention mask "minus infinity"
HEAD_PAD = 128            # lane-dense padding for the final head output


# ----------------------------- parameters -----------------------------
def init_params(key):
    """PyTorch-layout parameters (weights (in,out), biases 1-D)."""
    e = N_EMB
    keys = jax.random.split(key, 64)
    it = iter(keys)

    def nrm(shape):
        return 0.02 * jax.random.normal(next(it), shape, jnp.float32)

    p = {
        "input_emb_w": nrm((INPUT_DIM, e)), "input_emb_b": jnp.zeros((e,), jnp.float32),
        "cond_obs_emb_w": nrm((COND_DIM, e)), "cond_obs_emb_b": jnp.zeros((e,), jnp.float32),
        "pos_emb": nrm((1, T, e)),
        "cond_pos_emb": nrm((1, T_COND, e)),
        # encoder (n_cond_layers == 0): Linear(E,4E) -> Mish -> Linear(4E,E)
        "enc_w1": nrm((e, 4 * e)), "enc_b1": jnp.zeros((4 * e,), jnp.float32),
        "enc_w2": nrm((4 * e, e)), "enc_b2": jnp.zeros((e,), jnp.float32),
        "ln_f_g": jnp.ones((e,), jnp.float32), "ln_f_b": jnp.zeros((e,), jnp.float32),
        "head_w": nrm((e, OUTPUT_DIM)), "head_b": jnp.zeros((OUTPUT_DIM,), jnp.float32),
    }
    layers = []
    for _ in range(N_LAYER):
        layers.append({
            "norm1_g": jnp.ones((e,), jnp.float32), "norm1_b": jnp.zeros((e,), jnp.float32),
            "norm2_g": jnp.ones((e,), jnp.float32), "norm2_b": jnp.zeros((e,), jnp.float32),
            "norm3_g": jnp.ones((e,), jnp.float32), "norm3_b": jnp.zeros((e,), jnp.float32),
            "sa_wq": nrm((e, e)), "sa_wk": nrm((e, e)), "sa_wv": nrm((e, e)),
            "sa_bq": jnp.zeros((e,), jnp.float32), "sa_bk": jnp.zeros((e,), jnp.float32),
            "sa_bv": jnp.zeros((e,), jnp.float32),
            "sa_wo": nrm((e, e)), "sa_bo": jnp.zeros((e,), jnp.float32),
            "ca_wq": nrm((e, e)), "ca_wk": nrm((e, e)), "ca_wv": nrm((e, e)),
            "ca_bq": jnp.zeros((e,), jnp.float32), "ca_bk": jnp.zeros((e,), jnp.float32),
            "ca_bv": jnp.zeros((e,), jnp.float32),
            "ca_wo": nrm((e, e)), "ca_bo": jnp.zeros((e,), jnp.float32),
            "ff_w1": nrm((e, 4 * e)), "ff_b1": jnp.zeros((4 * e,), jnp.float32),
            "ff_w2": nrm((4 * e, e)), "ff_b2": jnp.zeros((e,), jnp.float32),
        })
    p["layers"] = layers
    return p


def pack_params(p):
    """One-time repack:
       * 2-D biases (sublane row vectors),
       * input bias folded into pos_emb; cond-obs bias folded into cond_pos_emb,
       * fused self-attn QKV weights, 1/sqrt(head_dim) folded into Q,
       * cross-attn K/V weights of ALL layers fused into one lane-dense matmul,
       * head weight/bias padded to 128 lanes (unmasked vst on the output)."""
    e = N_EMB
    scale = 1.0 / math.sqrt(HEAD_DIM)

    def row(b):
        return b.reshape(1, -1)

    packed = {
        "input_emb_w": p["input_emb_w"],
        # pos_emb (T,E) with the input-embedding bias pre-added
        "pos_emb_b": p["pos_emb"][0] + row(p["input_emb_b"]),
        "cond_obs_emb_w": p["cond_obs_emb_w"],
        # cond_pos_emb rows 1: with the cond-obs bias pre-added; row 0 for time token
        "cond_pos_obs": p["cond_pos_emb"][0, 1:, :] + row(p["cond_obs_emb_b"]),
        "cond_pos_time": p["cond_pos_emb"][0, 0:1, :],
        "enc_w1": p["enc_w1"], "enc_b1": row(p["enc_b1"]),
        "enc_w2": p["enc_w2"], "enc_b2": row(p["enc_b2"]),
        "ln_f_g": row(p["ln_f_g"]), "ln_f_b": row(p["ln_f_b"]),
        "head_w": jnp.zeros((e, HEAD_PAD), jnp.float32).at[:, :OUTPUT_DIM].set(p["head_w"]),
        "head_b": jnp.zeros((1, HEAD_PAD), jnp.float32).at[:, :OUTPUT_DIM].set(row(p["head_b"])),
    }

    # cross-attention K/V of all layers fused: (E, n_layer * 2E), layer l occupies
    # columns [l*2E, (l+1)*2E) as [K | V].
    ca_wkv_all = jnp.concatenate(
        [jnp.concatenate([l["ca_wk"], l["ca_wv"]], axis=1) for l in p["layers"]], axis=1)
    ca_bkv_all = jnp.concatenate(
        [jnp.concatenate([row(l["ca_bk"]), row(l["ca_bv"])], axis=1) for l in p["layers"]],
        axis=1)
    packed["ca_wkv_all"] = ca_wkv_all
    packed["ca_bkv_all"] = ca_bkv_all

    layers = []
    for l in p["layers"]:
        layers.append({
            "norm1_g": row(l["norm1_g"]), "norm1_b": row(l["norm1_b"]),
            "norm2_g": row(l["norm2_g"]), "norm2_b": row(l["norm2_b"]),
            "norm3_g": row(l["norm3_g"]), "norm3_b": row(l["norm3_b"]),
            # self-attention: fused QKV, scale folded into Q
            "sa_wqkv": jnp.concatenate([l["sa_wq"] * scale, l["sa_wk"], l["sa_wv"]], axis=1),
            "sa_bqkv": jnp.concatenate(
                [row(l["sa_bq"]) * scale, row(l["sa_bk"]), row(l["sa_bv"])], axis=1),
            "sa_wo": l["sa_wo"], "sa_bo": row(l["sa_bo"]),
            # cross-attention: Q separate (queries), scale folded into Q
            "ca_wq": l["ca_wq"] * scale, "ca_bq": row(l["ca_bq"]) * scale,
            "ca_wo": l["ca_wo"], "ca_bo": row(l["ca_bo"]),
            "ff_w1": l["ff_w1"], "ff_b1": row(l["ff_b1"]),
            "ff_w2": l["ff_w2"], "ff_b2": row(l["ff_b2"]),
        })
    packed["layers"] = layers
    return packed


# ----------------------------- fused kernel -----------------------------
def _fused_forward_kernel(*refs, treedef, n_params):
    sample_ref, cond_ref, temb_ref = refs[0], refs[1], refs[2]
    param_refs = refs[3:3 + n_params]
    out_ref = refs[3 + n_params]
    p = jax.tree_util.tree_unflatten(treedef, param_refs)

    f32 = jnp.float32

    def dot(a, b):
        return jnp.dot(a, b, preferred_element_type=f32)

    def dot_t(a, b):
        # a @ b.T without materializing the transpose (contract last dims).
        return jax.lax.dot_general(a, b, (((1,), (1,)), ((), ())),
                                   preferred_element_type=f32)

    def ln(x, g, b):
        mu = jnp.mean(x, axis=-1, keepdims=True)
        xc = x - mu
        var = jnp.mean(xc * xc, axis=-1, keepdims=True)
        return xc * jax.lax.rsqrt(var + 1e-5) * g + b

    def mish(x):
        sp = jnp.maximum(x, 0.0) + jnp.log(1.0 + jnp.exp(-jnp.abs(x)))
        return x * jnp.tanh(sp)

    def gelu(x):
        # TODO(synk): PyTorch F.gelu default is the exact erf form; using the
        # tanh approximation here (avoids relying on an erf lowering).
        c = math.sqrt(2.0 / math.pi)
        return 0.5 * x * (1.0 + jnp.tanh(c * (x + 0.044715 * x * x * x)))

    def mha(q, k, v, wo, bo, mask):
        # q/k/v already projected; scale already folded into q.  Static
        # per-head loop (head_dim=8); head context folded directly into the
        # output-projection accumulation (no concatenate).
        tq, e = q.shape
        out = jnp.zeros((tq, e), f32)
        for h in range(N_HEAD):
            sl = slice(h * HEAD_DIM, (h + 1) * HEAD_DIM)
            s = dot_t(q[:, sl], k[:, sl]) + mask
            s = s - jnp.max(s, axis=-1, keepdims=True)
            pe = jnp.exp(s)
            pn = pe * pl.reciprocal(jnp.sum(pe, axis=-1, keepdims=True), approx=True)
            ctx = dot(pn, v[:, sl])                  # (tq, head_dim)
            out = out + dot(ctx, wo[sl, :])          # fold into output projection
        return out + bo

    # additive attention masks, built from 2-D iota (no HBM traffic)
    ri = jax.lax.broadcasted_iota(jnp.int32, (T, T), 0)
    ci = jax.lax.broadcasted_iota(jnp.int32, (T, T), 1)
    tgt_mask = jnp.where(ri >= ci, 0.0, NEG_INF).astype(f32)
    rm = jax.lax.broadcasted_iota(jnp.int32, (T, T_COND), 0)
    cm = jax.lax.broadcasted_iota(jnp.int32, (T, T_COND), 1)
    mem_mask = jnp.where(rm >= cm - 1, 0.0, NEG_INF).astype(f32)

    # ---------------- conditioning branch (encoder) ----------------
    cond_obs = dot(cond_ref[...], p["cond_obs_emb_w"][...]) + p["cond_pos_obs"][...]
    time_tok = temb_ref[...] + p["cond_pos_time"][...]
    c = jnp.concatenate([time_tok, cond_obs], axis=0)            # (T_COND, E); dropout -> id
    h1 = dot(c, p["enc_w1"][...]) + p["enc_b1"][...]
    memory = dot(mish(h1), p["enc_w2"][...]) + p["enc_b2"][...]  # (T_COND, E)

    # cross-attention K/V for ALL layers in one lane-dense matmul
    kv_all = dot(memory, p["ca_wkv_all"][...]) + p["ca_bkv_all"][...]   # (T_COND, n_layer*2E)

    # ---------------- decoder ----------------
    x = dot(sample_ref[...], p["input_emb_w"][...]) + p["pos_emb_b"][...]   # (T, E)

    for li, l in enumerate(p["layers"]):
        # pre-norm self attention (fused QKV projection)
        xn = ln(x, l["norm1_g"][...], l["norm1_b"][...])
        qkv = dot(xn, l["sa_wqkv"][...]) + l["sa_bqkv"][...]
        q = qkv[:, :N_EMB]
        k = qkv[:, N_EMB:2 * N_EMB]
        v = qkv[:, 2 * N_EMB:]
        x = x + mha(q, k, v, l["sa_wo"][...], l["sa_bo"][...], tgt_mask)

        # pre-norm cross attention on encoder memory (K/V precomputed above)
        xn = ln(x, l["norm2_g"][...], l["norm2_b"][...])
        q = dot(xn, l["ca_wq"][...]) + l["ca_bq"][...]
        kv = kv_all[:, li * 2 * N_EMB:(li + 1) * 2 * N_EMB]
        k = kv[:, :N_EMB]
        v = kv[:, N_EMB:]
        x = x + mha(q, k, v, l["ca_wo"][...], l["ca_bo"][...], mem_mask)

        # pre-norm feed-forward (gelu)
        xn = ln(x, l["norm3_g"][...], l["norm3_b"][...])
        hf = gelu(dot(xn, l["ff_w1"][...]) + l["ff_b1"][...])
        x = x + dot(hf, l["ff_w2"][...]) + l["ff_b2"][...]

    xn = ln(x, p["ln_f_g"][...], p["ln_f_b"][...])
    # lane-dense (T, 128) head output; valid lanes are [0, OUTPUT_DIM)
    out_ref[...] = dot(xn, p["head_w"][...]) + p["head_b"][...]


# ----------------------------- wrapper -----------------------------
def sinusoidal_pos_emb(timesteps, dim):
    half = dim // 2
    scale = math.log(10000.0) / (half - 1)
    freqs = jnp.exp(jnp.arange(half, dtype=jnp.float32) * -scale)
    args = timesteps.astype(jnp.float32)[:, None] * freqs[None, :]
    return jnp.concatenate([jnp.sin(args), jnp.cos(args)], axis=-1)


@jax.jit
def forward(packed_params, sample, timestep, cross_time_repr):
    """
    sample:          (B, T, input_dim)
    timestep:        int (diffusion step)
    cross_time_repr: (B, n_obs_steps+1, cond_dim) — stands in for
                     obs_encoder_out['repr']['cross_time_repr']
    returns pred:    (B, T, output_dim)
    """
    # TODO(synk): the hydra-instantiated obs_encoder is an external module; its
    # 'cross_time_repr' output is provided as an input and sliced [:, 1:, :] here.
    b = sample.shape[0]
    cond = cross_time_repr[:, 1:, :]                                    # (B, n_obs, cond_dim)
    timesteps = jnp.broadcast_to(jnp.asarray(timestep, jnp.float32), (b,))
    time_emb = sinusoidal_pos_emb(timesteps, N_EMB)[:, None, :]         # (B, 1, E)

    flat, treedef = jax.tree_util.tree_flatten(packed_params)

    per_batch_specs = [
        pl.BlockSpec((pl.Squeezed(), T, INPUT_DIM), lambda i: (i, 0, 0)),
        pl.BlockSpec((pl.Squeezed(), N_OBS_STEPS, COND_DIM), lambda i: (i, 0, 0)),
        pl.BlockSpec((pl.Squeezed(), 1, N_EMB), lambda i: (i, 0, 0)),
    ]
    # all weights: full-array blocks with constant index maps -> DMA'd once,
    # resident in VMEM across the whole (parallel) batch grid.
    param_specs = [
        pl.BlockSpec(a.shape, lambda i, _nd=a.ndim: (0,) * _nd) for a in flat
    ]

    out = pl.pallas_call(
        partial(_fused_forward_kernel, treedef=treedef, n_params=len(flat)),
        out_shape=jax.ShapeDtypeStruct((b, T, HEAD_PAD), jnp.float32),
        grid=(b,),
        in_specs=per_batch_specs + param_specs,
        out_specs=pl.BlockSpec((pl.Squeezed(), T, HEAD_PAD), lambda i: (i, 0, 0)),
        compiler_params=pltpu.CompilerParams(dimension_semantics=("parallel",)),
    )(sample, cond, time_emb, *flat)

    return out[:, :, :OUTPUT_DIM]


# ----------------------------- main -----------------------------
if __name__ == "__main__":
    key = jax.random.PRNGKey(0)
    k_param, k_sample, k_cond = jax.random.split(key, 3)

    params = init_params(k_param)
    packed = pack_params(params)   # one-time repack (fused QKV/KV, folded scale & biases)

    B = 2
    sample = jax.random.normal(k_sample, (B, T, INPUT_DIM), jnp.float32)
    cross_time_repr = jax.random.normal(k_cond, (B, N_OBS_STEPS + 1, COND_DIM), jnp.float32)
    timestep = 7

    pred = forward(packed, sample, timestep, cross_time_repr)
    pred = jax.block_until_ready(pred)

    assert pred.shape == (B, T, OUTPUT_DIM)
    assert bool(jnp.all(jnp.isfinite(pred)))
    print("KERNEL_OK")
</pallas_src>

<mosaic_0001>
module attributes {stable_mosaic.version = 11 : i64} {
  func.func @_fused_forward_kernel(%arg0: i32, %arg1: memref<1x8x10xf32, #tpu.memory_space<vmem>>, %arg2: memref<1x4x20xf32, #tpu.memory_space<vmem>>, %arg3: memref<1x1x32xf32, #tpu.memory_space<vmem>>, %arg4: memref<1x128xf32, #tpu.memory_space<vmem>>, %arg5: memref<32x128xf32, #tpu.memory_space<vmem>>, %arg6: memref<20x32xf32, #tpu.memory_space<vmem>>, %arg7: memref<4x32xf32, #tpu.memory_space<vmem>>, %arg8: memref<1x32xf32, #tpu.memory_space<vmem>>, %arg9: memref<1x128xf32, #tpu.memory_space<vmem>>, %arg10: memref<1x32xf32, #tpu.memory_space<vmem>>, %arg11: memref<32x128xf32, #tpu.memory_space<vmem>>, %arg12: memref<128x32xf32, #tpu.memory_space<vmem>>, %arg13: memref<1x128xf32, #tpu.memory_space<vmem>>, %arg14: memref<32x128xf32, #tpu.memory_space<vmem>>, %arg15: memref<10x32xf32, #tpu.memory_space<vmem>>, %arg16: memref<1x32xf32, #tpu.memory_space<vmem>>, %arg17: memref<1x32xf32, #tpu.memory_space<vmem>>, %arg18: memref<32x32xf32, #tpu.memory_space<vmem>>, %arg19: memref<32x32xf32, #tpu.memory_space<vmem>>, %arg20: memref<1x128xf32, #tpu.memory_space<vmem>>, %arg21: memref<1x32xf32, #tpu.memory_space<vmem>>, %arg22: memref<32x128xf32, #tpu.memory_space<vmem>>, %arg23: memref<128x32xf32, #tpu.memory_space<vmem>>, %arg24: memref<1x32xf32, #tpu.memory_space<vmem>>, %arg25: memref<1x32xf32, #tpu.memory_space<vmem>>, %arg26: memref<1x32xf32, #tpu.memory_space<vmem>>, %arg27: memref<1x32xf32, #tpu.memory_space<vmem>>, %arg28: memref<1x32xf32, #tpu.memory_space<vmem>>, %arg29: memref<1x32xf32, #tpu.memory_space<vmem>>, %arg30: memref<1x32xf32, #tpu.memory_space<vmem>>, %arg31: memref<1x96xf32, #tpu.memory_space<vmem>>, %arg32: memref<32x32xf32, #tpu.memory_space<vmem>>, %arg33: memref<32x96xf32, #tpu.memory_space<vmem>>, %arg34: memref<1x32xf32, #tpu.memory_space<vmem>>, %arg35: memref<1x32xf32, #tpu.memory_space<vmem>>, %arg36: memref<32x32xf32, #tpu.memory_space<vmem>>, %arg37: memref<32x32xf32, #tpu.memory_space<vmem>>, %arg38: memref<1x128xf32, #tpu.memory_space<vmem>>, %arg39: memref<1x32xf32, #tpu.memory_space<vmem>>, %arg40: memref<32x128xf32, #tpu.memory_space<vmem>>, %arg41: memref<128x32xf32, #tpu.memory_space<vmem>>, %arg42: memref<1x32xf32, #tpu.memory_space<vmem>>, %arg43: memref<1x32xf32, #tpu.memory_space<vmem>>, %arg44: memref<1x32xf32, #tpu.memory_space<vmem>>, %arg45: memref<1x32xf32, #tpu.memory_space<vmem>>, %arg46: memref<1x32xf32, #tpu.memory_space<vmem>>, %arg47: memref<1x32xf32, #tpu.memory_space<vmem>>, %arg48: memref<1x32xf32, #tpu.memory_space<vmem>>, %arg49: memref<1x96xf32, #tpu.memory_space<vmem>>, %arg50: memref<32x32xf32, #tpu.memory_space<vmem>>, %arg51: memref<32x96xf32, #tpu.memory_space<vmem>>, %arg52: memref<1x32xf32, #tpu.memory_space<vmem>>, %arg53: memref<1x32xf32, #tpu.memory_space<vmem>>, %arg54: memref<8x32xf32, #tpu.memory_space<vmem>>, %arg55: memref<1x8x128xf32, #tpu.memory_space<vmem>>) attributes {dimension_semantics = [#tpu.dimension_semantics<parallel>], iteration_bounds = array<i64: 2>, scalar_prefetch = 0 : i64, scratch_operands = 0 : i64, tpu.core_type = #tpu.core_type<tc>, window_params = [{transform_indices = @transform_0, window_bounds = array<i64: 1, 8, 10>}, {transform_indices = @transform_1, window_bounds = array<i64: 1, 4, 20>}, {transform_indices = @transform_2, window_bounds = array<i64: 1, 1, 32>}, {pipeline_mode = #tpu.pipeline_mode<synchronous>, transform_indices = @transform_3, window_bounds = array<i64: 1, 128>}, {pipeline_mode = #tpu.pipeline_mode<synchronous>, transform_indices = @transform_4, window_bounds = array<i64: 32, 128>}, {pipeline_mode = #tpu.pipeline_mode<synchronous>, transform_indices = @transform_5, window_bounds = array<i64: 20, 32>}, {pipeline_mode = #tpu.pipeline_mode<synchronous>, transform_indices = @transform_6, window_bounds = array<i64: 4, 32>}, {pipeline_mode = #tpu.pipeline_mode<synchronous>, transform_indices = @transform_7, window_bounds = array<i64: 1, 32>}, {pipeline_mode = #tpu.pipeline_mode<synchronous>, transform_indices = @transform_8, window_bounds = array<i64: 1, 128>}, {pipeline_mode = #tpu.pipeline_mode<synchronous>, transform_indices = @transform_9, window_bounds = array<i64: 1, 32>}, {pipeline_mode = #tpu.pipeline_mode<synchronous>, transform_indices = @transform_10, window_bounds = array<i64: 32, 128>}, {pipeline_mode = #tpu.pipeline_mode<synchronous>, transform_indices = @transform_11, window_bounds = array<i64: 128, 32>}, {pipeline_mode = #tpu.pipeline_mode<synchronous>, transform_indices = @transform_12, window_bounds = array<i64: 1, 128>}, {pipeline_mode = #tpu.pipeline_mode<synchronous>, transform_indices = @transform_13, window_bounds = array<i64: 32, 128>}, {pipeline_mode = #tpu.pipeline_mode<synchronous>, transform_indices = @transform_14, window_bounds = array<i64: 10, 32>}, {pipeline_mode = #tpu.pipeline_mode<synchronous>, transform_indices = @transform_15, window_bounds = array<i64: 1, 32>}, {pipeline_mode = #tpu.pipeline_mode<synchronous>, transform_indices = @transform_16, window_bounds = array<i64: 1, 32>}, {pipeline_mode = #tpu.pipeline_mode<synchronous>, transform_indices = @transform_17, window_bounds = array<i64: 32, 32>}, {pipeline_mode = #tpu.pipeline_mode<synchronous>, transform_indices = @transform_18, window_bounds = array<i64: 32, 32>}, {pipeline_mode = #tpu.pipeline_mode<synchronous>, transform_indices = @transform_19, window_bounds = array<i64: 1, 128>}, {pipeline_mode = #tpu.pipeline_mode<synchronous>, transform_indices = @transform_20, window_bounds = array<i64: 1, 32>}, {pipeline_mode = #tpu.pipeline_mode<synchronous>, transform_indices = @transform_21, window_bounds = array<i64: 32, 128>}, {pipeline_mode = #tpu.pipeline_mode<synchronous>, transform_indices = @transform_22, window_bounds = array<i64: 128, 32>}, {pipeline_mode = #tpu.pipeline_mode<synchronous>, transform_indices = @transform_23, window_bounds = array<i64: 1, 32>}, {pipeline_mode = #tpu.pipeline_mode<synchronous>, transform_indices = @transform_24, window_bounds = array<i64: 1, 32>}, {pipeline_mode = #tpu.pipeline_mode<synchronous>, transform_indices = @transform_25, window_bounds = array<i64: 1, 32>}, {pipeline_mode = #tpu.pipeline_mode<synchronous>, transform_indices = @transform_26, window_bounds = array<i64: 1, 32>}, {pipeline_mode = #tpu.pipeline_mode<synchronous>, transform_indices = @transform_27, window_bounds = array<i64: 1, 32>}, {pipeline_mode = #tpu.pipeline_mode<synchronous>, transform_indices = @transform_28, window_bounds = array<i64: 1, 32>}, {pipeline_mode = #tpu.pipeline_mode<synchronous>, transform_indices = @transform_29, window_bounds = array<i64: 1, 32>}, {pipeline_mode = #tpu.pipeline_mode<synchronous>, transform_indices = @transform_30, window_bounds = array<i64: 1, 96>}, {pipeline_mode = #tpu.pipeline_mode<synchronous>, transform_indices = @transform_31, window_bounds = array<i64: 32, 32>}, {pipeline_mode = #tpu.pipeline_mode<synchronous>, transform_indices = @transform_32, window_bounds = array<i64: 32, 96>}, {pipeline_mode = #tpu.pipeline_mode<synchronous>, transform_indices = @transform_33, window_bounds = array<i64: 1, 32>}, {pipeline_mode = #tpu.pipeline_mode<synchronous>, transform_indices = @transform_34, window_bounds = array<i64: 1, 32>}, {pipeline_mode = #tpu.pipeline_mode<synchronous>, transform_indices = @transform_35, window_bounds = array<i64: 32, 32>}, {pipeline_mode = #tpu.pipeline_mode<synchronous>, transform_indices = @transform_36, window_bounds = array<i64: 32, 32>}, {pipeline_mode = #tpu.pipeline_mode<synchronous>, transform_indices = @transform_37, window_bounds = array<i64: 1, 128>}, {pipeline_mode = #tpu.pipeline_mode<synchronous>, transform_indices = @transform_38, window_bounds = array<i64: 1, 32>}, {pipeline_mode = #tpu.pipeline_mode<synchronous>, transform_indices = @transform_39, window_bounds = array<i64: 32, 128>}, {pipeline_mode = #tpu.pipeline_mode<synchronous>, transform_indices = @transform_40, window_bounds = array<i64: 128, 32>}, {pipeline_mode = #tpu.pipeline_mode<synchronous>, transform_indices = @transform_41, window_bounds = array<i64: 1, 32>}, {pipeline_mode = #tpu.pipeline_mode<synchronous>, transform_indices = @transform_42, window_bounds = array<i64: 1, 32>}, {pipeline_mode = #tpu.pipeline_mode<synchronous>, transform_indices = @transform_43, window_bounds = array<i64: 1, 32>}, {pipeline_mode = #tpu.pipeline_mode<synchronous>, transform_indices = @transform_44, window_bounds = array<i64: 1, 32>}, {pipeline_mode = #tpu.pipeline_mode<synchronous>, transform_indices = @transform_45, window_bounds = array<i64: 1, 32>}, {pipeline_mode = #tpu.pipeline_mode<synchronous>, transform_indices = @transform_46, window_bounds = array<i64: 1, 32>}, {pipeline_mode = #tpu.pipeline_mode<synchronous>, transform_indices = @transform_47, window_bounds = array<i64: 1, 32>}, {pipeline_mode = #tpu.pipeline_mode<synchronous>, transform_indices = @transform_48, window_bounds = array<i64: 1, 96>}, {pipeline_mode = #tpu.pipeline_mode<synchronous>, transform_indices = @transform_49, window_bounds = array<i64: 32, 32>}, {pipeline_mode = #tpu.pipeline_mode<synchronous>, transform_indices = @transform_50, window_bounds = array<i64: 32, 96>}, {pipeline_mode = #tpu.pipeline_mode<synchronous>, transform_indices = @transform_51, window_bounds = array<i64: 1, 32>}, {pipeline_mode = #tpu.pipeline_mode<synchronous>, transform_indices = @transform_52, window_bounds = array<i64: 1, 32>}, {pipeline_mode = #tpu.pipeline_mode<synchronous>, transform_indices = @transform_53, window_bounds = array<i64: 8, 32>}, {transform_indices = @transform_54, window_bounds = array<i64: 1, 8, 128>}]} {
    %0 = tpu.iota {dimensions = array<i32: 0>} : vector<8x8xi32>
    %1 = tpu.iota {dimensions = array<i32: 1>} : vector<8x8xi32>
    %2 = arith.cmpi sge, %0, %1 : vector<8x8xi32>
    %cst = arith.constant 0.000000e+00 : f32
    %cst_0 = arith.constant -1.000000e+30 : f32
    %3 = vector.broadcast %cst : f32 to vector<8x8xf32>
    %4 = vector.broadcast %cst_0 : f32 to vector<8x8xf32>
    %5 = arith.select %2, %3, %4 : vector<8x8xi1>, vector<8x8xf32>
    %6 = tpu.iota {dimensions = array<i32: 0>} : vector<8x5xi32>
    %7 = tpu.iota {dimensions = array<i32: 1>} : vector<8x5xi32>
    %c1_i32 = arith.constant 1 : i32
    %8 = vector.broadcast %c1_i32 : i32 to vector<8x5xi32>
    %9 = arith.subi %7, %8 : vector<8x5xi32>
    %10 = arith.cmpi sge, %6, %9 : vector<8x5xi32>
    %cst_1 = arith.constant 0.000000e+00 : f32
    %cst_2 = arith.constant -1.000000e+30 : f32
    %11 = vector.broadcast %cst_1 : f32 to vector<8x5xf32>
    %12 = vector.broadcast %cst_2 : f32 to vector<8x5xf32>
    %13 = arith.select %10, %11, %12 : vector<8x5xi1>, vector<8x5xf32>
    %c0 = arith.constant 0 : index
    %c0_3 = arith.constant 0 : index
    %c0_4 = arith.constant 0 : index
    %14 = vector.load %arg2[%c0, %c0_3, %c0_4] : memref<1x4x20xf32, #tpu.memory_space<vmem>>, vector<1x4x20xf32>
    %15 = vector.shape_cast %14 : vector<1x4x20xf32> to vector<4x20xf32>
    %c0_5 = arith.constant 0 : index
    %c0_6 = arith.constant 0 : index
    %16 = vector.load %arg6[%c0_5, %c0_6] : memref<20x32xf32, #tpu.memory_space<vmem>>, vector<20x32xf32>
    %cst_7 = arith.constant dense<0.000000e+00> : vector<4x32xf32>
    %17 = tpu.matmul %15, %16, %cst_7 {dimension_numbers = #tpu.dot_dimension_numbers<[1], [0], [0], [1], [0, 0, 1, 1], [], []>} : vector<4x20xf32>, vector<20x32xf32>, vector<4x32xf32> -> vector<4x32xf32>
    %c0_8 = arith.constant 0 : index
    %c0_9 = arith.constant 0 : index
    %18 = vector.load %arg7[%c0_8, %c0_9] : memref<4x32xf32, #tpu.memory_space<vmem>>, vector<4x32xf32>
    %19 = arith.addf %17, %18 : vector<4x32xf32>
    %c0_10 = arith.constant 0 : index
    %c0_11 = arith.constant 0 : index
    %c0_12 = arith.constant 0 : index
    %20 = vector.load %arg3[%c0_10, %c0_11, %c0_12] : memref<1x1x32xf32, #tpu.memory_space<vmem>>, vector<1x1x32xf32>
    %21 = vector.shape_cast %20 : vector<1x1x32xf32> to vector<1x32xf32>
    %c0_13 = arith.constant 0 : index
    %c0_14 = arith.constant 0 : index
    %22 = vector.load %arg8[%c0_13, %c0_14] : memref<1x32xf32, #tpu.memory_space<vmem>>, vector<1x32xf32>
    %23 = arith.addf %21, %22 : vector<1x32xf32>
    %24 = tpu.concatenate %23, %19 in 0 : vector<1x32xf32>, vector<4x32xf32> -> vector<5x32xf32>
    %c0_15 = arith.constant 0 : index
    %c0_16 = arith.constant 0 : index
    %25 = vector.load %arg11[%c0_15, %c0_16] : memref<32x128xf32, #tpu.memory_space<vmem>>, vector<32x128xf32>
    %cst_17 = arith.constant dense<0.000000e+00> : vector<5x128xf32>
    %26 = tpu.matmul %24, %25, %cst_17 {dimension_numbers = #tpu.dot_dimension_numbers<[1], [0], [0], [1], [0, 0, 1, 1], [], []>} : vector<5x32xf32>, vector<32x128xf32>, vector<5x128xf32> -> vector<5x128xf32>
    %c0_18 = arith.constant 0 : index
    %c0_19 = arith.constant 0 : index
    %27 = vector.load %arg9[%c0_18, %c0_19] : memref<1x128xf32, #tpu.memory_space<vmem>>, vector<1x128xf32>
    %28 = vector.broadcast %27 : vector<1x128xf32> to vector<5x128xf32>
    %29 = arith.addf %26, %28 : vector<5x128xf32>
    %cst_20 = arith.constant 0.000000e+00 : f32
    %30 = vector.broadcast %cst_20 : f32 to vector<5x128xf32>
    %31 = arith.maximumf %29, %30 : vector<5x128xf32>
    %32 = math.absf %29 : vector<5x128xf32>
    %cst_21 = arith.constant 0.000000e+00 : f32
    %33 = vector.broadcast %cst_21 : f32 to vector<5x128xf32>
    %34 = arith.subf %33, %32 : vector<5x128xf32>
    %35 = math.exp %34 : vector<5x128xf32>
    %cst_22 = arith.constant 1.000000e+00 : f32
    %36 = vector.broadcast %cst_22 : f32 to vector<5x128xf32>
    %37 = arith.addf %36, %35 : vector<5x128xf32>
    %38 = math.log %37 : vector<5x128xf32>
    %39 = arith.addf %31, %38 : vector<5x128xf32>
    %40 = math.tanh %39 : vector<5x128xf32>
    %41 = arith.mulf %29, %40 : vector<5x128xf32>
    %c0_23 = arith.constant 0 : index
    %c0_24 = arith.constant 0 : index
    %42 = vector.load %arg12[%c0_23, %c0_24] : memref<128x32xf32, #tpu.memory_space<vmem>>, vector<128x32xf32>
    %cst_25 = arith.constant dense<0.000000e+00> : vector<5x32xf32>
    %43 = tpu.matmul %41, %42, %cst_25 {dimension_numbers = #tpu.dot_dimension_numbers<[1], [0], [0], [1], [0, 0, 1, 1], [], []>} : vector<5x128xf32>, vector<128x32xf32>, vector<5x32xf32> -> vector<5x32xf32>
    %c0_26 = arith.constant 0 : index
    %c0_27 = arith.constant 0 : index
    %44 = vector.load %arg10[%c0_26, %c0_27] : memref<1x32xf32, #tpu.memory_space<vmem>>, vector<1x32xf32>
    %45 = vector.broadcast %44 : vector<1x32xf32> to vector<5x32xf32>
    %46 = arith.addf %43, %45 : vector<5x32xf32>
    %c0_28 = arith.constant 0 : index
    %c0_29 = arith.constant 0 : index
    %47 = vector.load %arg5[%c0_28, %c0_29] : memref<32x128xf32, #tpu.memory_space<vmem>>, vector<32x128xf32>
    %cst_30 = arith.constant dense<0.000000e+00> : vector<5x128xf32>
    %48 = tpu.matmul %46, %47, %cst_30 {dimension_numbers = #tpu.dot_dimension_numbers<[1], [0], [0], [1], [0, 0, 1, 1], [], []>} : vector<5x32xf32>, vector<32x128xf32>, vector<5x128xf32> -> vector<5x128xf32>
    %c0_31 = arith.constant 0 : index
    %c0_32 = arith.constant 0 : index
    %49 = vector.load %arg4[%c0_31, %c0_32] : memref<1x128xf32, #tpu.memory_space<vmem>>, vector<1x128xf32>
    %50 = vector.broadcast %49 : vector<1x128xf32> to vector<5x128xf32>
    %51 = arith.addf %48, %50 : vector<5x128xf32>
    %c0_33 = arith.constant 0 : index
    %c0_34 = arith.constant 0 : index
    %c0_35 = arith.constant 0 : index
    %52 = vector.load %arg1[%c0_33, %c0_34, %c0_35] : memref<1x8x10xf32, #tpu.memory_space<vmem>>, vector<1x8x10xf32>
    %53 = vector.shape_cast %52 : vector<1x8x10xf32> to vector<8x10xf32>
    %c0_36 = arith.constant 0 : index
    %c0_37 = arith.constant 0 : index
    %54 = vector.load %arg15[%c0_36, %c0_37] : memref<10x32xf32, #tpu.memory_space<vmem>>, vector<10x32xf32>
    %cst_38 = arith.constant dense<0.000000e+00> : vector<8x32xf32>
    %55 = tpu.matmul %53, %54, %cst_38 {dimension_numbers = #tpu.dot_dimension_numbers<[1], [0], [0], [1], [0, 0, 1, 1], [], []>} : vector<8x10xf32>, vector<10x32xf32>, vector<8x32xf32> -> vector<8x32xf32>
    %c0_39 = arith.constant 0 : index
    %c0_40 = arith.constant 0 : index
    %56 = vector.load %arg54[%c0_39, %c0_40] : memref<8x32xf32, #tpu.memory_space<vmem>>, vector<8x32xf32>
    %57 = arith.addf %55, %56 : vector<8x32xf32>
    %c0_41 = arith.constant 0 : index
    %c0_42 = arith.constant 0 : index
    %58 = vector.load %arg25[%c0_41, %c0_42] : memref<1x32xf32, #tpu.memory_space<vmem>>, vector<1x32xf32>
    %c0_43 = arith.constant 0 : index
    %c0_44 = arith.constant 0 : index
    %59 = vector.load %arg24[%c0_43, %c0_44] : memref<1x32xf32, #tpu.memory_space<vmem>>, vector<1x32xf32>
    %cst_45 = arith.constant dense<0.000000e+00> : vector<8xf32>
    %60 = vector.multi_reduction <add>, %57, %cst_45 [1] : vector<8x32xf32> to vector<8xf32>
    %61 = vector.shape_cast %60 : vector<8xf32> to vector<8x1xf32>
    %cst_46 = arith.constant 3.200000e+01 : f32
    %62 = vector.broadcast %cst_46 : f32 to vector<8x1xf32>
    %63 = arith.divf %61, %62 : vector<8x1xf32>
    %64 = vector.broadcast %63 : vector<8x1xf32> to vector<8x32xf32>
    %65 = arith.subf %57, %64 : vector<8x32xf32>
    %66 = arith.mulf %65, %65 : vector<8x32xf32>
    %cst_47 = arith.constant dense<0.000000e+00> : vector<8xf32>
    %67 = vector.multi_reduction <add>, %66, %cst_47 [1] : vector<8x32xf32> to vector<8xf32>
    %68 = vector.shape_cast %67 : vector<8xf32> to vector<8x1xf32>
    %cst_48 = arith.constant 3.200000e+01 : f32
    %69 = vector.broadcast %cst_48 : f32 to vector<8x1xf32>
    %70 = arith.divf %68, %69 : vector<8x1xf32>
    %cst_49 = arith.constant 9.99999974E-6 : f32
    %71 = vector.broadcast %cst_49 : f32 to vector<8x1xf32>
    %72 = arith.addf %70, %71 : vector<8x1xf32>
    %73 = math.rsqrt %72 : vector<8x1xf32>
    %74 = vector.broadcast %73 : vector<8x1xf32> to vector<8x32xf32>
    %75 = arith.mulf %65, %74 : vector<8x32xf32>
    %76 = vector.broadcast %58 : vector<1x32xf32> to vector<8x32xf32>
    %77 = arith.mulf %75, %76 : vector<8x32xf32>
    %78 = vector.broadcast %59 : vector<1x32xf32> to vector<8x32xf32>
    %79 = arith.addf %77, %78 : vector<8x32xf32>
    %c0_50 = arith.constant 0 : index
    %c0_51 = arith.constant 0 : index
    %80 = vector.load %arg33[%c0_50, %c0_51] : memref<32x96xf32, #tpu.memory_space<vmem>>, vector<32x96xf32>
    %cst_52 = arith.constant dense<0.000000e+00> : vector<8x96xf32>
    %81 = tpu.matmul %79, %80, %cst_52 {dimension_numbers = #tpu.dot_dimension_numbers<[1], [0], [0], [1], [0, 0, 1, 1], [], []>} : vector<8x32xf32>, vector<32x96xf32>, vector<8x96xf32> -> vector<8x96xf32>
    %c0_53 = arith.constant 0 : index
    %c0_54 = arith.constant 0 : index
    %82 = vector.load %arg31[%c0_53, %c0_54] : memref<1x96xf32, #tpu.memory_space<vmem>>, vector<1x96xf32>
    %83 = vector.broadcast %82 : vector<1x96xf32> to vector<8x96xf32>
    %84 = arith.addf %81, %83 : vector<8x96xf32>
    %85 = vector.extract_strided_slice %84 {offsets = [0, 0], sizes = [8, 32], strides = [1, 1]} : vector<8x96xf32> to vector<8x32xf32>
    %86 = vector.extract_strided_slice %84 {offsets = [0, 32], sizes = [8, 32], strides = [1, 1]} : vector<8x96xf32> to vector<8x32xf32>
    %87 = vector.extract_strided_slice %84 {offsets = [0, 64], sizes = [8, 32], strides = [1, 1]} : vector<8x96xf32> to vector<8x32xf32>
    %c0_55 = arith.constant 0 : index
    %c0_56 = arith.constant 0 : index
    %88 = vector.load %arg32[%c0_55, %c0_56] : memref<32x32xf32, #tpu.memory_space<vmem>>, vector<32x32xf32>
    %c0_57 = arith.constant 0 : index
    %c0_58 = arith.constant 0 : index
    %89 = vector.load %arg30[%c0_57, %c0_58] : memref<1x32xf32, #tpu.memory_space<vmem>>, vector<1x32xf32>
    %cst_59 = arith.constant 0.000000e+00 : f32
    %90 = vector.broadcast %cst_59 : f32 to vector<8x32xf32>
    %91 = vector.extract_strided_slice %85 {offsets = [0, 0], sizes = [8, 8], strides = [1, 1]} : vector<8x32xf32> to vector<8x8xf32>
    %92 = vector.extract_strided_slice %86 {offsets = [0, 0], sizes = [8, 8], strides = [1, 1]} : vector<8x32xf32> to vector<8x8xf32>
    %cst_60 = arith.constant dense<0.000000e+00> : vector<8x8xf32>
    %93 = tpu.matmul %91, %92, %cst_60 {dimension_numbers = #tpu.dot_dimension_numbers<[1], [1], [0], [0], [0, 0, 1, 0], [], []>} : vector<8x8xf32>, vector<8x8xf32>, vector<8x8xf32> -> vector<8x8xf32>
    %94 = arith.addf %93, %5 : vector<8x8xf32>
    %cst_61 = arith.constant dense<0xFF800000> : vector<8xf32>
    %95 = vector.multi_reduction <maximumf>, %94, %cst_61 [1] : vector<8x8xf32> to vector<8xf32>
    %96 = vector.shape_cast %95 : vector<8xf32> to vector<8x1xf32>
    %97 = vector.broadcast %96 : vector<8x1xf32> to vector<8x8xf32>
    %98 = arith.subf %94, %97 : vector<8x8xf32>
    %99 = math.exp %98 : vector<8x8xf32>
    %cst_62 = arith.constant dense<0.000000e+00> : vector<8xf32>
    %100 = vector.multi_reduction <add>, %99, %cst_62 [1] : vector<8x8xf32> to vector<8xf32>
    %101 = vector.shape_cast %100 : vector<8xf32> to vector<8x1xf32>
    %102 = tpu.reciprocal %101 {approx = true} : vector<8x1xf32> -> vector<8x1xf32>
    %103 = vector.broadcast %102 : vector<8x1xf32> to vector<8x8xf32>
    %104 = arith.mulf %99, %103 : vector<8x8xf32>
    %105 = vector.extract_strided_slice %87 {offsets = [0, 0], sizes = [8, 8], strides = [1, 1]} : vector<8x32xf32> to vector<8x8xf32>
    %cst_63 = arith.constant dense<0.000000e+00> : vector<8x8xf32>
    %106 = tpu.matmul %104, %105, %cst_63 {dimension_numbers = #tpu.dot_dimension_numbers<[1], [0], [0], [1], [0, 0, 1, 1], [], []>} : vector<8x8xf32>, vector<8x8xf32>, vector<8x8xf32> -> vector<8x8xf32>
    %107 = vector.extract_strided_slice %88 {offsets = [0, 0], sizes = [8, 32], strides = [1, 1]} : vector<32x32xf32> to vector<8x32xf32>
    %cst_64 = arith.constant dense<0.000000e+00> : vector<8x32xf32>
    %108 = tpu.matmul %106, %107, %cst_64 {dimension_numbers = #tpu.dot_dimension_numbers<[1], [0], [0], [1], [0, 0, 1, 1], [], []>} : vector<8x8xf32>, vector<8x32xf32>, vector<8x32xf32> -> vector<8x32xf32>
    %109 = arith.addf %90, %108 : vector<8x32xf32>
    %110 = vector.extract_strided_slice %85 {offsets = [0, 8], sizes = [8, 8], strides = [1, 1]} : vector<8x32xf32> to vector<8x8xf32>
    %111 = vector.extract_strided_slice %86 {offsets = [0, 8], sizes = [8, 8], strides = [1, 1]} : vector<8x32xf32> to vector<8x8xf32>
    %cst_65 = arith.constant dense<0.000000e+00> : vector<8x8xf32>
    %112 = tpu.matmul %110, %111, %cst_65 {dimension_numbers = #tpu.dot_dimension_numbers<[1], [1], [0], [0], [0, 0, 1, 0], [], []>} : vector<8x8xf32>, vector<8x8xf32>, vector<8x8xf32> -> vector<8x8xf32>
    %113 = arith.addf %112, %5 : vector<8x8xf32>
    %cst_66 = arith.constant dense<0xFF800000> : vector<8xf32>
    %114 = vector.multi_reduction <maximumf>, %113, %cst_66 [1] : vector<8x8xf32> to vector<8xf32>
    %115 = vector.shape_cast %114 : vector<8xf32> to vector<8x1xf32>
    %116 = vector.broadcast %115 : vector<8x1xf32> to vector<8x8xf32>
    %117 = arith.subf %113, %116 : vector<8x8xf32>
    %118 = math.exp %117 : vector<8x8xf32>
    %cst_67 = arith.constant dense<0.000000e+00> : vector<8xf32>
    %119 = vector.multi_reduction <add>, %118, %cst_67 [1] : vector<8x8xf32> to vector<8xf32>
    %120 = vector.shape_cast %119 : vector<8xf32> to vector<8x1xf32>
    %121 = tpu.reciprocal %120 {approx = true} : vector<8x1xf32> -> vector<8x1xf32>
    %122 = vector.broadcast %121 : vector<8x1xf32> to vector<8x8xf32>
    %123 = arith.mulf %118, %122 : vector<8x8xf32>
    %124 = vector.extract_strided_slice %87 {offsets = [0, 8], sizes = [8, 8], strides = [1, 1]} : vector<8x32xf32> to vector<8x8xf32>
    %cst_68 = arith.constant dense<0.000000e+00> : vector<8x8xf32>
    %125 = tpu.matmul %123, %124, %cst_68 {dimension_numbers = #tpu.dot_dimension_numbers<[1], [0], [0], [1], [0, 0, 1, 1], [], []>} : vector<8x8xf32>, vector<8x8xf32>, vector<8x8xf32> -> vector<8x8xf32>
    %126 = vector.extract_strided_slice %88 {offsets = [8, 0], sizes = [8, 32], strides = [1, 1]} : vector<32x32xf32> to vector<8x32xf32>
    %cst_69 = arith.constant dense<0.000000e+00> : vector<8x32xf32>
    %127 = tpu.matmul %125, %126, %cst_69 {dimension_numbers = #tpu.dot_dimension_numbers<[1], [0], [0], [1], [0, 0, 1, 1], [], []>} : vector<8x8xf32>, vector<8x32xf32>, vector<8x32xf32> -> vector<8x32xf32>
    %128 = arith.addf %109, %127 : vector<8x32xf32>
    %129 = vector.extract_strided_slice %85 {offsets = [0, 16], sizes = [8, 8], strides = [1, 1]} : vector<8x32xf32> to vector<8x8xf32>
    %130 = vector.extract_strided_slice %86 {offsets = [0, 16], sizes = [8, 8], strides = [1, 1]} : vector<8x32xf32> to vector<8x8xf32>
    %cst_70 = arith.constant dense<0.000000e+00> : vector<8x8xf32>
    %131 = tpu.matmul %129, %130, %cst_70 {dimension_numbers = #tpu.dot_dimension_numbers<[1], [1], [0], [0], [0, 0, 1, 0], [], []>} : vector<8x8xf32>, vector<8x8xf32>, vector<8x8xf32> -> vector<8x8xf32>
    %132 = arith.addf %131, %5 : vector<8x8xf32>
    %cst_71 = arith.constant dense<0xFF800000> : vector<8xf32>
    %133 = vector.multi_reduction <maximumf>, %132, %cst_71 [1] : vector<8x8xf32> to vector<8xf32>
    %134 = vector.shape_cast %133 : vector<8xf32> to vector<8x1xf32>
    %135 = vector.broadcast %134 : vector<8x1xf32> to vector<8x8xf32>
    %136 = arith.subf %132, %135 : vector<8x8xf32>
    %137 = math.exp %136 : vector<8x8xf32>
    %cst_72 = arith.constant dense<0.000000e+00> : vector<8xf32>
    %138 = vector.multi_reduction <add>, %137, %cst_72 [1] : vector<8x8xf32> to vector<8xf32>
    %139 = vector.shape_cast %138 : vector<8xf32> to vector<8x1xf32>
    %140 = tpu.reciprocal %139 {approx = true} : vector<8x1xf32> -> vector<8x1xf32>
    %141 = vector.broadcast %140 : vector<8x1xf32> to vector<8x8xf32>
    %142 = arith.mulf %137, %141 : vector<8x8xf32>
    %143 = vector.extract_strided_slice %87 {offsets = [0, 16], sizes = [8, 8], strides = [1, 1]} : vector<8x32xf32> to vector<8x8xf32>
    %cst_73 = arith.constant dense<0.000000e+00> : vector<8x8xf32>
    %144 = tpu.matmul %142, %143, %cst_73 {dimension_numbers = #tpu.dot_dimension_numbers<[1], [0], [0], [1], [0, 0, 1, 1], [], []>} : vector<8x8xf32>, vector<8x8xf32>, vector<8x8xf32> -> vector<8x8xf32>
    %145 = vector.extract_strided_slice %88 {offsets = [16, 0], sizes = [8, 32], strides = [1, 1]} : vector<32x32xf32> to vector<8x32xf32>
    %cst_74 = arith.constant dense<0.000000e+00> : vector<8x32xf32>
    %146 = tpu.matmul %144, %145, %cst_74 {dimension_numbers = #tpu.dot_dimension_numbers<[1], [0], [0], [1], [0, 0, 1, 1], [], []>} : vector<8x8xf32>, vector<8x32xf32>, vector<8x32xf32> -> vector<8x32xf32>
    %147 = arith.addf %128, %146 : vector<8x32xf32>
    %148 = vector.extract_strided_slice %85 {offsets = [0, 24], sizes = [8, 8], strides = [1, 1]} : vector<8x32xf32> to vector<8x8xf32>
    %149 = vector.extract_strided_slice %86 {offsets = [0, 24], sizes = [8, 8], strides = [1, 1]} : vector<8x32xf32> to vector<8x8xf32>
    %cst_75 = arith.constant dense<0.000000e+00> : vector<8x8xf32>
    %150 = tpu.matmul %148, %149, %cst_75 {dimension_numbers = #tpu.dot_dimension_numbers<[1], [1], [0], [0], [0, 0, 1, 0], [], []>} : vector<8x8xf32>, vector<8x8xf32>, vector<8x8xf32> -> vector<8x8xf32>
    %151 = arith.addf %150, %5 : vector<8x8xf32>
    %cst_76 = arith.constant dense<0xFF800000> : vector<8xf32>
    %152 = vector.multi_reduction <maximumf>, %151, %cst_76 [1] : vector<8x8xf32> to vector<8xf32>
    %153 = vector.shape_cast %152 : vector<8xf32> to vector<8x1xf32>
    %154 = vector.broadcast %153 : vector<8x1xf32> to vector<8x8xf32>
    %155 = arith.subf %151, %154 : vector<8x8xf32>
    %156 = math.exp %155 : vector<8x8xf32>
    %cst_77 = arith.constant dense<0.000000e+00> : vector<8xf32>
    %157 = vector.multi_reduction <add>, %156, %cst_77 [1] : vector<8x8xf32> to vector<8xf32>
    %158 = vector.shape_cast %157 : vector<8xf32> to vector<8x1xf32>
    %159 = tpu.reciprocal %158 {approx = true} : vector<8x1xf32> -> vector<8x1xf32>
    %160 = vector.broadcast %159 : vector<8x1xf32> to vector<8x8xf32>
    %161 = arith.mulf %156, %160 : vector<8x8xf32>
    %162 = vector.extract_strided_slice %87 {offsets = [0, 24], sizes = [8, 8], strides = [1, 1]} : vector<8x32xf32> to vector<8x8xf32>
    %cst_78 = arith.constant dense<0.000000e+00> : vector<8x8xf32>
    %163 = tpu.matmul %161, %162, %cst_78 {dimension_numbers = #tpu.dot_dimension_numbers<[1], [0], [0], [1], [0, 0, 1, 1], [], []>} : vector<8x8xf32>, vector<8x8xf32>, vector<8x8xf32> -> vector<8x8xf32>
    %164 = vector.extract_strided_slice %88 {offsets = [24, 0], sizes = [8, 32], strides = [1, 1]} : vector<32x32xf32> to vector<8x32xf32>
    %cst_79 = arith.constant dense<0.000000e+00> : vector<8x32xf32>
    %165 = tpu.matmul %163, %164, %cst_79 {dimension_numbers = #tpu.dot_dimension_numbers<[1], [0], [0], [1], [0, 0, 1, 1], [], []>} : vector<8x8xf32>, vector<8x32xf32>, vector<8x32xf32> -> vector<8x32xf32>
    %166 = arith.addf %147, %165 : vector<8x32xf32>
    %167 = vector.broadcast %89 : vector<1x32xf32> to vector<8x32xf32>
    %168 = arith.addf %166, %167 : vector<8x32xf32>
    %169 = arith.addf %57, %168 : vector<8x32xf32>
    %c0_80 = arith.constant 0 : index
    %c0_81 = arith.constant 0 : index
    %170 = vector.load %arg27[%c0_80, %c0_81] : memref<1x32xf32, #tpu.memory_space<vmem>>, vector<1x32xf32>
    %c0_82 = arith.constant 0 : index
    %c0_83 = arith.constant 0 : index
    %171 = vector.load %arg26[%c0_82, %c0_83] : memref<1x32xf32, #tpu.memory_space<vmem>>, vector<1x32xf32>
    %cst_84 = arith.constant dense<0.000000e+00> : vector<8xf32>
    %172 = vector.multi_reduction <add>, %169, %cst_84 [1] : vector<8x32xf32> to vector<8xf32>
    %173 = vector.shape_cast %172 : vector<8xf32> to vector<8x1xf32>
    %cst_85 = arith.constant 3.200000e+01 : f32
    %174 = vector.broadcast %cst_85 : f32 to vector<8x1xf32>
    %175 = arith.divf %173, %174 : vector<8x1xf32>
    %176 = vector.broadcast %175 : vector<8x1xf32> to vector<8x32xf32>
    %177 = arith.subf %169, %176 : vector<8x32xf32>
    %178 = arith.mulf %177, %177 : vector<8x32xf32>
    %cst_86 = arith.constant dense<0.000000e+00> : vector<8xf32>
    %179 = vector.multi_reduction <add>, %178, %cst_86 [1] : vector<8x32xf32> to vector<8xf32>
    %180 = vector.shape_cast %179 : vector<8xf32> to vector<8x1xf32>
    %cst_87 = arith.constant 3.200000e+01 : f32
    %181 = vector.broadcast %cst_87 : f32 to vector<8x1xf32>
    %182 = arith.divf %180, %181 : vector<8x1xf32>
    %cst_88 = arith.constant 9.99999974E-6 : f32
    %183 = vector.broadcast %cst_88 : f32 to vector<8x1xf32>
    %184 = arith.addf %182, %183 : vector<8x1xf32>
    %185 = math.rsqrt %184 : vector<8x1xf32>
    %186 = vector.broadcast %185 : vector<8x1xf32> to vector<8x32xf32>
    %187 = arith.mulf %177, %186 : vector<8x32xf32>
    %188 = vector.broadcast %170 : vector<1x32xf32> to vector<8x32xf32>
    %189 = arith.mulf %187, %188 : vector<8x32xf32>
    %190 = vector.broadcast %171 : vector<1x32xf32> to vector<8x32xf32>
    %191 = arith.addf %189, %190 : vector<8x32xf32>
    %c0_89 = arith.constant 0 : index
    %c0_90 = arith.constant 0 : index
    %192 = vector.load %arg19[%c0_89, %c0_90] : memref<32x32xf32, #tpu.memory_space<vmem>>, vector<32x32xf32>
    %cst_91 = arith.constant dense<0.000000e+00> : vector<8x32xf32>
    %193 = tpu.matmul %191, %192, %cst_91 {dimension_numbers = #tpu.dot_dimension_numbers<[1], [0], [0], [1], [0, 0, 1, 1], [], []>} : vector<8x32xf32>, vector<32x32xf32>, vector<8x32xf32> -> vector<8x32xf32>
    %c0_92 = arith.constant 0 : index
    %c0_93 = arith.constant 0 : index
    %194 = vector.load %arg17[%c0_92, %c0_93] : memref<1x32xf32, #tpu.memory_space<vmem>>, vector<1x32xf32>
    %195 = vector.broadcast %194 : vector<1x32xf32> to vector<8x32xf32>
    %196 = arith.addf %193, %195 : vector<8x32xf32>
    %197 = vector.extract_strided_slice %51 {offsets = [0, 0], sizes = [5, 64], strides = [1, 1]} : vector<5x128xf32> to vector<5x64xf32>
    %198 = vector.extract_strided_slice %197 {offsets = [0, 0], sizes = [5, 32], strides = [1, 1]} : vector<5x64xf32> to vector<5x32xf32>
    %199 = vector.extract_strided_slice %197 {offsets = [0, 32], sizes = [5, 32], strides = [1, 1]} : vector<5x64xf32> to vector<5x32xf32>
    %c0_94 = arith.constant 0 : index
    %c0_95 = arith.constant 0 : index
    %200 = vector.load %arg18[%c0_94, %c0_95] : memref<32x32xf32, #tpu.memory_space<vmem>>, vector<32x32xf32>
    %c0_96 = arith.constant 0 : index
    %c0_97 = arith.constant 0 : index
    %201 = vector.load %arg16[%c0_96, %c0_97] : memref<1x32xf32, #tpu.memory_space<vmem>>, vector<1x32xf32>
    %cst_98 = arith.constant 0.000000e+00 : f32
    %202 = vector.broadcast %cst_98 : f32 to vector<8x32xf32>
    %203 = vector.extract_strided_slice %196 {offsets = [0, 0], sizes = [8, 8], strides = [1, 1]} : vector<8x32xf32> to vector<8x8xf32>
    %204 = vector.extract_strided_slice %198 {offsets = [0, 0], sizes = [5, 8], strides = [1, 1]} : vector<5x32xf32> to vector<5x8xf32>
    %cst_99 = arith.constant dense<0.000000e+00> : vector<8x5xf32>
    %205 = tpu.matmul %203, %204, %cst_99 {dimension_numbers = #tpu.dot_dimension_numbers<[1], [1], [0], [0], [0, 0, 1, 0], [], []>} : vector<8x8xf32>, vector<5x8xf32>, vector<8x5xf32> -> vector<8x5xf32>
    %206 = arith.addf %205, %13 : vector<8x5xf32>
    %cst_100 = arith.constant dense<0xFF800000> : vector<8xf32>
    %207 = vector.multi_reduction <maximumf>, %206, %cst_100 [1] : vector<8x5xf32> to vector<8xf32>
    %208 = vector.shape_cast %207 : vector<8xf32> to vector<8x1xf32>
    %209 = vector.broadcast %208 : vector<8x1xf32> to vector<8x5xf32>
    %210 = arith.subf %206, %209 : vector<8x5xf32>
    %211 = math.exp %210 : vector<8x5xf32>
    %cst_101 = arith.constant dense<0.000000e+00> : vector<8xf32>
    %212 = vector.multi_reduction <add>, %211, %cst_101 [1] : vector<8x5xf32> to vector<8xf32>
    %213 = vector.shape_cast %212 : vector<8xf32> to vector<8x1xf32>
    %214 = tpu.reciprocal %213 {approx = true} : vector<8x1xf32> -> vector<8x1xf32>
    %215 = vector.broadcast %214 : vector<8x1xf32> to vector<8x5xf32>
    %216 = arith.mulf %211, %215 : vector<8x5xf32>
    %217 = vector.extract_strided_slice %199 {offsets = [0, 0], sizes = [5, 8], strides = [1, 1]} : vector<5x32xf32> to vector<5x8xf32>
    %cst_102 = arith.constant dense<0.000000e+00> : vector<8x8xf32>
    %218 = tpu.matmul %216, %217, %cst_102 {dimension_numbers = #tpu.dot_dimension_numbers<[1], [0], [0], [1], [0, 0, 1, 1], [], []>} : vector<8x5xf32>, vector<5x8xf32>, vector<8x8xf32> -> vector<8x8xf32>
    %219 = vector.extract_strided_slice %200 {offsets = [0, 0], sizes = [8, 32], strides = [1, 1]} : vector<32x32xf32> to vector<8x32xf32>
    %cst_103 = arith.constant dense<0.000000e+00> : vector<8x32xf32>
    %220 = tpu.matmul %218, %219, %cst_103 {dimension_numbers = #tpu.dot_dimension_numbers<[1], [0], [0], [1], [0, 0, 1, 1], [], []>} : vector<8x8xf32>, vector<8x32xf32>, vector<8x32xf32> -> vector<8x32xf32>
    %221 = arith.addf %202, %220 : vector<8x32xf32>
    %222 = vector.extract_strided_slice %196 {offsets = [0, 8], sizes = [8, 8], strides = [1, 1]} : vector<8x32xf32> to vector<8x8xf32>
    %223 = vector.extract_strided_slice %198 {offsets = [0, 8], sizes = [5, 8], strides = [1, 1]} : vector<5x32xf32> to vector<5x8xf32>
    %cst_104 = arith.constant dense<0.000000e+00> : vector<8x5xf32>
    %224 = tpu.matmul %222, %223, %cst_104 {dimension_numbers = #tpu.dot_dimension_numbers<[1], [1], [0], [0], [0, 0, 1, 0], [], []>} : vector<8x8xf32>, vector<5x8xf32>, vector<8x5xf32> -> vector<8x5xf32>
    %225 = arith.addf %224, %13 : vector<8x5xf32>
    %cst_105 = arith.constant dense<0xFF800000> : vector<8xf32>
    %226 = vector.multi_reduction <maximumf>, %225, %cst_105 [1] : vector<8x5xf32> to vector<8xf32>
    %227 = vector.shape_cast %226 : vector<8xf32> to vector<8x1xf32>
    %228 = vector.broadcast %227 : vector<8x1xf32> to vector<8x5xf32>
    %229 = arith.subf %225, %228 : vector<8x5xf32>
    %230 = math.exp %229 : vector<8x5xf32>
    %cst_106 = arith.constant dense<0.000000e+00> : vector<8xf32>
    %231 = vector.multi_reduction <add>, %230, %cst_106 [1] : vector<8x5xf32> to vector<8xf32>
    %232 = vector.shape_cast %231 : vector<8xf32> to vector<8x1xf32>
    %233 = tpu.reciprocal %232 {approx = true} : vector<8x1xf32> -> vector<8x1xf32>
    %234 = vector.broadcast %233 : vector<8x1xf32> to vector<8x5xf32>
    %235 = arith.mulf %230, %234 : vector<8x5xf32>
    %236 = vector.extract_strided_slice %199 {offsets = [0, 8], sizes = [5, 8], strides = [1, 1]} : vector<5x32xf32> to vector<5x8xf32>
    %cst_107 = arith.constant dense<0.000000e+00> : vector<8x8xf32>
    %237 = tpu.matmul %235, %236, %cst_107 {dimension_numbers = #tpu.dot_dimension_numbers<[1], [0], [0], [1], [0, 0, 1, 1], [], []>} : vector<8x5xf32>, vector<5x8xf32>, vector<8x8xf32> -> vector<8x8xf32>
    %238 = vector.extract_strided_slice %200 {offsets = [8, 0], sizes = [8, 32], strides = [1, 1]} : vector<32x32xf32> to vector<8x32xf32>
    %cst_108 = arith.constant dense<0.000000e+00> : vector<8x32xf32>
    %239 = tpu.matmul %237, %238, %cst_108 {dimension_numbers = #tpu.dot_dimension_numbers<[1], [0], [0], [1], [0, 0, 1, 1], [], []>} : vector<8x8xf32>, vector<8x32xf32>, vector<8x32xf32> -> vector<8x32xf32>
    %240 = arith.addf %221, %239 : vector<8x32xf32>
    %241 = vector.extract_strided_slice %196 {offsets = [0, 16], sizes = [8, 8], strides = [1, 1]} : vector<8x32xf32> to vector<8x8xf32>
    %242 = vector.extract_strided_slice %198 {offsets = [0, 16], sizes = [5, 8], strides = [1, 1]} : vector<5x32xf32> to vector<5x8xf32>
    %cst_109 = arith.constant dense<0.000000e+00> : vector<8x5xf32>
    %243 = tpu.matmul %241, %242, %cst_109 {dimension_numbers = #tpu.dot_dimension_numbers<[1], [1], [0], [0], [0, 0, 1, 0], [], []>} : vector<8x8xf32>, vector<5x8xf32>, vector<8x5xf32> -> vector<8x5xf32>
    %244 = arith.addf %243, %13 : vector<8x5xf32>
    %cst_110 = arith.constant dense<0xFF800000> : vector<8xf32>
    %245 = vector.multi_reduction <maximumf>, %244, %cst_110 [1] : vector<8x5xf32> to vector<8xf32>
    %246 = vector.shape_cast %245 : vector<8xf32> to vector<8x1xf32>
    %247 = vector.broadcast %246 : vector<8x1xf32> to vector<8x5xf32>
    %248 = arith.subf %244, %247 : vector<8x5xf32>
    %249 = math.exp %248 : vector<8x5xf32>
    %cst_111 = arith.constant dense<0.000000e+00> : vector<8xf32>
    %250 = vector.multi_reduction <add>, %249, %cst_111 [1] : vector<8x5xf32> to vector<8xf32>
    %251 = vector.shape_cast %250 : vector<8xf32> to vector<8x1xf32>
    %252 = tpu.reciprocal %251 {approx = true} : vector<8x1xf32> -> vector<8x1xf32>
    %253 = vector.broadcast %252 : vector<8x1xf32> to vector<8x5xf32>
    %254 = arith.mulf %249, %253 : vector<8x5xf32>
    %255 = vector.extract_strided_slice %199 {offsets = [0, 16], sizes = [5, 8], strides = [1, 1]} : vector<5x32xf32> to vector<5x8xf32>
    %cst_112 = arith.constant dense<0.000000e+00> : vector<8x8xf32>
    %256 = tpu.matmul %254, %255, %cst_112 {dimension_numbers = #tpu.dot_dimension_numbers<[1], [0], [0], [1], [0, 0, 1, 1], [], []>} : vector<8x5xf32>, vector<5x8xf32>, vector<8x8xf32> -> vector<8x8xf32>
    %257 = vector.extract_strided_slice %200 {offsets = [16, 0], sizes = [8, 32], strides = [1, 1]} : vector<32x32xf32> to vector<8x32xf32>
    %cst_113 = arith.constant dense<0.000000e+00> : vector<8x32xf32>
    %258 = tpu.matmul %256, %257, %cst_113 {dimension_numbers = #tpu.dot_dimension_numbers<[1], [0], [0], [1], [0, 0, 1, 1], [], []>} : vector<8x8xf32>, vector<8x32xf32>, vector<8x32xf32> -> vector<8x32xf32>
    %259 = arith.addf %240, %258 : vector<8x32xf32>
    %260 = vector.extract_strided_slice %196 {offsets = [0, 24], sizes = [8, 8], strides = [1, 1]} : vector<8x32xf32> to vector<8x8xf32>
    %261 = vector.extract_strided_slice %198 {offsets = [0, 24], sizes = [5, 8], strides = [1, 1]} : vector<5x32xf32> to vector<5x8xf32>
    %cst_114 = arith.constant dense<0.000000e+00> : vector<8x5xf32>
    %262 = tpu.matmul %260, %261, %cst_114 {dimension_numbers = #tpu.dot_dimension_numbers<[1], [1], [0], [0], [0, 0, 1, 0], [], []>} : vector<8x8xf32>, vector<5x8xf32>, vector<8x5xf32> -> vector<8x5xf32>
    %263 = arith.addf %262, %13 : vector<8x5xf32>
    %cst_115 = arith.constant dense<0xFF800000> : vector<8xf32>
    %264 = vector.multi_reduction <maximumf>, %263, %cst_115 [1] : vector<8x5xf32> to vector<8xf32>
    %265 = vector.shape_cast %264 : vector<8xf32> to vector<8x1xf32>
    %266 = vector.broadcast %265 : vector<8x1xf32> to vector<8x5xf32>
    %267 = arith.subf %263, %266 : vector<8x5xf32>
    %268 = math.exp %267 : vector<8x5xf32>
    %cst_116 = arith.constant dense<0.000000e+00> : vector<8xf32>
    %269 = vector.multi_reduction <add>, %268, %cst_116 [1] : vector<8x5xf32> to vector<8xf32>
    %270 = vector.shape_cast %269 : vector<8xf32> to vector<8x1xf32>
    %271 = tpu.reciprocal %270 {approx = true} : vector<8x1xf32> -> vector<8x1xf32>
    %272 = vector.broadcast %271 : vector<8x1xf32> to vector<8x5xf32>
    %273 = arith.mulf %268, %272 : vector<8x5xf32>
    %274 = vector.extract_strided_slice %199 {offsets = [0, 24], sizes = [5, 8], strides = [1, 1]} : vector<5x32xf32> to vector<5x8xf32>
    %cst_117 = arith.constant dense<0.000000e+00> : vector<8x8xf32>
    %275 = tpu.matmul %273, %274, %cst_117 {dimension_numbers = #tpu.dot_dimension_numbers<[1], [0], [0], [1], [0, 0, 1, 1], [], []>} : vector<8x5xf32>, vector<5x8xf32>, vector<8x8xf32> -> vector<8x8xf32>
    %276 = vector.extract_strided_slice %200 {offsets = [24, 0], sizes = [8, 32], strides = [1, 1]} : vector<32x32xf32> to vector<8x32xf32>
    %cst_118 = arith.constant dense<0.000000e+00> : vector<8x32xf32>
    %277 = tpu.matmul %275, %276, %cst_118 {dimension_numbers = #tpu.dot_dimension_numbers<[1], [0], [0], [1], [0, 0, 1, 1], [], []>} : vector<8x8xf32>, vector<8x32xf32>, vector<8x32xf32> -> vector<8x32xf32>
    %278 = arith.addf %259, %277 : vector<8x32xf32>
    %279 = vector.broadcast %201 : vector<1x32xf32> to vector<8x32xf32>
    %280 = arith.addf %278, %279 : vector<8x32xf32>
    %281 = arith.addf %169, %280 : vector<8x32xf32>
    %c0_119 = arith.constant 0 : index
    %c0_120 = arith.constant 0 : index
    %282 = vector.load %arg29[%c0_119, %c0_120] : memref<1x32xf32, #tpu.memory_space<vmem>>, vector<1x32xf32>
    %c0_121 = arith.constant 0 : index
    %c0_122 = arith.constant 0 : index
    %283 = vector.load %arg28[%c0_121, %c0_122] : memref<1x32xf32, #tpu.memory_space<vmem>>, vector<1x32xf32>
    %cst_123 = arith.constant dense<0.000000e+00> : vector<8xf32>
    %284 = vector.multi_reduction <add>, %281, %cst_123 [1] : vector<8x32xf32> to vector<8xf32>
    %285 = vector.shape_cast %284 : vector<8xf32> to vector<8x1xf32>
    %cst_124 = arith.constant 3.200000e+01 : f32
    %286 = vector.broadcast %cst_124 : f32 to vector<8x1xf32>
    %287 = arith.divf %285, %286 : vector<8x1xf32>
    %288 = vector.broadcast %287 : vector<8x1xf32> to vector<8x32xf32>
    %289 = arith.subf %281, %288 : vector<8x32xf32>
    %290 = arith.mulf %289, %289 : vector<8x32xf32>
    %cst_125 = arith.constant dense<0.000000e+00> : vector<8xf32>
    %291 = vector.multi_reduction <add>, %290, %cst_125 [1] : vector<8x32xf32> to vector<8xf32>
    %292 = vector.shape_cast %291 : vector<8xf32> to vector<8x1xf32>
    %cst_126 = arith.constant 3.200000e+01 : f32
    %293 = vector.broadcast %cst_126 : f32 to vector<8x1xf32>
    %294 = arith.divf %292, %293 : vector<8x1xf32>
    %cst_127 = arith.constant 9.99999974E-6 : f32
    %295 = vector.broadcast %cst_127 : f32 to vector<8x1xf32>
    %296 = arith.addf %294, %295 : vector<8x1xf32>
    %297 = math.rsqrt %296 : vector<8x1xf32>
    %298 = vector.broadcast %297 : vector<8x1xf32> to vector<8x32xf32>
    %299 = arith.mulf %289, %298 : vector<8x32xf32>
    %300 = vector.broadcast %282 : vector<1x32xf32> to vector<8x32xf32>
    %301 = arith.mulf %299, %300 : vector<8x32xf32>
    %302 = vector.broadcast %283 : vector<1x32xf32> to vector<8x32xf32>
    %303 = arith.addf %301, %302 : vector<8x32xf32>
    %c0_128 = arith.constant 0 : index
    %c0_129 = arith.constant 0 : index
    %304 = vector.load %arg22[%c0_128, %c0_129] : memref<32x128xf32, #tpu.memory_space<vmem>>, vector<32x128xf32>
    %cst_130 = arith.constant dense<0.000000e+00> : vector<8x128xf32>
    %305 = tpu.matmul %303, %304, %cst_130 {dimension_numbers = #tpu.dot_dimension_numbers<[1], [0], [0], [1], [0, 0, 1, 1], [], []>} : vector<8x32xf32>, vector<32x128xf32>, vector<8x128xf32> -> vector<8x128xf32>
    %c0_131 = arith.constant 0 : index
    %c0_132 = arith.constant 0 : index
    %306 = vector.load %arg20[%c0_131, %c0_132] : memref<1x128xf32, #tpu.memory_space<vmem>>, vector<1x128xf32>
    %307 = vector.broadcast %306 : vector<1x128xf32> to vector<8x128xf32>
    %308 = arith.addf %305, %307 : vector<8x128xf32>
    %cst_133 = arith.constant 5.000000e-01 : f32
    %309 = vector.broadcast %cst_133 : f32 to vector<8x128xf32>
    %310 = arith.mulf %309, %308 : vector<8x128xf32>
    %cst_134 = arith.constant 4.471500e-02 : f32
    %311 = vector.broadcast %cst_134 : f32 to vector<8x128xf32>
    %312 = arith.mulf %311, %308 : vector<8x128xf32>
    %313 = arith.mulf %312, %308 : vector<8x128xf32>
    %314 = arith.mulf %313, %308 : vector<8x128xf32>
    %315 = arith.addf %308, %314 : vector<8x128xf32>
    %cst_135 = arith.constant 0.797884583 : f32
    %316 = vector.broadcast %cst_135 : f32 to vector<8x128xf32>
    %317 = arith.mulf %316, %315 : vector<8x128xf32>
    %318 = math.tanh %317 : vector<8x128xf32>
    %cst_136 = arith.constant 1.000000e+00 : f32
    %319 = vector.broadcast %cst_136 : f32 to vector<8x128xf32>
    %320 = arith.addf %319, %318 : vector<8x128xf32>
    %321 = arith.mulf %310, %320 : vector<8x128xf32>
    %c0_137 = arith.constant 0 : index
    %c0_138 = arith.constant 0 : index
    %322 = vector.load %arg23[%c0_137, %c0_138] : memref<128x32xf32, #tpu.memory_space<vmem>>, vector<128x32xf32>
    %cst_139 = arith.constant dense<0.000000e+00> : vector<8x32xf32>
    %323 = tpu.matmul %321, %322, %cst_139 {dimension_numbers = #tpu.dot_dimension_numbers<[1], [0], [0], [1], [0, 0, 1, 1], [], []>} : vector<8x128xf32>, vector<128x32xf32>, vector<8x32xf32> -> vector<8x32xf32>
    %324 = arith.addf %281, %323 : vector<8x32xf32>
    %c0_140 = arith.constant 0 : index
    %c0_141 = arith.constant 0 : index
    %325 = vector.load %arg21[%c0_140, %c0_141] : memref<1x32xf32, #tpu.memory_space<vmem>>, vector<1x32xf32>
    %326 = vector.broadcast %325 : vector<1x32xf32> to vector<8x32xf32>
    %327 = arith.addf %324, %326 : vector<8x32xf32>
    %c0_142 = arith.constant 0 : index
    %c0_143 = arith.constant 0 : index
    %328 = vector.load %arg43[%c0_142, %c0_143] : memref<1x32xf32, #tpu.memory_space<vmem>>, vector<1x32xf32>
    %c0_144 = arith.constant 0 : index
    %c0_145 = arith.constant 0 : index
    %329 = vector.load %arg42[%c0_144, %c0_145] : memref<1x32xf32, #tpu.memory_space<vmem>>, vector<1x32xf32>
    %cst_146 = arith.constant dense<0.000000e+00> : vector<8xf32>
    %330 = vector.multi_reduction <add>, %327, %cst_146 [1] : vector<8x32xf32> to vector<8xf32>
    %331 = vector.shape_cast %330 : vector<8xf32> to vector<8x1xf32>
    %cst_147 = arith.constant 3.200000e+01 : f32
    %332 = vector.broadcast %cst_147 : f32 to vector<8x1xf32>
    %333 = arith.divf %331, %332 : vector<8x1xf32>
    %334 = vector.broadcast %333 : vector<8x1xf32> to vector<8x32xf32>
    %335 = arith.subf %327, %334 : vector<8x32xf32>
    %336 = arith.mulf %335, %335 : vector<8x32xf32>
    %cst_148 = arith.constant dense<0.000000e+00> : vector<8xf32>
    %337 = vector.multi_reduction <add>, %336, %cst_148 [1] : vector<8x32xf32> to vector<8xf32>
    %338 = vector.shape_cast %337 : vector<8xf32> to vector<8x1xf32>
    %cst_149 = arith.constant 3.200000e+01 : f32
    %339 = vector.broadcast %cst_149 : f32 to vector<8x1xf32>
    %340 = arith.divf %338, %339 : vector<8x1xf32>
    %cst_150 = arith.constant 9.99999974E-6 : f32
    %341 = vector.broadcast %cst_150 : f32 to vector<8x1xf32>
    %342 = arith.addf %340, %341 : vector<8x1xf32>
    %343 = math.rsqrt %342 : vector<8x1xf32>
    %344 = vector.broadcast %343 : vector<8x1xf32> to vector<8x32xf32>
    %345 = arith.mulf %335, %344 : vector<8x32xf32>
    %346 = vector.broadcast %328 : vector<1x32xf32> to vector<8x32xf32>
    %347 = arith.mulf %345, %346 : vector<8x32xf32>
    %348 = vector.broadcast %329 : vector<1x32xf32> to vector<8x32xf32>
    %349 = arith.addf %347, %348 : vector<8x32xf32>
    %c0_151 = arith.constant 0 : index
    %c0_152 = arith.constant 0 : index
    %350 = vector.load %arg51[%c0_151, %c0_152] : memref<32x96xf32, #tpu.memory_space<vmem>>, vector<32x96xf32>
    %cst_153 = arith.constant dense<0.000000e+00> : vector<8x96xf32>
    %351 = tpu.matmul %349, %350, %cst_153 {dimension_numbers = #tpu.dot_dimension_numbers<[1], [0], [0], [1], [0, 0, 1, 1], [], []>} : vector<8x32xf32>, vector<32x96xf32>, vector<8x96xf32> -> vector<8x96xf32>
    %c0_154 = arith.constant 0 : index
    %c0_155 = arith.constant 0 : index
    %352 = vector.load %arg49[%c0_154, %c0_155] : memref<1x96xf32, #tpu.memory_space<vmem>>, vector<1x96xf32>
    %353 = vector.broadcast %352 : vector<1x96xf32> to vector<8x96xf32>
    %354 = arith.addf %351, %353 : vector<8x96xf32>
    %355 = vector.extract_strided_slice %354 {offsets = [0, 0], sizes = [8, 32], strides = [1, 1]} : vector<8x96xf32> to vector<8x32xf32>
    %356 = vector.extract_strided_slice %354 {offsets = [0, 32], sizes = [8, 32], strides = [1, 1]} : vector<8x96xf32> to vector<8x32xf32>
    %357 = vector.extract_strided_slice %354 {offsets = [0, 64], sizes = [8, 32], strides = [1, 1]} : vector<8x96xf32> to vector<8x32xf32>
    %c0_156 = arith.constant 0 : index
    %c0_157 = arith.constant 0 : index
    %358 = vector.load %arg50[%c0_156, %c0_157] : memref<32x32xf32, #tpu.memory_space<vmem>>, vector<32x32xf32>
    %c0_158 = arith.constant 0 : index
    %c0_159 = arith.constant 0 : index
    %359 = vector.load %arg48[%c0_158, %c0_159] : memref<1x32xf32, #tpu.memory_space<vmem>>, vector<1x32xf32>
    %cst_160 = arith.constant 0.000000e+00 : f32
    %360 = vector.broadcast %cst_160 : f32 to vector<8x32xf32>
    %361 = vector.extract_strided_slice %355 {offsets = [0, 0], sizes = [8, 8], strides = [1, 1]} : vector<8x32xf32> to vector<8x8xf32>
    %362 = vector.extract_strided_slice %356 {offsets = [0, 0], sizes = [8, 8], strides = [1, 1]} : vector<8x32xf32> to vector<8x8xf32>
    %cst_161 = arith.constant dense<0.000000e+00> : vector<8x8xf32>
    %363 = tpu.matmul %361, %362, %cst_161 {dimension_numbers = #tpu.dot_dimension_numbers<[1], [1], [0], [0], [0, 0, 1, 0], [], []>} : vector<8x8xf32>, vector<8x8xf32>, vector<8x8xf32> -> vector<8x8xf32>
    %364 = arith.addf %363, %5 : vector<8x8xf32>
    %cst_162 = arith.constant dense<0xFF800000> : vector<8xf32>
    %365 = vector.multi_reduction <maximumf>, %364, %cst_162 [1] : vector<8x8xf32> to vector<8xf32>
    %366 = vector.shape_cast %365 : vector<8xf32> to vector<8x1xf32>
    %367 = vector.broadcast %366 : vector<8x1xf32> to vector<8x8xf32>
    %368 = arith.subf %364, %367 : vector<8x8xf32>
    %369 = math.exp %368 : vector<8x8xf32>
    %cst_163 = arith.constant dense<0.000000e+00> : vector<8xf32>
    %370 = vector.multi_reduction <add>, %369, %cst_163 [1] : vector<8x8xf32> to vector<8xf32>
    %371 = vector.shape_cast %370 : vector<8xf32> to vector<8x1xf32>
    %372 = tpu.reciprocal %371 {approx = true} : vector<8x1xf32> -> vector<8x1xf32>
    %373 = vector.broadcast %372 : vector<8x1xf32> to vector<8x8xf32>
    %374 = arith.mulf %369, %373 : vector<8x8xf32>
    %375 = vector.extract_strided_slice %357 {offsets = [0, 0], sizes = [8, 8], strides = [1, 1]} : vector<8x32xf32> to vector<8x8xf32>
    %cst_164 = arith.constant dense<0.000000e+00> : vector<8x8xf32>
    %376 = tpu.matmul %374, %375, %cst_164 {dimension_numbers = #tpu.dot_dimension_numbers<[1], [0], [0], [1], [0, 0, 1, 1], [], []>} : vector<8x8xf32>, vector<8x8xf32>, vector<8x8xf32> -> vector<8x8xf32>
    %377 = vector.extract_strided_slice %358 {offsets = [0, 0], sizes = [8, 32], strides = [1, 1]} : vector<32x32xf32> to vector<8x32xf32>
    %cst_165 = arith.constant dense<0.000000e+00> : vector<8x32xf32>
    %378 = tpu.matmul %376, %377, %cst_165 {dimension_numbers = #tpu.dot_dimension_numbers<[1], [0], [0], [1], [0, 0, 1, 1], [], []>} : vector<8x8xf32>, vector<8x32xf32>, vector<8x32xf32> -> vector<8x32xf32>
    %379 = arith.addf %360, %378 : vector<8x32xf32>
    %380 = vector.extract_strided_slice %355 {offsets = [0, 8], sizes = [8, 8], strides = [1, 1]} : vector<8x32xf32> to vector<8x8xf32>
    %381 = vector.extract_strided_slice %356 {offsets = [0, 8], sizes = [8, 8], strides = [1, 1]} : vector<8x32xf32> to vector<8x8xf32>
    %cst_166 = arith.constant dense<0.000000e+00> : vector<8x8xf32>
    %382 = tpu.matmul %380, %381, %cst_166 {dimension_numbers = #tpu.dot_dimension_numbers<[1], [1], [0], [0], [0, 0, 1, 0], [], []>} : vector<8x8xf32>, vector<8x8xf32>, vector<8x8xf32> -> vector<8x8xf32>
    %383 = arith.addf %382, %5 : vector<8x8xf32>
    %cst_167 = arith.constant dense<0xFF800000> : vector<8xf32>
    %384 = vector.multi_reduction <maximumf>, %383, %cst_167 [1] : vector<8x8xf32> to vector<8xf32>
    %385 = vector.shape_cast %384 : vector<8xf32> to vector<8x1xf32>
    %386 = vector.broadcast %385 : vector<8x1xf32> to vector<8x8xf32>
    %387 = arith.subf %383, %386 : vector<8x8xf32>
    %388 = math.exp %387 : vector<8x8xf32>
    %cst_168 = arith.constant dense<0.000000e+00> : vector<8xf32>
    %389 = vector.multi_reduction <add>, %388, %cst_168 [1] : vector<8x8xf32> to vector<8xf32>
    %390 = vector.shape_cast %389 : vector<8xf32> to vector<8x1xf32>
    %391 = tpu.reciprocal %390 {approx = true} : vector<8x1xf32> -> vector<8x1xf32>
    %392 = vector.broadcast %391 : vector<8x1xf32> to vector<8x8xf32>
    %393 = arith.mulf %388, %392 : vector<8x8xf32>
    %394 = vector.extract_strided_slice %357 {offsets = [0, 8], sizes = [8, 8], strides = [1, 1]} : vector<8x32xf32> to vector<8x8xf32>
    %cst_169 = arith.constant dense<0.000000e+00> : vector<8x8xf32>
    %395 = tpu.matmul %393, %394, %cst_169 {dimension_numbers = #tpu.dot_dimension_numbers<[1], [0], [0], [1], [0, 0, 1, 1], [], []>} : vector<8x8xf32>, vector<8x8xf32>, vector<8x8xf32> -> vector<8x8xf32>
    %396 = vector.extract_strided_slice %358 {offsets = [8, 0], sizes = [8, 32], strides = [1, 1]} : vector<32x32xf32> to vector<8x32xf32>
    %cst_170 = arith.constant dense<0.000000e+00> : vector<8x32xf32>
    %397 = tpu.matmul %395, %396, %cst_170 {dimension_numbers = #tpu.dot_dimension_numbers<[1], [0], [0], [1], [0, 0, 1, 1], [], []>} : vector<8x8xf32>, vector<8x32xf32>, vector<8x32xf32> -> vector<8x32xf32>
    %398 = arith.addf %379, %397 : vector<8x32xf32>
    %399 = vector.extract_strided_slice %355 {offsets = [0, 16], sizes = [8, 8], strides = [1, 1]} : vector<8x32xf32> to vector<8x8xf32>
    %400 = vector.extract_strided_slice %356 {offsets = [0, 16], sizes = [8, 8], strides = [1, 1]} : vector<8x32xf32> to vector<8x8xf32>
    %cst_171 = arith.constant dense<0.000000e+00> : vector<8x8xf32>
    %401 = tpu.matmul %399, %400, %cst_171 {dimension_numbers = #tpu.dot_dimension_numbers<[1], [1], [0], [0], [0, 0, 1, 0], [], []>} : vector<8x8xf32>, vector<8x8xf32>, vector<8x8xf32> -> vector<8x8xf32>
    %402 = arith.addf %401, %5 : vector<8x8xf32>
    %cst_172 = arith.constant dense<0xFF800000> : vector<8xf32>
    %403 = vector.multi_reduction <maximumf>, %402, %cst_172 [1] : vector<8x8xf32> to vector<8xf32>
    %404 = vector.shape_cast %403 : vector<8xf32> to vector<8x1xf32>
    %405 = vector.broadcast %404 : vector<8x1xf32> to vector<8x8xf32>
    %406 = arith.subf %402, %405 : vector<8x8xf32>
    %407 = math.exp %406 : vector<8x8xf32>
    %cst_173 = arith.constant dense<0.000000e+00> : vector<8xf32>
    %408 = vector.multi_reduction <add>, %407, %cst_173 [1] : vector<8x8xf32> to vector<8xf32>
    %409 = vector.shape_cast %408 : vector<8xf32> to vector<8x1xf32>
    %410 = tpu.reciprocal %409 {approx = true} : vector<8x1xf32> -> vector<8x1xf32>
    %411 = vector.broadcast %410 : vector<8x1xf32> to vector<8x8xf32>
    %412 = arith.mulf %407, %411 : vector<8x8xf32>
    %413 = vector.extract_strided_slice %357 {offsets = [0, 16], sizes = [8, 8], strides = [1, 1]} : vector<8x32xf32> to vector<8x8xf32>
    %cst_174 = arith.constant dense<0.000000e+00> : vector<8x8xf32>
    %414 = tpu.matmul %412, %413, %cst_174 {dimension_numbers = #tpu.dot_dimension_numbers<[1], [0], [0], [1], [0, 0, 1, 1], [], []>} : vector<8x8xf32>, vector<8x8xf32>, vector<8x8xf32> -> vector<8x8xf32>
    %415 = vector.extract_strided_slice %358 {offsets = [16, 0], sizes = [8, 32], strides = [1, 1]} : vector<32x32xf32> to vector<8x32xf32>
    %cst_175 = arith.constant dense<0.000000e+00> : vector<8x32xf32>
    %416 = tpu.matmul %414, %415, %cst_175 {dimension_numbers = #tpu.dot_dimension_numbers<[1], [0], [0], [1], [0, 0, 1, 1], [], []>} : vector<8x8xf32>, vector<8x32xf32>, vector<8x32xf32> -> vector<8x32xf32>
    %417 = arith.addf %398, %416 : vector<8x32xf32>
    %418 = vector.extract_strided_slice %355 {offsets = [0, 24], sizes = [8, 8], strides = [1, 1]} : vector<8x32xf32> to vector<8x8xf32>
    %419 = vector.extract_strided_slice %356 {offsets = [0, 24], sizes = [8, 8], strides = [1, 1]} : vector<8x32xf32> to vector<8x8xf32>
    %cst_176 = arith.constant dense<0.000000e+00> : vector<8x8xf32>
    %420 = tpu.matmul %418, %419, %cst_176 {dimension_numbers = #tpu.dot_dimension_numbers<[1], [1], [0], [0], [0, 0, 1, 0], [], []>} : vector<8x8xf32>, vector<8x8xf32>, vector<8x8xf32> -> vector<8x8xf32>
    %421 = arith.addf %420, %5 : vector<8x8xf32>
    %cst_177 = arith.constant dense<0xFF800000> : vector<8xf32>
    %422 = vector.multi_reduction <maximumf>, %421, %cst_177 [1] : vector<8x8xf32> to vector<8xf32>
    %423 = vector.shape_cast %422 : vector<8xf32> to vector<8x1xf32>
    %424 = vector.broadcast %423 : vector<8x1xf32> to vector<8x8xf32>
    %425 = arith.subf %421, %424 : vector<8x8xf32>
    %426 = math.exp %425 : vector<8x8xf32>
    %cst_178 = arith.constant dense<0.000000e+00> : vector<8xf32>
    %427 = vector.multi_reduction <add>, %426, %cst_178 [1] : vector<8x8xf32> to vector<8xf32>
    %428 = vector.shape_cast %427 : vector<8xf32> to vector<8x1xf32>
    %429 = tpu.reciprocal %428 {approx = true} : vector<8x1xf32> -> vector<8x1xf32>
    %430 = vector.broadcast %429 : vector<8x1xf32> to vector<8x8xf32>
    %431 = arith.mulf %426, %430 : vector<8x8xf32>
    %432 = vector.extract_strided_slice %357 {offsets = [0, 24], sizes = [8, 8], strides = [1, 1]} : vector<8x32xf32> to vector<8x8xf32>
    %cst_179 = arith.constant dense<0.000000e+00> : vector<8x8xf32>
    %433 = tpu.matmul %431, %432, %cst_179 {dimension_numbers = #tpu.dot_dimension_numbers<[1], [0], [0], [1], [0, 0, 1, 1], [], []>} : vector<8x8xf32>, vector<8x8xf32>, vector<8x8xf32> -> vector<8x8xf32>
    %434 = vector.extract_strided_slice %358 {offsets = [24, 0], sizes = [8, 32], strides = [1, 1]} : vector<32x32xf32> to vector<8x32xf32>
    %cst_180 = arith.constant dense<0.000000e+00> : vector<8x32xf32>
    %435 = tpu.matmul %433, %434, %cst_180 {dimension_numbers = #tpu.dot_dimension_numbers<[1], [0], [0], [1], [0, 0, 1, 1], [], []>} : vector<8x8xf32>, vector<8x32xf32>, vector<8x32xf32> -> vector<8x32xf32>
    %436 = arith.addf %417, %435 : vector<8x32xf32>
    %437 = vector.broadcast %359 : vector<1x32xf32> to vector<8x32xf32>
    %438 = arith.addf %436, %437 : vector<8x32xf32>
    %439 = arith.addf %327, %438 : vector<8x32xf32>
    %c0_181 = arith.constant 0 : index
    %c0_182 = arith.constant 0 : index
    %440 = vector.load %arg45[%c0_181, %c0_182] : memref<1x32xf32, #tpu.memory_space<vmem>>, vector<1x32xf32>
    %c0_183 = arith.constant 0 : index
    %c0_184 = arith.constant 0 : index
    %441 = vector.load %arg44[%c0_183, %c0_184] : memref<1x32xf32, #tpu.memory_space<vmem>>, vector<1x32xf32>
    %cst_185 = arith.constant dense<0.000000e+00> : vector<8xf32>
    %442 = vector.multi_reduction <add>, %439, %cst_185 [1] : vector<8x32xf32> to vector<8xf32>
    %443 = vector.shape_cast %442 : vector<8xf32> to vector<8x1xf32>
    %cst_186 = arith.constant 3.200000e+01 : f32
    %444 = vector.broadcast %cst_186 : f32 to vector<8x1xf32>
    %445 = arith.divf %443, %444 : vector<8x1xf32>
    %446 = vector.broadcast %445 : vector<8x1xf32> to vector<8x32xf32>
    %447 = arith.subf %439, %446 : vector<8x32xf32>
    %448 = arith.mulf %447, %447 : vector<8x32xf32>
    %cst_187 = arith.constant dense<0.000000e+00> : vector<8xf32>
    %449 = vector.multi_reduction <add>, %448, %cst_187 [1] : vector<8x32xf32> to vector<8xf32>
    %450 = vector.shape_cast %449 : vector<8xf32> to vector<8x1xf32>
    %cst_188 = arith.constant 3.200000e+01 : f32
    %451 = vector.broadcast %cst_188 : f32 to vector<8x1xf32>
    %452 = arith.divf %450, %451 : vector<8x1xf32>
    %cst_189 = arith.constant 9.99999974E-6 : f32
    %453 = vector.broadcast %cst_189 : f32 to vector<8x1xf32>
    %454 = arith.addf %452, %453 : vector<8x1xf32>
    %455 = math.rsqrt %454 : vector<8x1xf32>
    %456 = vector.broadcast %455 : vector<8x1xf32> to vector<8x32xf32>
    %457 = arith.mulf %447, %456 : vector<8x32xf32>
    %458 = vector.broadcast %440 : vector<1x32xf32> to vector<8x32xf32>
    %459 = arith.mulf %457, %458 : vector<8x32xf32>
    %460 = vector.broadcast %441 : vector<1x32xf32> to vector<8x32xf32>
    %461 = arith.addf %459, %460 : vector<8x32xf32>
    %c0_190 = arith.constant 0 : index
    %c0_191 = arith.constant 0 : index
    %462 = vector.load %arg37[%c0_190, %c0_191] : memref<32x32xf32, #tpu.memory_space<vmem>>, vector<32x32xf32>
    %cst_192 = arith.constant dense<0.000000e+00> : vector<8x32xf32>
    %463 = tpu.matmul %461, %462, %cst_192 {dimension_numbers = #tpu.dot_dimension_numbers<[1], [0], [0], [1], [0, 0, 1, 1], [], []>} : vector<8x32xf32>, vector<32x32xf32>, vector<8x32xf32> -> vector<8x32xf32>
    %c0_193 = arith.constant 0 : index
    %c0_194 = arith.constant 0 : index
    %464 = vector.load %arg35[%c0_193, %c0_194] : memref<1x32xf32, #tpu.memory_space<vmem>>, vector<1x32xf32>
    %465 = vector.broadcast %464 : vector<1x32xf32> to vector<8x32xf32>
    %466 = arith.addf %463, %465 : vector<8x32xf32>
    %467 = vector.extract_strided_slice %51 {offsets = [0, 64], sizes = [5, 64], strides = [1, 1]} : vector<5x128xf32> to vector<5x64xf32>
    %468 = vector.extract_strided_slice %467 {offsets = [0, 0], sizes = [5, 32], strides = [1, 1]} : vector<5x64xf32> to vector<5x32xf32>
    %469 = vector.extract_strided_slice %467 {offsets = [0, 32], sizes = [5, 32], strides = [1, 1]} : vector<5x64xf32> to vector<5x32xf32>
    %c0_195 = arith.constant 0 : index
    %c0_196 = arith.constant 0 : index
    %470 = vector.load %arg36[%c0_195, %c0_196] : memref<32x32xf32, #tpu.memory_space<vmem>>, vector<32x32xf32>
    %c0_197 = arith.constant 0 : index
    %c0_198 = arith.constant 0 : index
    %471 = vector.load %arg34[%c0_197, %c0_198] : memref<1x32xf32, #tpu.memory_space<vmem>>, vector<1x32xf32>
    %cst_199 = arith.constant 0.000000e+00 : f32
    %472 = vector.broadcast %cst_199 : f32 to vector<8x32xf32>
    %473 = vector.extract_strided_slice %466 {offsets = [0, 0], sizes = [8, 8], strides = [1, 1]} : vector<8x32xf32> to vector<8x8xf32>
    %474 = vector.extract_strided_slice %468 {offsets = [0, 0], sizes = [5, 8], strides = [1, 1]} : vector<5x32xf32> to vector<5x8xf32>
    %cst_200 = arith.constant dense<0.000000e+00> : vector<8x5xf32>
    %475 = tpu.matmul %473, %474, %cst_200 {dimension_numbers = #tpu.dot_dimension_numbers<[1], [1], [0], [0], [0, 0, 1, 0], [], []>} : vector<8x8xf32>, vector<5x8xf32>, vector<8x5xf32> -> vector<8x5xf32>
    %476 = arith.addf %475, %13 : vector<8x5xf32>
    %cst_201 = arith.constant dense<0xFF800000> : vector<8xf32>
    %477 = vector.multi_reduction <maximumf>, %476, %cst_201 [1] : vector<8x5xf32> to vector<8xf32>
    %478 = vector.shape_cast %477 : vector<8xf32> to vector<8x1xf32>
    %479 = vector.broadcast %478 : vector<8x1xf32> to vector<8x5xf32>
    %480 = arith.subf %476, %479 : vector<8x5xf32>
    %481 = math.exp %480 : vector<8x5xf32>
    %cst_202 = arith.constant dense<0.000000e+00> : vector<8xf32>
    %482 = vector.multi_reduction <add>, %481, %cst_202 [1] : vector<8x5xf32> to vector<8xf32>
    %483 = vector.shape_cast %482 : vector<8xf32> to vector<8x1xf32>
    %484 = tpu.reciprocal %483 {approx = true} : vector<8x1xf32> -> vector<8x1xf32>
    %485 = vector.broadcast %484 : vector<8x1xf32> to vector<8x5xf32>
    %486 = arith.mulf %481, %485 : vector<8x5xf32>
    %487 = vector.extract_strided_slice %469 {offsets = [0, 0], sizes = [5, 8], strides = [1, 1]} : vector<5x32xf32> to vector<5x8xf32>
    %cst_203 = arith.constant dense<0.000000e+00> : vector<8x8xf32>
    %488 = tpu.matmul %486, %487, %cst_203 {dimension_numbers = #tpu.dot_dimension_numbers<[1], [0], [0], [1], [0, 0, 1, 1], [], []>} : vector<8x5xf32>, vector<5x8xf32>, vector<8x8xf32> -> vector<8x8xf32>
    %489 = vector.extract_strided_slice %470 {offsets = [0, 0], sizes = [8, 32], strides = [1, 1]} : vector<32x32xf32> to vector<8x32xf32>
    %cst_204 = arith.constant dense<0.000000e+00> : vector<8x32xf32>
    %490 = tpu.matmul %488, %489, %cst_204 {dimension_numbers = #tpu.dot_dimension_numbers<[1], [0], [0], [1], [0, 0, 1, 1], [], []>} : vector<8x8xf32>, vector<8x32xf32>, vector<8x32xf32> -> vector<8x32xf32>
    %491 = arith.addf %472, %490 : vector<8x32xf32>
    %492 = vector.extract_strided_slice %466 {offsets = [0, 8], sizes = [8, 8], strides = [1, 1]} : vector<8x32xf32> to vector<8x8xf32>
    %493 = vector.extract_strided_slice %468 {offsets = [0, 8], sizes = [5, 8], strides = [1, 1]} : vector<5x32xf32> to vector<5x8xf32>
    %cst_205 = arith.constant dense<0.000000e+00> : vector<8x5xf32>
    %494 = tpu.matmul %492, %493, %cst_205 {dimension_numbers = #tpu.dot_dimension_numbers<[1], [1], [0], [0], [0, 0, 1, 0], [], []>} : vector<8x8xf32>, vector<5x8xf32>, vector<8x5xf32> -> vector<8x5xf32>
    %495 = arith.addf %494, %13 : vector<8x5xf32>
    %cst_206 = arith.constant dense<0xFF800000> : vector<8xf32>
    %496 = vector.multi_reduction <maximumf>, %495, %cst_206 [1] : vector<8x5xf32> to vector<8xf32>
    %497 = vector.shape_cast %496 : vector<8xf32> to vector<8x1xf32>
    %498 = vector.broadcast %497 : vector<8x1xf32> to vector<8x5xf32>
    %499 = arith.subf %495, %498 : vector<8x5xf32>
    %500 = math.exp %499 : vector<8x5xf32>
    %cst_207 = arith.constant dense<0.000000e+00> : vector<8xf32>
    %501 = vector.multi_reduction <add>, %500, %cst_207 [1] : vector<8x5xf32> to vector<8xf32>
    %502 = vector.shape_cast %501 : vector<8xf32> to vector<8x1xf32>
    %503 = tpu.reciprocal %502 {approx = true} : vector<8x1xf32> -> vector<8x1xf32>
    %504 = vector.broadcast %503 : vector<8x1xf32> to vector<8x5xf32>
    %505 = arith.mulf %500, %504 : vector<8x5xf32>
    %506 = vector.extract_strided_slice %469 {offsets = [0, 8], sizes = [5, 8], strides = [1, 1]} : vector<5x32xf32> to vector<5x8xf32>
    %cst_208 = arith.constant dense<0.000000e+00> : vector<8x8xf32>
    %507 = tpu.matmul %505, %506, %cst_208 {dimension_numbers = #tpu.dot_dimension_numbers<[1], [0], [0], [1], [0, 0, 1, 1], [], []>} : vector<8x5xf32>, vector<5x8xf32>, vector<8x8xf32> -> vector<8x8xf32>
    %508 = vector.extract_strided_slice %470 {offsets = [8, 0], sizes = [8, 32], strides = [1, 1]} : vector<32x32xf32> to vector<8x32xf32>
    %cst_209 = arith.constant dense<0.000000e+00> : vector<8x32xf32>
    %509 = tpu.matmul %507, %508, %cst_209 {dimension_numbers = #tpu.dot_dimension_numbers<[1], [0], [0], [1], [0, 0, 1, 1], [], []>} : vector<8x8xf32>, vector<8x32xf32>, vector<8x32xf32> -> vector<8x32xf32>
    %510 = arith.addf %491, %509 : vector<8x32xf32>
    %511 = vector.extract_strided_slice %466 {offsets = [0, 16], sizes = [8, 8], strides = [1, 1]} : vector<8x32xf32> to vector<8x8xf32>
    %512 = vector.extract_strided_slice %468 {offsets = [0, 16], sizes = [5, 8], strides = [1, 1]} : vector<5x32xf32> to vector<5x8xf32>
    %cst_210 = arith.constant dense<0.000000e+00> : vector<8x5xf32>
    %513 = tpu.matmul %511, %512, %cst_210 {dimension_numbers = #tpu.dot_dimension_numbers<[1], [1], [0], [0], [0, 0, 1, 0], [], []>} : vector<8x8xf32>, vector<5x8xf32>, vector<8x5xf32> -> vector<8x5xf32>
    %514 = arith.addf %513, %13 : vector<8x5xf32>
    %cst_211 = arith.constant dense<0xFF800000> : vector<8xf32>
    %515 = vector.multi_reduction <maximumf>, %514, %cst_211 [1] : vector<8x5xf32> to vector<8xf32>
    %516 = vector.shape_cast %515 : vector<8xf32> to vector<8x1xf32>
    %517 = vector.broadcast %516 : vector<8x1xf32> to vector<8x5xf32>
    %518 = arith.subf %514, %517 : vector<8x5xf32>
    %519 = math.exp %518 : vector<8x5xf32>
    %cst_212 = arith.constant dense<0.000000e+00> : vector<8xf32>
    %520 = vector.multi_reduction <add>, %519, %cst_212 [1] : vector<8x5xf32> to vector<8xf32>
    %521 = vector.shape_cast %520 : vector<8xf32> to vector<8x1xf32>
    %522 = tpu.reciprocal %521 {approx = true} : vector<8x1xf32> -> vector<8x1xf32>
    %523 = vector.broadcast %522 : vector<8x1xf32> to vector<8x5xf32>
    %524 = arith.mulf %519, %523 : vector<8x5xf32>
    %525 = vector.extract_strided_slice %469 {offsets = [0, 16], sizes = [5, 8], strides = [1, 1]} : vector<5x32xf32> to vector<5x8xf32>
    %cst_213 = arith.constant dense<0.000000e+00> : vector<8x8xf32>
    %526 = tpu.matmul %524, %525, %cst_213 {dimension_numbers = #tpu.dot_dimension_numbers<[1], [0], [0], [1], [0, 0, 1, 1], [], []>} : vector<8x5xf32>, vector<5x8xf32>, vector<8x8xf32> -> vector<8x8xf32>
    %527 = vector.extract_strided_slice %470 {offsets = [16, 0], sizes = [8, 32], strides = [1, 1]} : vector<32x32xf32> to vector<8x32xf32>
    %cst_214 = arith.constant dense<0.000000e+00> : vector<8x32xf32>
    %528 = tpu.matmul %526, %527, %cst_214 {dimension_numbers = #tpu.dot_dimension_numbers<[1], [0], [0], [1], [0, 0, 1, 1], [], []>} : vector<8x8xf32>, vector<8x32xf32>, vector<8x32xf32> -> vector<8x32xf32>
    %529 = arith.addf %510, %528 : vector<8x32xf32>
    %530 = vector.extract_strided_slice %466 {offsets = [0, 24], sizes = [8, 8], strides = [1, 1]} : vector<8x32xf32> to vector<8x8xf32>
    %531 = vector.extract_strided_slice %468 {offsets = [0, 24], sizes = [5, 8], strides = [1, 1]} : vector<5x32xf32> to vector<5x8xf32>
    %cst_215 = arith.constant dense<0.000000e+00> : vector<8x5xf32>
    %532 = tpu.matmul %530, %531, %cst_215 {dimension_numbers = #tpu.dot_dimension_numbers<[1], [1], [0], [0], [0, 0, 1, 0], [], []>} : vector<8x8xf32>, vector<5x8xf32>, vector<8x5xf32> -> vector<8x5xf32>
    %533 = arith.addf %532, %13 : vector<8x5xf32>
    %cst_216 = arith.constant dense<0xFF800000> : vector<8xf32>
    %534 = vector.multi_reduction <maximumf>, %533, %cst_216 [1] : vector<8x5xf32> to vector<8xf32>
    %535 = vector.shape_cast %534 : vector<8xf32> to vector<8x1xf32>
    %536 = vector.broadcast %535 : vector<8x1xf32> to vector<8x5xf32>
    %537 = arith.subf %533, %536 : vector<8x5xf32>
    %538 = math.exp %537 : vector<8x5xf32>
    %cst_217 = arith.constant dense<0.000000e+00> : vector<8xf32>
    %539 = vector.multi_reduction <add>, %538, %cst_217 [1] : vector<8x5xf32> to vector<8xf32>
    %540 = vector.shape_cast %539 : vector<8xf32> to vector<8x1xf32>
    %541 = tpu.reciprocal %540 {approx = true} : vector<8x1xf32> -> vector<8x1xf32>
    %542 = vector.broadcast %541 : vector<8x1xf32> to vector<8x5xf32>
    %543 = arith.mulf %538, %542 : vector<8x5xf32>
    %544 = vector.extract_strided_slice %469 {offsets = [0, 24], sizes = [5, 8], strides = [1, 1]} : vector<5x32xf32> to vector<5x8xf32>
    %cst_218 = arith.constant dense<0.000000e+00> : vector<8x8xf32>
    %545 = tpu.matmul %543, %544, %cst_218 {dimension_numbers = #tpu.dot_dimension_numbers<[1], [0], [0], [1], [0, 0, 1, 1], [], []>} : vector<8x5xf32>, vector<5x8xf32>, vector<8x8xf32> -> vector<8x8xf32>
    %546 = vector.extract_strided_slice %470 {offsets = [24, 0], sizes = [8, 32], strides = [1, 1]} : vector<32x32xf32> to vector<8x32xf32>
    %cst_219 = arith.constant dense<0.000000e+00> : vector<8x32xf32>
    %547 = tpu.matmul %545, %546, %cst_219 {dimension_numbers = #tpu.dot_dimension_numbers<[1], [0], [0], [1], [0, 0, 1, 1], [], []>} : vector<8x8xf32>, vector<8x32xf32>, vector<8x32xf32> -> vector<8x32xf32>
    %548 = arith.addf %529, %547 : vector<8x32xf32>
    %549 = vector.broadcast %471 : vector<1x32xf32> to vector<8x32xf32>
    %550 = arith.addf %548, %549 : vector<8x32xf32>
    %551 = arith.addf %439, %550 : vector<8x32xf32>
    %c0_220 = arith.constant 0 : index
    %c0_221 = arith.constant 0 : index
    %552 = vector.load %arg47[%c0_220, %c0_221] : memref<1x32xf32, #tpu.memory_space<vmem>>, vector<1x32xf32>
    %c0_222 = arith.constant 0 : index
    %c0_223 = arith.constant 0 : index
    %553 = vector.load %arg46[%c0_222, %c0_223] : memref<1x32xf32, #tpu.memory_space<vmem>>, vector<1x32xf32>
    %cst_224 = arith.constant dense<0.000000e+00> : vector<8xf32>
    %554 = vector.multi_reduction <add>, %551, %cst_224 [1] : vector<8x32xf32> to vector<8xf32>
    %555 = vector.shape_cast %554 : vector<8xf32> to vector<8x1xf32>
    %cst_225 = arith.constant 3.200000e+01 : f32
    %556 = vector.broadcast %cst_225 : f32 to vector<8x1xf32>
    %557 = arith.divf %555, %556 : vector<8x1xf32>
    %558 = vector.broadcast %557 : vector<8x1xf32> to vector<8x32xf32>
    %559 = arith.subf %551, %558 : vector<8x32xf32>
    %560 = arith.mulf %559, %559 : vector<8x32xf32>
    %cst_226 = arith.constant dense<0.000000e+00> : vector<8xf32>
    %561 = vector.multi_reduction <add>, %560, %cst_226 [1] : vector<8x32xf32> to vector<8xf32>
    %562 = vector.shape_cast %561 : vector<8xf32> to vector<8x1xf32>
    %cst_227 = arith.constant 3.200000e+01 : f32
    %563 = vector.broadcast %cst_227 : f32 to vector<8x1xf32>
    %564 = arith.divf %562, %563 : vector<8x1xf32>
    %cst_228 = arith.constant 9.99999974E-6 : f32
    %565 = vector.broadcast %cst_228 : f32 to vector<8x1xf32>
    %566 = arith.addf %564, %565 : vector<8x1xf32>
    %567 = math.rsqrt %566 : vector<8x1xf32>
    %568 = vector.broadcast %567 : vector<8x1xf32> to vector<8x32xf32>
    %569 = arith.mulf %559, %568 : vector<8x32xf32>
    %570 = vector.broadcast %552 : vector<1x32xf32> to vector<8x32xf32>
    %571 = arith.mulf %569, %570 : vector<8x32xf32>
    %572 = vector.broadcast %553 : vector<1x32xf32> to vector<8x32xf32>
    %573 = arith.addf %571, %572 : vector<8x32xf32>
    %c0_229 = arith.constant 0 : index
    %c0_230 = arith.constant 0 : index
    %574 = vector.load %arg40[%c0_229, %c0_230] : memref<32x128xf32, #tpu.memory_space<vmem>>, vector<32x128xf32>
    %cst_231 = arith.constant dense<0.000000e+00> : vector<8x128xf32>
    %575 = tpu.matmul %573, %574, %cst_231 {dimension_numbers = #tpu.dot_dimension_numbers<[1], [0], [0], [1], [0, 0, 1, 1], [], []>} : vector<8x32xf32>, vector<32x128xf32>, vector<8x128xf32> -> vector<8x128xf32>
    %c0_232 = arith.constant 0 : index
    %c0_233 = arith.constant 0 : index
    %576 = vector.load %arg38[%c0_232, %c0_233] : memref<1x128xf32, #tpu.memory_space<vmem>>, vector<1x128xf32>
    %577 = vector.broadcast %576 : vector<1x128xf32> to vector<8x128xf32>
    %578 = arith.addf %575, %577 : vector<8x128xf32>
    %cst_234 = arith.constant 5.000000e-01 : f32
    %579 = vector.broadcast %cst_234 : f32 to vector<8x128xf32>
    %580 = arith.mulf %579, %578 : vector<8x128xf32>
    %cst_235 = arith.constant 4.471500e-02 : f32
    %581 = vector.broadcast %cst_235 : f32 to vector<8x128xf32>
    %582 = arith.mulf %581, %578 : vector<8x128xf32>
    %583 = arith.mulf %582, %578 : vector<8x128xf32>
    %584 = arith.mulf %583, %578 : vector<8x128xf32>
    %585 = arith.addf %578, %584 : vector<8x128xf32>
    %cst_236 = arith.constant 0.797884583 : f32
    %586 = vector.broadcast %cst_236 : f32 to vector<8x128xf32>
    %587 = arith.mulf %586, %585 : vector<8x128xf32>
    %588 = math.tanh %587 : vector<8x128xf32>
    %cst_237 = arith.constant 1.000000e+00 : f32
    %589 = vector.broadcast %cst_237 : f32 to vector<8x128xf32>
    %590 = arith.addf %589, %588 : vector<8x128xf32>
    %591 = arith.mulf %580, %590 : vector<8x128xf32>
    %c0_238 = arith.constant 0 : index
    %c0_239 = arith.constant 0 : index
    %592 = vector.load %arg41[%c0_238, %c0_239] : memref<128x32xf32, #tpu.memory_space<vmem>>, vector<128x32xf32>
    %cst_240 = arith.constant dense<0.000000e+00> : vector<8x32xf32>
    %593 = tpu.matmul %591, %592, %cst_240 {dimension_numbers = #tpu.dot_dimension_numbers<[1], [0], [0], [1], [0, 0, 1, 1], [], []>} : vector<8x128xf32>, vector<128x32xf32>, vector<8x32xf32> -> vector<8x32xf32>
    %594 = arith.addf %551, %593 : vector<8x32xf32>
    %c0_241 = arith.constant 0 : index
    %c0_242 = arith.constant 0 : index
    %595 = vector.load %arg39[%c0_241, %c0_242] : memref<1x32xf32, #tpu.memory_space<vmem>>, vector<1x32xf32>
    %596 = vector.broadcast %595 : vector<1x32xf32> to vector<8x32xf32>
    %597 = arith.addf %594, %596 : vector<8x32xf32>
    %c0_243 = arith.constant 0 : index
    %c0_244 = arith.constant 0 : index
    %598 = vector.load %arg53[%c0_243, %c0_244] : memref<1x32xf32, #tpu.memory_space<vmem>>, vector<1x32xf32>
    %c0_245 = arith.constant 0 : index
    %c0_246 = arith.constant 0 : index
    %599 = vector.load %arg52[%c0_245, %c0_246] : memref<1x32xf32, #tpu.memory_space<vmem>>, vector<1x32xf32>
    %cst_247 = arith.constant dense<0.000000e+00> : vector<8xf32>
    %600 = vector.multi_reduction <add>, %597, %cst_247 [1] : vector<8x32xf32> to vector<8xf32>
    %601 = vector.shape_cast %600 : vector<8xf32> to vector<8x1xf32>
    %cst_248 = arith.constant 3.200000e+01 : f32
    %602 = vector.broadcast %cst_248 : f32 to vector<8x1xf32>
    %603 = arith.divf %601, %602 : vector<8x1xf32>
    %604 = vector.broadcast %603 : vector<8x1xf32> to vector<8x32xf32>
    %605 = arith.subf %597, %604 : vector<8x32xf32>
    %606 = arith.mulf %605, %605 : vector<8x32xf32>
    %cst_249 = arith.constant dense<0.000000e+00> : vector<8xf32>
    %607 = vector.multi_reduction <add>, %606, %cst_249 [1] : vector<8x32xf32> to vector<8xf32>
    %608 = vector.shape_cast %607 : vector<8xf32> to vector<8x1xf32>
    %cst_250 = arith.constant 3.200000e+01 : f32
    %609 = vector.broadcast %cst_250 : f32 to vector<8x1xf32>
    %610 = arith.divf %608, %609 : vector<8x1xf32>
    %cst_251 = arith.constant 9.99999974E-6 : f32
    %611 = vector.broadcast %cst_251 : f32 to vector<8x1xf32>
    %612 = arith.addf %610, %611 : vector<8x1xf32>
    %613 = math.rsqrt %612 : vector<8x1xf32>
    %614 = vector.broadcast %613 : vector<8x1xf32> to vector<8x32xf32>
    %615 = arith.mulf %605, %614 : vector<8x32xf32>
    %616 = vector.broadcast %598 : vector<1x32xf32> to vector<8x32xf32>
    %617 = arith.mulf %615, %616 : vector<8x32xf32>
    %618 = vector.broadcast %599 : vector<1x32xf32> to vector<8x32xf32>
    %619 = arith.addf %617, %618 : vector<8x32xf32>
    %c0_252 = arith.constant 0 : index
    %c0_253 = arith.constant 0 : index
    %620 = vector.load %arg14[%c0_252, %c0_253] : memref<32x128xf32, #tpu.memory_space<vmem>>, vector<32x128xf32>
    %cst_254 = arith.constant dense<0.000000e+00> : vector<8x128xf32>
    %621 = tpu.matmul %619, %620, %cst_254 {dimension_numbers = #tpu.dot_dimension_numbers<[1], [0], [0], [1], [0, 0, 1, 1], [], []>} : vector<8x32xf32>, vector<32x128xf32>, vector<8x128xf32> -> vector<8x128xf32>
    %c0_255 = arith.constant 0 : index
    %c0_256 = arith.constant 0 : index
    %622 = vector.load %arg13[%c0_255, %c0_256] : memref<1x128xf32, #tpu.memory_space<vmem>>, vector<1x128xf32>
    %623 = vector.broadcast %622 : vector<1x128xf32> to vector<8x128xf32>
    %624 = arith.addf %621, %623 : vector<8x128xf32>
    %c0_257 = arith.constant 0 : index
    %c0_258 = arith.constant 0 : index
    %c0_259 = arith.constant 0 : index
    %625 = vector.load %arg55[%c0_257, %c0_258, %c0_259] : memref<1x8x128xf32, #tpu.memory_space<vmem>>, vector<1x8x128xf32>
    %626 = vector.shape_cast %625 : vector<1x8x128xf32> to vector<8x128xf32>
    %627 = vector.shape_cast %624 : vector<8x128xf32> to vector<1x8x128xf32>
    tpu.vector_store %arg55[%c0_257, %c0_258, %c0_259], %627 {strides = array<i32>} : memref<1x8x128xf32, #tpu.memory_space<vmem>>, vector<1x8x128xf32>,
    return
  }
  func.func @transform_0(%arg0: i32) -> (i32, i32, i32) {
    %c0_i32 = arith.constant 0 : i32
    %c0_i32_0 = arith.constant 0 : i32
    %c0_i32_1 = arith.constant 0 : i32
    return %arg0, %c0_i32, %c0_i32_0 : i32, i32, i32
  }
  func.func @transform_1(%arg0: i32) -> (i32, i32, i32) {
    %c0_i32 = arith.constant 0 : i32
    %c0_i32_0 = arith.constant 0 : i32
    %c0_i32_1 = arith.constant 0 : i32
    return %arg0, %c0_i32, %c0_i32_0 : i32, i32, i32
  }
  func.func @transform_2(%arg0: i32) -> (i32, i32, i32) {
    %c0_i32 = arith.constant 0 : i32
    %c0_i32_0 = arith.constant 0 : i32
    %c0_i32_1 = arith.constant 0 : i32
    return %arg0, %c0_i32, %c0_i32_0 : i32, i32, i32
  }
  func.func @transform_3(%arg0: i32) -> (i32, i32) {
    %c0_i32 = arith.constant 0 : i32
    %c0_i32_0 = arith.constant 0 : i32
    %c0_i32_1 = arith.constant 0 : i32
    return %c0_i32, %c0_i32_0 : i32, i32
  }
  func.func @transform_4(%arg0: i32) -> (i32, i32) {
    %c0_i32 = arith.constant 0 : i32
    %c0_i32_0 = arith.constant 0 : i32
    %c0_i32_1 = arith.constant 0 : i32
    return %c0_i32, %c0_i32_0 : i32, i32
  }
  func.func @transform_5(%arg0: i32) -> (i32, i32) {
    %c0_i32 = arith.constant 0 : i32
    %c0_i32_0 = arith.constant 0 : i32
    %c0_i32_1 = arith.constant 0 : i32
    return %c0_i32, %c0_i32_0 : i32, i32
  }
  func.func @transform_6(%arg0: i32) -> (i32, i32) {
    %c0_i32 = arith.constant 0 : i32
    %c0_i32_0 = arith.constant 0 : i32
    %c0_i32_1 = arith.constant 0 : i32
    return %c0_i32, %c0_i32_0 : i32, i32
  }
  func.func @transform_7(%arg0: i32) -> (i32, i32) {
    %c0_i32 = arith.constant 0 : i32
    %c0_i32_0 = arith.constant 0 : i32
    %c0_i32_1 = arith.constant 0 : i32
    return %c0_i32, %c0_i32_0 : i32, i32
  }
  func.func @transform_8(%arg0: i32) -> (i32, i32) {
    %c0_i32 = arith.constant 0 : i32
    %c0_i32_0 = arith.constant 0 : i32
    %c0_i32_1 = arith.constant 0 : i32
    return %c0_i32, %c0_i32_0 : i32, i32
  }
  func.func @transform_9(%arg0: i32) -> (i32, i32) {
    %c0_i32 = arith.constant 0 : i32
    %c0_i32_0 = arith.constant 0 : i32
    %c0_i32_1 = arith.constant 0 : i32
    return %c0_i32, %c0_i32_0 : i32, i32
  }
  func.func @transform_10(%arg0: i32) -> (i32, i32) {
    %c0_i32 = arith.constant 0 : i32
    %c0_i32_0 = arith.constant 0 : i32
    %c0_i32_1 = arith.constant 0 : i32
    return %c0_i32, %c0_i32_0 : i32, i32
  }
  func.func @transform_11(%arg0: i32) -> (i32, i32) {
    %c0_i32 = arith.constant 0 : i32
    %c0_i32_0 = arith.constant 0 : i32
    %c0_i32_1 = arith.constant 0 : i32
    return %c0_i32, %c0_i32_0 : i32, i32
  }
  func.func @transform_12(%arg0: i32) -> (i32, i32) {
    %c0_i32 = arith.constant 0 : i32
    %c0_i32_0 = arith.constant 0 : i32
    %c0_i32_1 = arith.constant 0 : i32
    return %c0_i32, %c0_i32_0 : i32, i32
  }
  func.func @transform_13(%arg0: i32) -> (i32, i32) {
    %c0_i32 = arith.constant 0 : i32
    %c0_i32_0 = arith.constant 0 : i32
    %c0_i32_1 = arith.constant 0 : i32
    return %c0_i32, %c0_i32_0 : i32, i32
  }
  func.func @transform_14(%arg0: i32) -> (i32, i32) {
    %c0_i32 = arith.constant 0 : i32
    %c0_i32_0 = arith.constant 0 : i32
    %c0_i32_1 = arith.constant 0 : i32
    return %c0_i32, %c0_i32_0 : i32, i32
  }
  func.func @transform_15(%arg0: i32) -> (i32, i32) {
    %c0_i32 = arith.constant 0 : i32
    %c0_i32_0 = arith.constant 0 : i32
    %c0_i32_1 = arith.constant 0 : i32
    return %c0_i32, %c0_i32_0 : i32, i32
  }
  func.func @transform_16(%arg0: i32) -> (i32, i32) {
    %c0_i32 = arith.constant 0 : i32
    %c0_i32_0 = arith.constant 0 : i32
    %c0_i32_1 = arith.constant 0 : i32
    return %c0_i32, %c0_i32_0 : i32, i32
  }
  func.func @transform_17(%arg0: i32) -> (i32, i32) {
    %c0_i32 = arith.constant 0 : i32
    %c0_i32_0 = arith.constant 0 : i32
    %c0_i32_1 = arith.constant 0 : i32
    return %c0_i32, %c0_i32_0 : i32, i32
  }
  func.func @transform_18(%arg0: i32) -> (i32, i32) {
    %c0_i32 = arith.constant 0 : i32
    %c0_i32_0 = arith.constant 0 : i32
    %c0_i32_1 = arith.constant 0 : i32
    return %c0_i32, %c0_i32_0 : i32, i32
  }
  func.func @transform_19(%arg0: i32) -> (i32, i32) {
    %c0_i32 = arith.constant 0 : i32
    %c0_i32_0 = arith.constant 0 : i32
    %c0_i32_1 = arith.constant 0 : i32
    return %c0_i32, %c0_i32_0 : i32, i32
  }
  func.func @transform_20(%arg0: i32) -> (i32, i32) {
    %c0_i32 = arith.constant 0 : i32
    %c0_i32_0 = arith.constant 0 : i32
    %c0_i32_1 = arith.constant 0 : i32
    return %c0_i32, %c0_i32_0 : i32, i32
  }
  func.func @transform_21(%arg0: i32) -> (i32, i32) {
    %c0_i32 = arith.constant 0 : i32
    %c0_i32_0 = arith.constant 0 : i32
    %c0_i32_1 = arith.constant 0 : i32
    return %c0_i32, %c0_i32_0 : i32, i32
  }
  func.func @transform_22(%arg0: i32) -> (i32, i32) {
    %c0_i32 = arith.constant 0 : i32
    %c0_i32_0 = arith.constant 0 : i32
    %c0_i32_1 = arith.constant 0 : i32
    return %c0_i32, %c0_i32_0 : i32, i32
  }
  func.func @transform_23(%arg0: i32) -> (i32, i32) {
    %c0_i32 = arith.constant 0 : i32
    %c0_i32_0 = arith.constant 0 : i32
    %c0_i32_1 = arith.constant 0 : i32
    return %c0_i32, %c0_i32_0 : i32, i32
  }
  func.func @transform_24(%arg0: i32) -> (i32, i32) {
    %c0_i32 = arith.constant 0 : i32
    %c0_i32_0 = arith.constant 0 : i32
    %c0_i32_1 = arith.constant 0 : i32
    return %c0_i32, %c0_i32_0 : i32, i32
  }
  func.func @transform_25(%arg0: i32) -> (i32, i32) {
    %c0_i32 = arith.constant 0 : i32
    %c0_i32_0 = arith.constant 0 : i32
    %c0_i32_1 = arith.constant 0 : i32
    return %c0_i32, %c0_i32_0 : i32, i32
  }
  func.func @transform_26(%arg0: i32) -> (i32, i32) {
    %c0_i32 = arith.constant 0 : i32
    %c0_i32_0 = arith.constant 0 : i32
    %c0_i32_1 = arith.constant 0 : i32
    return %c0_i32, %c0_i32_0 : i32, i32
  }
  func.func @transform_27(%arg0: i32) -> (i32, i32) {
    %c0_i32 = arith.constant 0 : i32
    %c0_i32_0 = arith.constant 0 : i32
    %c0_i32_1 = arith.constant 0 : i32
    return %c0_i32, %c0_i32_0 : i32, i32
  }
  func.func @transform_28(%arg0: i32) -> (i32, i32) {
    %c0_i32 = arith.constant 0 : i32
    %c0_i32_0 = arith.constant 0 : i32
    %c0_i32_1 = arith.constant 0 : i32
    return %c0_i32, %c0_i32_0 : i32, i32
  }
  func.func @transform_29(%arg0: i32) -> (i32, i32) {
    %c0_i32 = arith.constant 0 : i32
    %c0_i32_0 = arith.constant 0 : i32
    %c0_i32_1 = arith.constant 0 : i32
    return %c0_i32, %c0_i32_0 : i32, i32
  }
  func.func @transform_30(%arg0: i32) -> (i32, i32) {
    %c0_i32 = arith.constant 0 : i32
    %c0_i32_0 = arith.constant 0 : i32
    %c0_i32_1 = arith.constant 0 : i32
    return %c0_i32, %c0_i32_0 : i32, i32
  }
  func.func @transform_31(%arg0: i32) -> (i32, i32) {
    %c0_i32 = arith.constant 0 : i32
    %c0_i32_0 = arith.constant 0 : i32
    %c0_i32_1 = arith.constant 0 : i32
    return %c0_i32, %c0_i32_0 : i32, i32
  }
  func.func @transform_32(%arg0: i32) -> (i32, i32) {
    %c0_i32 = arith.constant 0 : i32
    %c0_i32_0 = arith.constant 0 : i32
    %c0_i32_1 = arith.constant 0 : i32
    return %c0_i32, %c0_i32_0 : i32, i32
  }
  func.func @transform_33(%arg0: i32) -> (i32, i32) {
    %c0_i32 = arith.constant 0 : i32
    %c0_i32_0 = arith.constant 0 : i32
    %c0_i32_1 = arith.constant 0 : i32
    return %c0_i32, %c0_i32_0 : i32, i32
  }
  func.func @transform_34(%arg0: i32) -> (i32, i32) {
    %c0_i32 = arith.constant 0 : i32
    %c0_i32_0 = arith.constant 0 : i32
    %c0_i32_1 = arith.constant 0 : i32
    return %c0_i32, %c0_i32_0 : i32, i32
  }
  func.func @transform_35(%arg0: i32) -> (i32, i32) {
    %c0_i32 = arith.constant 0 : i32
    %c0_i32_0 = arith.constant 0 : i32
    %c0_i32_1 = arith.constant 0 : i32
    return %c0_i32, %c0_i32_0 : i32, i32
  }
  func.func @transform_36(%arg0: i32) -> (i32, i32) {
    %c0_i32 = arith.constant 0 : i32
    %c0_i32_0 = arith.constant 0 : i32
    %c0_i32_1 = arith.constant 0 : i32
    return %c0_i32, %c0_i32_0 : i32, i32
  }
  func.func @transform_37(%arg0: i32) -> (i32, i32) {
    %c0_i32 = arith.constant 0 : i32
    %c0_i32_0 = arith.constant 0 : i32
    %c0_i32_1 = arith.constant 0 : i32
    return %c0_i32, %c0_i32_0 : i32, i32
  }
  func.func @transform_38(%arg0: i32) -> (i32, i32) {
    %c0_i32 = arith.constant 0 : i32
    %c0_i32_0 = arith.constant 0 : i32
    %c0_i32_1 = arith.constant 0 : i32
    return %c0_i32, %c0_i32_0 : i32, i32
  }
  func.func @transform_39(%arg0: i32) -> (i32, i32) {
    %c0_i32 = arith.constant 0 : i32
    %c0_i32_0 = arith.constant 0 : i32
    %c0_i32_1 = arith.constant 0 : i32
    return %c0_i32, %c0_i32_0 : i32, i32
  }
  func.func @transform_40(%arg0: i32) -> (i32, i32) {
    %c0_i32 = arith.constant 0 : i32
    %c0_i32_0 = arith.constant 0 : i32
    %c0_i32_1 = arith.constant 0 : i32
    return %c0_i32, %c0_i32_0 : i32, i32
  }
  func.func @transform_41(%arg0: i32) -> (i32, i32) {
    %c0_i32 = arith.constant 0 : i32
    %c0_i32_0 = arith.constant 0 : i32
    %c0_i32_1 = arith.constant 0 : i32
    return %c0_i32, %c0_i32_0 : i32, i32
  }
  func.func @transform_42(%arg0: i32) -> (i32, i32) {
    %c0_i32 = arith.constant 0 : i32
    %c0_i32_0 = arith.constant 0 : i32
    %c0_i32_1 = arith.constant 0 : i32
    return %c0_i32, %c0_i32_0 : i32, i32
  }
  func.func @transform_43(%arg0: i32) -> (i32, i32) {
    %c0_i32 = arith.constant 0 : i32
    %c0_i32_0 = arith.constant 0 : i32
    %c0_i32_1 = arith.constant 0 : i32
    return %c0_i32, %c0_i32_0 : i32, i32
  }
  func.func @transform_44(%arg0: i32) -> (i32, i32) {
    %c0_i32 = arith.constant 0 : i32
    %c0_i32_0 = arith.constant 0 : i32
    %c0_i32_1 = arith.constant 0 : i32
    return %c0_i32, %c0_i32_0 : i32, i32
  }
  func.func @transform_45(%arg0: i32) -> (i32, i32) {
    %c0_i32 = arith.constant 0 : i32
    %c0_i32_0 = arith.constant 0 : i32
    %c0_i32_1 = arith.constant 0 : i32
    return %c0_i32, %c0_i32_0 : i32, i32
  }
  func.func @transform_46(%arg0: i32) -> (i32, i32) {
    %c0_i32 = arith.constant 0 : i32
    %c0_i32_0 = arith.constant 0 : i32
    %c0_i32_1 = arith.constant 0 : i32
    return %c0_i32, %c0_i32_0 : i32, i32
  }
  func.func @transform_47(%arg0: i32) -> (i32, i32) {
    %c0_i32 = arith.constant 0 : i32
    %c0_i32_0 = arith.constant 0 : i32
    %c0_i32_1 = arith.constant 0 : i32
    return %c0_i32, %c0_i32_0 : i32, i32
  }
  func.func @transform_48(%arg0: i32) -> (i32, i32) {
    %c0_i32 = arith.constant 0 : i32
    %c0_i32_0 = arith.constant 0 : i32
    %c0_i32_1 = arith.constant 0 : i32
    return %c0_i32, %c0_i32_0 : i32, i32
  }
  func.func @transform_49(%arg0: i32) -> (i32, i32) {
    %c0_i32 = arith.constant 0 : i32
    %c0_i32_0 = arith.constant 0 : i32
    %c0_i32_1 = arith.constant 0 : i32
    return %c0_i32, %c0_i32_0 : i32, i32
  }
  func.func @transform_50(%arg0: i32) -> (i32, i32) {
    %c0_i32 = arith.constant 0 : i32
    %c0_i32_0 = arith.constant 0 : i32
    %c0_i32_1 = arith.constant 0 : i32
    return %c0_i32, %c0_i32_0 : i32, i32
  }
  func.func @transform_51(%arg0: i32) -> (i32, i32) {
    %c0_i32 = arith.constant 0 : i32
    %c0_i32_0 = arith.constant 0 : i32
    %c0_i32_1 = arith.constant 0 : i32
    return %c0_i32, %c0_i32_0 : i32, i32
  }
  func.func @transform_52(%arg0: i32) -> (i32, i32) {
    %c0_i32 = arith.constant 0 : i32
    %c0_i32_0 = arith.constant 0 : i32
    %c0_i32_1 = arith.constant 0 : i32
    return %c0_i32, %c0_i32_0 : i32, i32
  }
  func.func @transform_53(%arg0: i32) -> (i32, i32) {
    %c0_i32 = arith.constant 0 : i32
    %c0_i32_0 = arith.constant 0 : i32
    %c0_i32_1 = arith.constant 0 : i32
    return %c0_i32, %c0_i32_0 : i32, i32
  }
  func.func @transform_54(%arg0: i32) -> (i32, i32, i32) {
    %c0_i32 = arith.constant 0 : i32
    %c0_i32_0 = arith.constant 0 : i32
    %c0_i32_1 = arith.constant 0 : i32
    return %arg0, %c0_i32, %c0_i32_0 : i32, i32, i32
  }
}

</mosaic_0001>

<bundles_post_ra>
// kernel: forward.1
= control target key start
LH: loop header
LB: loop body
LE: loop exit
PB: predicated region body
PF: predicated region fallthrough
CT: control target
= control target key end

     0   :  { %s9133_s6 = smov 1   ;;  %s9134_s10 = smov 2   ;;  %s10424_s0 = inlined_call_operand.smem [shape: u32[55], index: -1, kind: input, shape index: {}] }
   0x1   :  { %s9231_s5 = sld [smem:[%s10424_s0]]   ;;  %s9135_s14 = smov 3  }
   0x2   :  { %s9236_s9 = sld [smem:[%s10424_s0 + %s9133_s6]]   ;;  %s9136_s18 = smov 4  }
   0x3   :  { %s9241_s13 = sld [smem:[%s10424_s0 + %s9134_s10]]   ;;  %s9137_s22 = smov 5  }
   0x4   :  { %s9246_s17 = sld [smem:[%s10424_s0 + %s9135_s14]]   ;;  %s9138_s26 = smov 6  }
   0x5   :  { %s9251_s21 = sld [smem:[%s10424_s0 + %s9136_s18]]   ;;  %s9139_s30 = smov 7  }
   0x6   :  { %s9256_s25 = sld [smem:[%s10424_s0 + %s9137_s22]]   ;;  %s9140_s4 = smov 8  }
   0x7   :  { %10485 = sst [smem:[#allocation32_spill]] %s9231_s5  ;;  %s9141_s10 = smov 9  }
   0x8   :  { %s9261_s29 = sld [smem:[%s10424_s0 + %s9138_s26]]   ;;  %s9142_s15 = smov 10  }
   0x9   :  { %s9266_s3 = sld [smem:[%s10424_s0 + %s9139_s30]]   ;;  %s9143_s20 = smov 11  }
   0xa   :  { %10486 = sst [smem:[#allocation33_spill]] %s9246_s17  ;;  %s9144_s26 = smov 12  }
   0xb   :  { %10487 = sst [smem:[#allocation34_spill]] %s9251_s21  ;;  %s9145_s1 = smov 13  }
   0xc   :  { %s9271_s8 = sld [smem:[%s10424_s0 + %s9140_s4]]   ;;  %s9146_s7 = smov 14  }
   0xd   :  { %s9276_s14 = sld [smem:[%s10424_s0 + %s9141_s10]]   ;;  %s9148_s22 = smov 16  }
   0xe   :  { %10488 = sst [smem:[#allocation35_spill]] %s9261_s29  ;;  %s9149_s28 = smov 17  }
   0xf   :  { %10489 = sst [smem:[#allocation36_spill]] %s9266_s3 }
  0x10   :  { %s9281_s19 = sld [smem:[%s10424_s0 + %s9142_s15]]   ;;  %s9147_s15 = smov 15  }
  0x11   :  { %s9286_s24 = sld [smem:[%s10424_s0 + %s9143_s20]]  }
  0x12   :  { %10490 = sst [smem:[#allocation37_spill]] %s9271_s8 }
  0x13   :  { %10491 = sst [smem:[#allocation38_spill]] %s9276_s14 }
  0x14   :  { %s9291_s30 = sld [smem:[%s10424_s0 + %s9144_s26]]  }
  0x15   :  { %s9296_s6 = sld [smem:[%s10424_s0 + %s9145_s1]]  }
  0x16   :  { %s9301_s12 = sld [smem:[%s10424_s0 + %s9146_s7]]   ;;  %s9150_s7 = smov 18  }
  0x17   :  { %10492 = sst [smem:[#allocation39_spill]] %s9286_s24 }
  0x18   :  { %s9306_s20 = sld [smem:[%s10424_s0 + %s9147_s15]]   ;;  %s9151_s15 = smov 19  }
  0x19   :  { %s9311_s27 = sld [smem:[%s10424_s0 + %s9148_s22]]   ;;  %s9152_s22 = smov 20  }
  0x1a   :  { %10493 = sst [smem:[#allocation40_spill]] %s9291_s30 }
  0x1b   :  { %10494 = sst [smem:[#allocation41_spill]] %s9296_s6 }
  0x1c   :  { %10495 = sst [smem:[#allocation42_spill]] %s9301_s12 }
  0x1d   :  { %s9316_s4 = sld [smem:[%s10424_s0 + %s9149_s28]]   ;;  %s9153_s28 = smov 21  }
  0x1e   :  { %10496 = sst [smem:[#allocation43_spill]] %s9306_s20 }
  0x1f   :  { %10497 = sst [smem:[#allocation44_spill]] %s9311_s27 }
  0x20   :  { %s9321_s30 = sld [smem:[%s10424_s0 + %s9150_s7]]   ;;  %s9154_s7 = smov 22  }
  0x21   :  { %s9326_s6 = sld [smem:[%s10424_s0 + %s9151_s15]]   ;;  %s9155_s15 = smov 23  }
  0x22   :  { %s9331_s20 = sld [smem:[%s10424_s0 + %s9152_s22]]   ;;  %s9156_s22 = smov 24  }
  0x23   :  { %10498 = sst [smem:[#allocation45_spill]] %s9316_s4 }
  0x24   :  { %s9336_s4 = sld [smem:[%s10424_s0 + %s9153_s28]]   ;;  %s9157_s28 = smov 25  }
  0x25   :  { %s9341_s27 = sld [smem:[%s10424_s0 + %s9154_s7]]   ;;  %s9158_s7 = smov 26  }
  0x26   :  { %10499 = sst [smem:[#allocation46_spill]] %s9321_s30 }
  0x27   :  { %10500 = sst [smem:[#allocation47_spill]] %s9326_s6 }
  0x28   :  { %10501 = sst [smem:[#allocation48_spill]] %s9331_s20 }
  0x29   :  { %s9346_s6 = sld [smem:[%s10424_s0 + %s9155_s15]]   ;;  %s9159_s15 = smov 27  }
  0x2a   :  { %10502 = sst [smem:[#allocation49_spill]] %s9336_s4 }
  0x2b   :  { %10503 = sst [smem:[#allocation50_spill]] %s9341_s27 }
  0x2c   :  { %s9351_s20 = sld [smem:[%s10424_s0 + %s9156_s22]]   ;;  %s9160_s22 = smov 28  }
  0x2d   :  { %s9356_s4 = sld [smem:[%s10424_s0 + %s9157_s28]]   ;;  %s9161_s28 = smov 29  }
  0x2e   :  { %s9361_s27 = sld [smem:[%s10424_s0 + %s9158_s7]]   ;;  %s9162_s7 = smov 30  }
  0x2f   :  { %10504 = sst [smem:[#allocation51_spill]] %s9346_s6 }
  0x30   :  { %s9366_s30 = sld [smem:[%s10424_s0 + %s9159_s15]]   ;;  %s9163_s15 = smov 31  }
  0x31   :  { %s9371_s17 = sld [smem:[%s10424_s0 + %s9160_s22]]   ;;  %s9164_s22 = smov 32  }
  0x32   :  { %10505 = sst [smem:[#allocation52_spill]] %s9351_s20 }
  0x33   :  { %10506 = sst [smem:[#allocation53_spill]] %s9356_s4 }
  0x34   :  { %10507 = sst [smem:[#allocation54_spill]] %s9361_s27 }
  0x35   :  { %s9376_s4 = sld [smem:[%s10424_s0 + %s9161_s28]]   ;;  %s9165_s28 = smov 33  }
  0x36   :  { %10508 = sst [smem:[#allocation55_spill]] %s9366_s30 }
  0x37   :  { %10509 = sst [smem:[#allocation56_spill]] %s9371_s17 }
  0x38   :  { %s9381_s27 = sld [smem:[%s10424_s0 + %s9162_s7]]   ;;  %s9166_s7 = smov 34  }
  0x39   :  { %s9386_s30 = sld [smem:[%s10424_s0 + %s9163_s15]]   ;;  %s9167_s15 = smov 35  }
  0x3a   :  { %s9391_s17 = sld [smem:[%s10424_s0 + %s9164_s22]]   ;;  %s9168_s22 = smov 36  }
  0x3b   :  { %10510 = sst [smem:[#allocation57_spill]] %s9376_s4 }
  0x3c   :  { %s9396_s4 = sld [smem:[%s10424_s0 + %s9165_s28]]   ;;  %s9169_s28 = smov 37  }
  0x3d   :  { %s9411_s6 = sld [smem:[%s10424_s0 + %s9168_s22]]   ;;  %s9172_s22 = smov 40  }
  0x3e   :  { %10511 = sst [smem:[#allocation58_spill]] %s9381_s27 }
  0x3f   :  { %10512 = sst [smem:[#allocation59_spill]] %s9386_s30 }
  0x40   :  { %10513 = sst [smem:[#allocation60_spill]] %s9391_s17 }
  0x41   :  { %s9401_s27 = sld [smem:[%s10424_s0 + %s9166_s7]]   ;;  %s9170_s7 = smov 38  }
  0x42   :  { %10514 = sst [smem:[#allocation61_spill]] %s9396_s4 }
  0x43   :  { %s9406_s30 = sld [smem:[%s10424_s0 + %s9167_s15]]   ;;  %s9171_s15 = smov 39  }
  0x44   :  { %10517 = sst [smem:[#allocation64_spill]] %s9411_s6 }
  0x45   :  { %s9416_s4 = sld [smem:[%s10424_s0 + %s9169_s28]]   ;;  %s9173_s28 = smov 41  }
  0x46   :  { %s9431_s6 = sld [smem:[%s10424_s0 + %s9172_s22]]   ;;  %s9176_s22 = smov 44  }
  0x47   :  { %10515 = sst [smem:[#allocation62_spill]] %s9401_s27 }
  0x48   :  { %s9421_s27 = sld [smem:[%s10424_s0 + %s9170_s7]]   ;;  %s9174_s7 = smov 42  }
  0x49   :  { %10516 = sst [smem:[#allocation63_spill]] %s9406_s30 }
  0x4a   :  { %s9426_s30 = sld [smem:[%s10424_s0 + %s9171_s15]]   ;;  %s9175_s15 = smov 43  }
  0x4b   :  { %10518 = sst [smem:[#allocation65_spill]] %s9416_s4 }
  0x4c   :  { %10521 = sst [smem:[#allocation68_spill]] %s9431_s6 }
  0x4d   :  { %s9436_s4 = sld [smem:[%s10424_s0 + %s9173_s28]]   ;;  %s9177_s28 = smov 45  }
  0x4e   :  { %10519 = sst [smem:[#allocation66_spill]] %s9421_s27 }
  0x4f   :  { %s9441_s27 = sld [smem:[%s10424_s0 + %s9174_s7]]   ;;  %s9178_s7 = smov 46  }
  0x50   :  { %10520 = sst [smem:[#allocation67_spill]] %s9426_s30 }
  0x51   :  { %s9446_s30 = sld [smem:[%s10424_s0 + %s9175_s15]]   ;;  %s9179_s15 = smov 47  }
  0x52   :  { %s9451_s6 = sld [smem:[%s10424_s0 + %s9176_s22]]   ;;  %s9180_s22 = smov 48  }
  0x53   :  { %10522 = sst [smem:[#allocation69_spill]] %s9436_s4 }
  0x54   :  { %s9456_s4 = sld [smem:[%s10424_s0 + %s9177_s28]]   ;;  %s9181_s28 = smov 49  }
  0x55   :  { %s9461_s20 = sld [smem:[%s10424_s0 + %s9178_s7]]   ;;  %s9182_s7 = smov 50  }
  0x56   :  { %s9466_s17 = sld [smem:[%s10424_s0 + %s9179_s15]]   ;;  %s9183_s15 = smov 51  }
  0x57   :  { %s9471_s5 = sld [smem:[%s10424_s0 + %s9180_s22]]   ;;  %s9184_s22 = smov 52  }
  0x58   :  { %10523 = sst [smem:[#allocation70_spill]] %s9451_s6 }
  0x59   :  { %s9476_s12 = sld [smem:[%s10424_s0 + %s9181_s28]]   ;;  %s9185_s28 = smov 53  }
  0x5a   :  { %10524 = sst [smem:[#allocation71_spill]] %s9456_s4 }
  0x5b   :  { %s9481_s21 = sld [smem:[%s10424_s0 + %s9182_s7]]   ;;  %s9186_s7 = smov 54  }
  0x5c   :  { %s9486_s24 = sld [smem:[%s10424_s0 + %s9183_s15]]  }
  0x5d   :  { %10525 = sst [smem:[#allocation72_spill]] %s9471_s5 }
  0x5e   :  { %s9491_s29 = sld [smem:[%s10424_s0 + %s9184_s22]]  }
  0x5f   :  { %10526 = sst [smem:[#allocation73_spill]] %s9476_s12 }
  0x60   :  { %s9496_s12 = sld [smem:[%s10424_s0 + %s9185_s28]]  }
  0x61   :  { %10527 = sst [smem:[#allocation74_spill]] %s9481_s21 }
  0x62   :  { %s9501_s21 = sld [smem:[%s10424_s0 + %s9186_s7]]  }
  0x63   :  { %114 = vsyncpa [#allocation3], 0 }
  0x64   :  { %115 = vsyncpa [#allocation6], 0 }
  0x65   :  { %116 = vsyncpa [#allocation9], 0 }
  0x66   :  { %117 = vsyncpa [#allocation12], 0 }
  0x67   :  { %118 = vsyncpa [#allocation15], 0 }
  0x68   :  { %119 = vsyncpa [#allocation18], 0 }
  0x69   :  { %120 = vsyncpa [#allocation21], 0 }
  0x6a   :  { %121 = vsyncpa [#allocation4], 0 }
  0x6b   :  { %123 = vsyncpa [#allocation4 + $0x1], 0  ;;  %s9503_s15 = smov 0   ;;  %s9505_s16 = smov 0  }
  0x6c   :  { %s9507_s18 = smov 0   ;;  %s9509_s22 = smov 0  }
  0x6d LB: > { %s10528_s8 = sld [smem:[#allocation37_spill]]  ;;  %s10529_s6 = sld [smem:[#allocation70_spill]]  ;;  %s9123_s16 = sphi %s9505_s16, %s10617_s16   ;;  %s9119_s15 = sphi %s9503_s15, %s10616_s15   ;;  %s9131_s22 = sphi %s9509_s22, %s10613_s22   ;;  %s9127_s18 = sphi %s9507_s18, %s10615_s18  }
  0x6e   : > { %s10530_s5 = sld [smem:[#allocation72_spill]]  ;;  %s10531_s4 = sld [smem:[#allocation71_spill]] }
  0x6f   : > { %s10532_s14 = sld [smem:[#allocation38_spill]]  ;;  %s10533_s3 = sld [smem:[#allocation36_spill]] }
  0x70   : > { %10534 = sst [smem:[#allocation75_spill]] %s9119_s15  ;;  %s9524_s0 = sadd.s32 4294967295, %s9131_s22  }
  0x71   : > { %10535 = sst [smem:[#allocation76_spill]] %s9127_s18  ;;  %s7398_s23 = sadd.s32 4294967294, %s9131_s22  }
  0x72   : > { %s9528_s26 = sadd.s32 1, %s9131_s22   ;;  %s1285_s28 = sadd.s32 1, %s9127_s18 }
  0x73   : > { %10536 = sst [smem:[#allocation77_spill]] %s9528_s26  ;;  %s1282_s1 = ssub.s32 %s9131_s22, %s9528_s26 }
  0x74   : > { %p1295_p0 = scmp.ne.s32.totalorder %s9127_s18, %s9123_s16  ;;  %p1283_p1 = scmp.eq.s32.totalorder %s1282_s1, 0 }
  0x75   : > { %p1296_p2 = scmp.eq.s32.totalorder %s9524_s0, 1  ;;  %p1301_p3 = scmp.ne.s32.totalorder %s9123_s16, %s9119_s15 }
  0x76   : > { %p1302_p4 = scmp.eq.s32.totalorder %s7398_s23, 1  ;;  %p7399_p7 = scmp.ge.s32.totalorder %s9131_s22, 1 }
  0x77   : > { %s9539_s2 = scalar_select %p1283_p1, %s9127_s18, %s1285_s28  }
  0x78   : > { %p9541_p5 = por %p1296_p2, %p1295_p0  ;;  %p9545_p6 = por %p1302_p4, %p1301_p3 }
  0x79   : > { %10537 = sst [smem:[#allocation78_spill]] %s9539_s2  ;;  %p1309_p8 = scmp.lt.s32.totalorder %s9131_s22, 3 }
  0x7a   : > { %s10538_s7 = scalar_select %p9541_p5, 1, 0 }
  0x7b   : > { %s10539_s10 = scalar_select %p9545_p6, 1, 0 }
  0x7c   : > { %p10446_p9 = scmp.eq.s32.totalorder %s9524_s0, 0  ;;  %p9552_p10 = pnand %p7399_p7, %p1309_p8 }
  0x7d   : > { %10540 = sst [smem:[#allocation79_spill]] %s10539_s10  ;;  %s9187_s23 = smov [#allocation5]  }
  0x7e   : > { %s10541_s11 = scalar_select %p9552_p10, 1, 0 }
  0x7f   : > { %s1344_s28 = sshll.u32 %s9187_s23, 4  ;;  %p8397_p11 = pneg %p9552_p10  ;;  %s1345_s28 = int_to_ptr.vmem [resolvable:$true] %s1344_s28 }
  0x80   : > { %s9188_s1 = smov [#allocation8]   ;;  %s9189_s26 = smov [#allocation11]  }
  0x81   : > { %s1366_s2 = sshll.u32 %s9188_s1, 4  ;;  %p9560_p12 = pnand %p10446_p9, %p8397_p11  ;;  %s9564_s2 = int_to_ptr.vmem [resolvable:$true] %s1366_s2 }
  0x82   : > { %s1484_s10 = sshll.u32 %s9189_s26, 4  ;;  %s8677_s15 = scalar_lea.hbm %s10533_s3, 16  ;;  %s9566_s10 = int_to_ptr.vmem [resolvable:$true] %s1484_s10 }
  0x83   : > { %p8678_p13 = scmp.ne.s32.totalorder %s10533_s3, %s8677_s15  ;;  %p9572_p0 = pneg %p9560_p12 }
  0x84   : > { %p8684_p3 = scmp.lt.u32.totalorder %s8677_s15, %s10533_s3 }
  0x85   : > { %p8680_p1 = pnand %p9572_p0, %p8678_p13 }
  0x87   : > { %p8681_p2 = pneg %p8680_p1 }
  0x89   : > { %p8686_p4 = pnand %p8684_p3, %p8681_p2 }
  0x8b   : > { %8689 = shalt.err (!%p8686_p4)
}
  0x8c   : > { %s8690_s1 = scalar_lea.vmem %s1345_s28, 16  ;;  %s8697_s26 = scalar_lea.vmem %s1345_s28, 32 }
  0x8d   : > { %p8691_p7 = scmp.ne.s32.totalorder %s1345_s28, %s8690_s1  ;;  %p8698_p9 = scmp.lt.s32.totalorder %s1345_s28, %s1345_s28 }
  0x8e   : > { %p8699_p6 = scmp.lt.s32.totalorder %s8697_s26, %s8690_s1 }
  0x8f   : > { %p8693_p8 = pnand %p8691_p7, %p9572_p0 }
  0x90   : > { %p8700_p5 = por %p8699_p6, %p8698_p9 }
  0x91   : > { %p8694_p11 = pneg %p8693_p8 }
  0x93   : > { %p8701_p10 = pnand %p8700_p5, %p8694_p11 }
  0x95   : > { %8704 = shalt.err (!%p8701_p10)
}
  0x96   : > { %8403 = dma.hbm_to_vmem [thread:$0]  (!%p9560_p12), %s10533_s3, 16, %s1345_s28, [#allocation6]  }
  0x97   : > { %s8705_s15 = scalar_lea.hbm %s10532_s14, 16 }
  0x98   : > { %p8706_p13 = scmp.ne.s32.totalorder %s10532_s14, %s8705_s15  ;;  %p8712_p3 = scmp.lt.u32.totalorder %s8705_s15, %s10532_s14 }
  0x9a   : > { %p8708_p1 = pnand %p8706_p13, %p9572_p0 }
  0x9c   : > { %p8709_p2 = pneg %p8708_p1 }
  0x9e   : > { %p8714_p4 = pnand %p8712_p3, %p8709_p2 }
  0xa0   : > { %8717 = shalt.err (!%p8714_p4)
}
  0xa1   : > { %s8718_s1 = scalar_lea.vmem %s9564_s2, 16  ;;  %s8725_s26 = scalar_lea.vmem %s9564_s2, 32 }
  0xa2   : > { %p8719_p5 = scmp.ne.s32.totalorder %s9564_s2, %s8718_s1  ;;  %p8726_p10 = scmp.lt.s32.totalorder %s9564_s2, %s9564_s2 }
  0xa3   : > { %p8727_p7 = scmp.lt.s32.totalorder %s8725_s26, %s8718_s1 }
  0xa4   : > { %p8721_p6 = pnand %p8719_p5, %p9572_p0 }
  0xa5   : > { %p8728_p8 = por %p8727_p7, %p8726_p10 }
  0xa6   : > { %p8722_p9 = pneg %p8721_p6 }
  0xa8   : > { %p8729_p11 = pnand %p8728_p8, %p8722_p9 }
  0xaa   : > { %8732 = shalt.err (!%p8729_p11)
}
  0xab   : > { %8409 = dma.hbm_to_vmem [thread:$0]  (!%p9560_p12), %s10532_s14, 16, %s9564_s2, [#allocation9]  }
  0xac   : > { %s8733_s28 = scalar_lea.hbm %s9446_s30, 16 }
  0xad   : > { %p8734_p13 = scmp.ne.s32.totalorder %s9446_s30, %s8733_s28  ;;  %p8740_p3 = scmp.lt.u32.totalorder %s8733_s28, %s9446_s30 }
  0xaf   : > { %p8736_p1 = pnand %p8734_p13, %p9572_p0 }
  0xb1   : > { %p8737_p2 = pneg %p8736_p1 }
  0xb3   : > { %p8742_p4 = pnand %p8740_p3, %p8737_p2 }
  0xb5   : > { %8745 = shalt.err (!%p8742_p4)
}
  0xb6   : > { %s8746_s15 = scalar_lea.vmem %s9566_s10, 16  ;;  %s8753_s1 = scalar_lea.vmem %s9566_s10, 32 }
  0xb7   : > { %p8747_p5 = scmp.ne.s32.totalorder %s9566_s10, %s8746_s15  ;;  %p8754_p10 = scmp.lt.s32.totalorder %s9566_s10, %s9566_s10 }
  0xb8   : > { %p8755_p7 = scmp.lt.s32.totalorder %s8753_s1, %s8746_s15 }
  0xb9   : > { %p8749_p6 = pnand %p8747_p5, %p9572_p0 }
  0xba   : > { %p8756_p8 = por %p8755_p7, %p8754_p10 }
  0xbb   : > { %p8750_p9 = pneg %p8749_p6 }
  0xbd   : > { %p8757_p11 = pnand %p8756_p8, %p8750_p9 }
  0xbf   : > { %8760 = shalt.err (!%p8757_p11)
}
  0xc0   : > { %8415 = dma.hbm_to_vmem [thread:$0]  (!%p9560_p12), %s9446_s30, 16, %s9566_s10, [#allocation12]  }
  0xc1   : > { %s9190_s2 = smov [#allocation14]   ;;  %s9191_s28 = smov [#allocation17]  }
  0xc2   : > { %s1506_s26 = sshll.u32 %s9190_s2, 4  ;;  %s1528_s3 = sshll.u32 %s9191_s28, 4  ;;  %s1507_s26 = int_to_ptr.vmem [resolvable:$true] %s1506_s26  ;;  %s1529_s3 = int_to_ptr.vmem [resolvable:$true] %s1528_s3 }
  0xc3   : > { %s8761_s14 = scalar_lea.hbm %s10531_s4, 16 }
  0xc4   : > { %p8762_p13 = scmp.ne.s32.totalorder %s10531_s4, %s8761_s14  ;;  %p8768_p3 = scmp.lt.u32.totalorder %s8761_s14, %s10531_s4 }
  0xc6   : > { %p8764_p1 = pnand %p8762_p13, %p9572_p0 }
  0xc8   : > { %p8765_p2 = pneg %p8764_p1 }
  0xca   : > { %p8770_p4 = pnand %p8768_p3, %p8765_p2 }
  0xcc   : > { %8773 = shalt.err (!%p8770_p4)
}
  0xcd   : > { %s8774_s15 = scalar_lea.vmem %s1507_s26, 16  ;;  %s8781_s10 = scalar_lea.vmem %s1507_s26, 32 }
  0xce   : > { %p8775_p5 = scmp.ne.s32.totalorder %s1507_s26, %s8774_s15  ;;  %p8782_p10 = scmp.lt.s32.totalorder %s1507_s26, %s1507_s26 }
  0xcf   : > { %p8783_p7 = scmp.lt.s32.totalorder %s8781_s10, %s8774_s15 }
  0xd0   : > { %p8777_p6 = pnand %p8775_p5, %p9572_p0 }
  0xd1   : > { %p8784_p8 = por %p8783_p7, %p8782_p10 }
  0xd2   : > { %p8778_p9 = pneg %p8777_p6 }
  0xd4   : > { %p8785_p11 = pnand %p8784_p8, %p8778_p9 }
  0xd6   : > { %8788 = shalt.err (!%p8785_p11)
}
  0xd7   : > { %8421 = dma.hbm_to_vmem [thread:$0]  (!%p9560_p12), %s10531_s4, 16, %s1507_s26, [#allocation15]  }
  0xd8   : > { %s8789_s14 = scalar_lea.hbm %s9466_s17, 16 }
  0xd9   : > { %p8790_p13 = scmp.ne.s32.totalorder %s9466_s17, %s8789_s14  ;;  %p8796_p3 = scmp.lt.u32.totalorder %s8789_s14, %s9466_s17 }
  0xdb   : > { %p8792_p1 = pnand %p8790_p13, %p9572_p0 }
  0xdd   : > { %p8793_p2 = pneg %p8792_p1 }
  0xdf   : > { %p8798_p4 = pnand %p8796_p3, %p8793_p2 }
  0xe1   : > { %8801 = shalt.err (!%p8798_p4)
}
  0xe2   : > { %s8802_s1 = scalar_lea.vmem %s1529_s3, 16  ;;  %s8809_s2 = scalar_lea.vmem %s1529_s3, 32 }
  0xe3   : > { %p8803_p5 = scmp.ne.s32.totalorder %s1529_s3, %s8802_s1  ;;  %p8810_p10 = scmp.lt.s32.totalorder %s1529_s3, %s1529_s3 }
  0xe4   : > { %p8811_p7 = scmp.lt.s32.totalorder %s8809_s2, %s8802_s1 }
  0xe5   : > { %p8805_p6 = pnand %p8803_p5, %p9572_p0 }
  0xe6   : > { %p8812_p8 = por %p8811_p7, %p8810_p10 }
  0xe7   : > { %p8806_p9 = pneg %p8805_p6 }
  0xe9   : > { %p8813_p11 = pnand %p8812_p8, %p8806_p9 }
  0xeb   : > { %8816 = shalt.err (!%p8813_p11)
}
  0xec   : > { %8427 = dma.hbm_to_vmem [thread:$0]  (!%p9560_p12), %s9466_s17, 16, %s1529_s3, [#allocation18]  }
  0xed   : > { %s9192_s26 = smov [#allocation20]   ;;  %s9193_s15 = smov [#allocation2]  }
  0xee   : > { %s1556_s28 = sshll.u32 %s9192_s26, 4  ;;  %s1327_s10 = sshll.u32 %s9193_s15, 4  ;;  %s1557_s28 = int_to_ptr.vmem [resolvable:$true] %s1556_s28  ;;  %s1328_s10 = int_to_ptr.vmem [resolvable:$true] %s1327_s10 }
  0xef   : > { %s8817_s14 = scalar_lea.hbm %s9486_s24, 16 }
  0xf0   : > { %p8818_p13 = scmp.ne.s32.totalorder %s9486_s24, %s8817_s14  ;;  %p8824_p3 = scmp.lt.u32.totalorder %s8817_s14, %s9486_s24 }
  0xf2   : > { %p8820_p1 = pnand %p8818_p13, %p9572_p0 }
  0xf4   : > { %p8821_p2 = pneg %p8820_p1 }
  0xf6   : > { %p8826_p4 = pnand %p8824_p3, %p8821_p2 }
  0xf8   : > { %8829 = shalt.err (!%p8826_p4)
}
  0xf9   : > { %s8830_s1 = scalar_lea.vmem %s1557_s28, 16  ;;  %s8837_s3 = scalar_lea.vmem %s1557_s28, 32 }
  0xfa   : > { %p8831_p5 = scmp.ne.s32.totalorder %s1557_s28, %s8830_s1  ;;  %p8838_p10 = scmp.lt.s32.totalorder %s1557_s28, %s1557_s28 }
  0xfb   : > { %p8839_p7 = scmp.lt.s32.totalorder %s8837_s3, %s8830_s1 }
  0xfc   : > { %p8833_p6 = pnand %p8831_p5, %p9572_p0 }
  0xfd   : > { %p8840_p8 = por %p8839_p7, %p8838_p10 }
  0xfe   : > { %p8834_p9 = pneg %p8833_p6 }
 0x100   : > { %p8841_p11 = pnand %p8840_p8, %p8834_p9 }
 0x102   : > { %8844 = shalt.err (!%p8841_p11)
}
 0x103   : > { %8433 = dma.hbm_to_vmem [thread:$0]  (!%p9560_p12), %s9486_s24, 16, %s1557_s28, [#allocation21]  }
 0x104   : > { %s8845_s2 = scalar_lea.hbm %s9256_s25, 384 }
 0x105   : > { %p8846_p13 = scmp.ne.s32.totalorder %s9256_s25, %s8845_s2  ;;  %p8852_p3 = scmp.lt.u32.totalorder %s8845_s2, %s9256_s25 }
 0x107   : > { %p8848_p1 = pnand %p8846_p13, %p9572_p0 }
 0x109   : > { %p8849_p2 = pneg %p8848_p1 }
 0x10b   : > { %p8854_p4 = pnand %p8852_p3, %p8849_p2 }
 0x10d   : > { %8857 = shalt.err (!%p8854_p4)
}
 0x10e   : > { %s8858_s26 = scalar_lea.vmem %s1328_s10, 384  ;;  %p8866_p10 = scmp.lt.s32.totalorder %s1328_s10, %s1328_s10 }
 0x10f   : > { %p8859_p5 = scmp.ne.s32.totalorder %s1328_s10, %s8858_s26  ;;  %p8867_p7 = scmp.lt.s32.totalorder %s8858_s26, %s8858_s26 }
 0x111   : > { %p8861_p6 = pnand %p8859_p5, %p9572_p0  ;;  %p8868_p8 = por %p8867_p7, %p8866_p10 }
 0x113   : > { %p8862_p9 = pneg %p8861_p6 }
 0x115   : > { %p8869_p11 = pnand %p8868_p8, %p8862_p9 }
 0x117   : > { %8872 = shalt.err (!%p8869_p11)
}
 0x118   : > { %s9194_s28 = smov 128   ;;  %s9195_s15 = smov 8  }
 0x119   : > { %8400 = dma.hbm_to_vmem [thread:$0]  (!%p9560_p12), %s9256_s25, 384, %s1328_s10, [#allocation3], %s9194_s28, %s9194_s28, %s9195_s15  }
 0x11a   : > { %s9196_s14 = smov [#allocation7]   ;;  %s9197_s3 = smov [#allocation10]  }
 0x11b   : > { %s1355_s1 = sshll.u32 %s9196_s14, 4  ;;  %s1473_s2 = sshll.u32 %s9197_s3, 4  ;;  %s1356_s1 = int_to_ptr.vmem [resolvable:$true] %s1355_s1  ;;  %s1474_s2 = int_to_ptr.vmem [resolvable:$true] %s1473_s2 }
 0x11c   : > { %s8873_s4 = scalar_lea.hbm %s10528_s8, 16 }
 0x11d   : > { %p8874_p13 = scmp.ne.s32.totalorder %s10528_s8, %s8873_s4  ;;  %p8880_p3 = scmp.lt.u32.totalorder %s8873_s4, %s10528_s8 }
 0x11f   : > { %p8876_p1 = pnand %p8874_p13, %p9572_p0 }
 0x121   : > { %p8877_p2 = pneg %p8876_p1 }
 0x123   : > { %p8882_p4 = pnand %p8880_p3, %p8877_p2 }
 0x125   : > { %8885 = shalt.err (!%p8882_p4)
}
 0x126   : > { %s8886_s26 = scalar_lea.vmem %s1356_s1, 16  ;;  %s8893_s10 = scalar_lea.vmem %s1356_s1, 32 }
 0x127   : > { %p8887_p5 = scmp.ne.s32.totalorder %s1356_s1, %s8886_s26  ;;  %p8894_p10 = scmp.lt.s32.totalorder %s1356_s1, %s1356_s1 }
 0x128   : > { %p8895_p7 = scmp.lt.s32.totalorder %s8893_s10, %s8886_s26 }
 0x129   : > { %p8889_p6 = pnand %p8887_p5, %p9572_p0 }
 0x12a   : > { %p8896_p8 = por %p8895_p7, %p8894_p10 }
 0x12b   : > { %p8890_p9 = pneg %p8889_p6 }
 0x12d   : > { %p8897_p11 = pnand %p8896_p8, %p8890_p9 }
 0x12f   : > { %8900 = shalt.err (!%p8897_p11)
}
 0x130   : > { %8406 = dma.hbm_to_vmem [thread:$0]  (!%p9560_p12), %s10528_s8, 16, %s1356_s1, [#allocation6]  }
 0x131   : > { %s8901_s4 = scalar_lea.hbm %s9441_s27, 16 }
 0x132   : > { %p8902_p13 = scmp.ne.s32.totalorder %s9441_s27, %s8901_s4  ;;  %p8908_p3 = scmp.lt.u32.totalorder %s8901_s4, %s9441_s27 }
 0x134   : > { %p8904_p1 = pnand %p8902_p13, %p9572_p0 }
 0x136   : > { %p8905_p2 = pneg %p8904_p1 }
 0x138   : > { %p8910_p4 = pnand %p8908_p3, %p8905_p2 }
 0x13a   : > { %8913 = shalt.err (!%p8910_p4)
}
 0x13b   : > { %s8914_s28 = scalar_lea.vmem %s1474_s2, 16  ;;  %s8921_s15 = scalar_lea.vmem %s1474_s2, 32 }
 0x13c   : > { %p8915_p5 = scmp.ne.s32.totalorder %s1474_s2, %s8914_s28  ;;  %p8922_p10 = scmp.lt.s32.totalorder %s1474_s2, %s1474_s2 }
 0x13d   : > { %p8923_p7 = scmp.lt.s32.totalorder %s8921_s15, %s8914_s28 }
 0x13e   : > { %p8917_p6 = pnand %p8915_p5, %p9572_p0 }
 0x13f   : > { %p8924_p8 = por %p8923_p7, %p8922_p10 }
 0x140   : > { %p8918_p9 = pneg %p8917_p6 }
 0x142   : > { %p8925_p11 = pnand %p8924_p8, %p8918_p9 }
 0x144   : > { %8928 = shalt.err (!%p8925_p11)
}
 0x145   : > { %8412 = dma.hbm_to_vmem [thread:$0]  (!%p9560_p12), %s9441_s27, 16, %s1474_s2, [#allocation9]  }
 0x146   : > { %s9198_s14 = smov [#allocation13]   ;;  %s9199_s3 = smov [#allocation16]  }
 0x147   : > { %s1495_s1 = sshll.u32 %s9198_s14, 4  ;;  %s1517_s26 = sshll.u32 %s9199_s3, 4  ;;  %s1496_s1 = int_to_ptr.vmem [resolvable:$true] %s1495_s1  ;;  %s1518_s26 = int_to_ptr.vmem [resolvable:$true] %s1517_s26 }
 0x148   : > { %s8929_s10 = scalar_lea.hbm %s10529_s6, 16 }
 0x149   : > { %p8930_p13 = scmp.ne.s32.totalorder %s10529_s6, %s8929_s10  ;;  %p8936_p3 = scmp.lt.u32.totalorder %s8929_s10, %s10529_s6 }
 0x14b   : > { %p8932_p1 = pnand %p8930_p13, %p9572_p0 }
 0x14d   : > { %p8933_p2 = pneg %p8932_p1 }
 0x14f   : > { %p8938_p4 = pnand %p8936_p3, %p8933_p2 }
 0x151   : > { %8941 = shalt.err (!%p8938_p4)
}
 0x152   : > { %s8942_s4 = scalar_lea.vmem %s1496_s1, 16  ;;  %s8949_s2 = scalar_lea.vmem %s1496_s1, 32 }
 0x153   : > { %p8943_p5 = scmp.ne.s32.totalorder %s1496_s1, %s8942_s4  ;;  %p8950_p10 = scmp.lt.s32.totalorder %s1496_s1, %s1496_s1 }
 0x154   : > { %p8951_p7 = scmp.lt.s32.totalorder %s8949_s2, %s8942_s4 }
 0x155   : > { %p8945_p6 = pnand %p8943_p5, %p9572_p0 }
 0x156   : > { %p8952_p8 = por %p8951_p7, %p8950_p10 }
 0x157   : > { %p8946_p9 = pneg %p8945_p6 }
 0x159   : > { %p8953_p11 = pnand %p8952_p8, %p8946_p9 }
 0x15b   : > { %8956 = shalt.err (!%p8953_p11)
}
 0x15c   : > { %8418 = dma.hbm_to_vmem [thread:$0]  (!%p9560_p12), %s10529_s6, 16, %s1496_s1, [#allocation12]  }
 0x15d   : > { %s8957_s28 = scalar_lea.hbm %s9461_s20, 16 }
 0x15e   : > { %p8958_p13 = scmp.ne.s32.totalorder %s9461_s20, %s8957_s28  ;;  %p8964_p3 = scmp.lt.u32.totalorder %s8957_s28, %s9461_s20 }
 0x160   : > { %p8960_p1 = pnand %p8958_p13, %p9572_p0 }
 0x162   : > { %p8961_p2 = pneg %p8960_p1 }
 0x164   : > { %p8966_p4 = pnand %p8964_p3, %p8961_p2 }
 0x166   : > { %8969 = shalt.err (!%p8966_p4)
}
 0x167   : > { %s8970_s15 = scalar_lea.vmem %s1518_s26, 16  ;;  %s8977_s14 = scalar_lea.vmem %s1518_s26, 32 }
 0x168   : > { %p8971_p5 = scmp.ne.s32.totalorder %s1518_s26, %s8970_s15  ;;  %p8978_p10 = scmp.lt.s32.totalorder %s1518_s26, %s1518_s26 }
 0x169   : > { %p8979_p7 = scmp.lt.s32.totalorder %s8977_s14, %s8970_s15 }
 0x16a   : > { %p8973_p6 = pnand %p8971_p5, %p9572_p0 }
 0x16b   : > { %p8980_p8 = por %p8979_p7, %p8978_p10 }
 0x16c   : > { %p8974_p9 = pneg %p8973_p6 }
 0x16e   : > { %p8981_p11 = pnand %p8980_p8, %p8974_p9 }
 0x170   : > { %8984 = shalt.err (!%p8981_p11)
}
 0x171   : > { %8424 = dma.hbm_to_vmem [thread:$0]  (!%p9560_p12), %s9461_s20, 16, %s1518_s26, [#allocation15]  }
 0x172   : > { %s9200_s1 = smov [#allocation19]   ;;  %s9201_s10 = smov [#allocation22]  }
 0x173   : > { %s1539_s3 = sshll.u32 %s9200_s1, 4  ;;  %s1567_s4 = sshll.u32 %s9201_s10, 4  ;;  %s1540_s3 = int_to_ptr.vmem [resolvable:$true] %s1539_s3  ;;  %s1568_s4 = int_to_ptr.vmem [resolvable:$true] %s1567_s4 }
 0x174   : > { %s8985_s2 = scalar_lea.hbm %s10530_s5, 16 }
 0x175   : > { %p8986_p13 = scmp.ne.s32.totalorder %s10530_s5, %s8985_s2  ;;  %p8992_p3 = scmp.lt.u32.totalorder %s8985_s2, %s10530_s5 }
 0x177   : > { %p8988_p1 = pnand %p8986_p13, %p9572_p0 }
 0x179   : > { %p8989_p2 = pneg %p8988_p1 }
 0x17b   : > { %p8994_p4 = pnand %p8992_p3, %p8989_p2 }
 0x17d   : > { %8997 = shalt.err (!%p8994_p4)
}
 0x17e   : > { %s8998_s28 = scalar_lea.vmem %s1540_s3, 16  ;;  %s9005_s26 = scalar_lea.vmem %s1540_s3, 32 }
 0x17f   : > { %p8999_p5 = scmp.ne.s32.totalorder %s1540_s3, %s8998_s28  ;;  %p9006_p10 = scmp.lt.s32.totalorder %s1540_s3, %s1540_s3 }
 0x180   : > { %p9007_p7 = scmp.lt.s32.totalorder %s9005_s26, %s8998_s28 }
 0x181   : > { %p9001_p6 = pnand %p8999_p5, %p9572_p0 }
 0x182   : > { %p9008_p8 = por %p9007_p7, %p9006_p10 }
 0x183   : > { %p9002_p9 = pneg %p9001_p6 }
 0x185   : > { %p9009_p11 = pnand %p9008_p8, %p9002_p9 }
 0x187   : > { %9012 = shalt.err (!%p9009_p11)
}
 0x188   : > { %8430 = dma.hbm_to_vmem [thread:$0]  (!%p9560_p12), %s10530_s5, 16, %s1540_s3, [#allocation18]  }
 0x189   : > { %s9013_s15 = scalar_lea.hbm %s9491_s29, 16 }
 0x18a   : > { %p9014_p13 = scmp.ne.s32.totalorder %s9491_s29, %s9013_s15  ;;  %p9020_p3 = scmp.lt.u32.totalorder %s9013_s15, %s9491_s29 }
 0x18c   : > { %p9016_p1 = pnand %p9014_p13, %p9572_p0 }
 0x18e   : > { %p9017_p2 = pneg %p9016_p1 }
 0x190   : > { %p9022_p4 = pnand %p9020_p3, %p9017_p2 }
 0x192   : > { %9025 = shalt.err (!%p9022_p4)
}
 0x193   : > { %s9026_s14 = scalar_lea.vmem %s1568_s4, 16  ;;  %s9033_s1 = scalar_lea.vmem %s1568_s4, 32 }
 0x194   : > { %p9027_p5 = scmp.ne.s32.totalorder %s1568_s4, %s9026_s14  ;;  %p9034_p10 = scmp.lt.s32.totalorder %s1568_s4, %s1568_s4 }
 0x195   : > { %p9035_p7 = scmp.lt.s32.totalorder %s9033_s1, %s9026_s14 }
 0x196   : > { %p9029_p6 = pnand %p9027_p5, %p9572_p0 }
 0x197   : > { %p9036_p8 = por %p9035_p7, %p9034_p10 }
 0x198   : > { %p9030_p9 = pneg %p9029_p6 }
 0x19a   : > { %p9037_p11 = pnand %p9036_p8, %p9030_p9 }
 0x19c   : > { %9040 = shalt.err (!%p9037_p11)
}
 0x19d   : > { %8436 = dma.hbm_to_vmem [thread:$0]  (!%p9560_p12), %s9491_s29, 16, %s1568_s4, [#allocation21]  }
 0x19e   : > { %p10544_p13 = scmp.ne.s32.totalorder %s10541_s11, 0 }
 0x19f   : > { %p10545_p1 = scmp.eq.s32.totalorder (!%p10544_p13), %s9524_s0, 0 }
 0x1a0   : > { %1603 = sbr.rel (%p10544_p13) target bundleno = 16011 (0x3e8b), region = 236 }
 0x1a7   : > { %9086 = dma.done.wait (%p10545_p1), [#allocation3], 384   ;;  %p10546_p2 = pmov %p10545_p1 }
 0x1a8   : > { %p10547_p0 = pmov %p10545_p1 }
 0x1a9   : > { %9088 = vsyncadd (%p10546_p2), [#allocation3], 4294966912 }
 0x1aa   : > { %9090 = dma.done.wait (%p10547_p0), [#allocation6], 32   ;;  %p10548_p3 = pmov %p10547_p0 }
 0x1ab   : > { %p10549_p4 = pmov %p10547_p0 }
 0x1ac   : > { %9092 = vsyncadd (%p10548_p3), [#allocation6], 4294967264 }
 0x1ad   : > { %9094 = dma.done.wait (%p10549_p4), [#allocation9], 32   ;;  %p10550_p12 = pmov %p10547_p0 }
 0x1ae   : > { %p10551_p5 = pmov %p10547_p0 }
 0x1af   : > { %9096 = vsyncadd (%p10550_p12), [#allocation9], 4294967264 }
 0x1b0   : > { %9098 = dma.done.wait (%p10551_p5), [#allocation12], 32   ;;  %p10552_p6 = pmov %p10547_p0 }
 0x1b1   : > { %p10553_p9 = pmov %p10547_p0 }
 0x1b2   : > { %9100 = vsyncadd (%p10552_p6), [#allocation12], 4294967264 }
 0x1b3   : > { %9102 = dma.done.wait (%p10553_p9), [#allocation15], 32   ;;  %p10554_p10 = pmov %p10547_p0 }
 0x1b4   : > { %p10555_p7 = pmov %p10547_p0 }
 0x1b5   : > { %9104 = vsyncadd (%p10554_p10), [#allocation15], 4294967264 }
 0x1b6   : > { %9106 = dma.done.wait (%p10555_p7), [#allocation18], 32   ;;  %p10556_p8 = pmov %p10547_p0 }
 0x1b7   : > { %p10557_p11 = pmov %p10547_p0 }
 0x1b8   : > { %9108 = vsyncadd (%p10556_p8), [#allocation18], 4294967264 }
 0x1b9   : > { %9110 = dma.done.wait (%p10557_p11), [#allocation21], 32   ;;  %p10558_p13 = pmov %p10547_p0 }
 0x1ba   : > { %v9202_v0 = vmov 0.0|0.0   ;;  %vm9203_vm0 = vmmov 0   ;;  %v9204_v1 = vmov 0.0   ;;  %p1783_p1 = scmp.lt.s32.totalorder %s9524_s0, 1  ;;  %v1804_v2 = vld [vmem:[#allocation2] sm:$0xff]  ;;  %v1805_v3 = vld [vmem:[#allocation2 + $0x8] sm:$0xff] }
 0x1bb   : > { %9112 = vsyncadd (%p10558_p13), [#allocation21], 4294967264  ;;  %8210 = vmatprep.subr.bf16.mxu1 %v9202_v0  ;;  %7756 = vmatprep.mubr.msk.f32.mxu1 %vm9203_vm0, %v9204_v1  ;;  %v8211_v4 = vpack.c.bf16 %v1805_v3, %v1804_v2  ;;  %v1894_v5 = vld [vmem:[%s9281_s19] sm:$0xff]  ;;  %v1895_v6 = vld [vmem:[%s9281_s19 + $0x8] sm:$0xff]  ;;  %vm1812_vm1 = vcmask 1043456   ;;  %s10559_s3 = sld [smem:[#allocation35_spill]] }
 0x1bc   : > { %8219 = vmatprep.subr.bf16.mxu0 %v9202_v0  ;;  %7802 = vmatprep.mubr.msk.f32.mxu0 %vm9203_vm0, %v9204_v1  ;;  %s9754_s18 = scalar_select %p1783_p1, %s9524_s0, 1  ;;  %v1806_v7 = vld [vmem:[#allocation2 + $0x10] sm:$0xf]  ;;  %vm1808_vm2 = vcmask 162816   ;;  %v8214_v9 = vpack.c.bf16 %v1895_v6, %v1894_v5  ;;  %v1897_v11 = vld [vmem:[%s9281_s19 + $0x18] sm:$0xff]  ;;  %vm1892_vm3 = vcmask 1040384  }
 0x1bd   : > { %8212 = vmatpush3.bf16.msra.mxu1 %v8211_v4  ;;  %v1896_v10 = vld [vmem:[%s9281_s19 + $0x10] sm:$0xff]  ;;  %s10560_s10 = sld [smem:[#allocation39_spill]]  ;;  %v1887_v15 = vld [vmem:[#allocation5] sm:$0x1]  ;;  %vm1905_vm4 = vcmask 261120   ;;  %s10561_s2 = sld [smem:[#allocation34_spill]] }
 0x1be   : > { %s7430_s11 = sshll.u32 %s9754_s18, 2  ;;  %7754 = vmatprep.subr.mxu1 %v9204_v1  ;;  %v8217_v12 = vpack.c.bf16 %v1897_v11, %v1896_v10  ;;  %s1793_s4 = scalar_lea.vmem %s9241_s13, %s9754_s18  ;;  %v7434_v49 = vld [vmem:[#allocation7] ss:$0 sm:$0xff]  ;;  %vm2175_vm5 = vcmask 1041408   ;;  %vm9205_vm6 = vmmov 1   ;;  %vm2171_vm8 = vcmask 80896  }
 0x1bf   : > { %s1790_s23 = scalar_lea.vmem %s9236_s9, %s7430_s11  ;;  %v1886_v14 = vld [vmem:[%s1793_s4] sm:$0x1]  ;;  %s10562_s28 = sld [smem:[#allocation42_spill]]  ;;  %vm8251_vm7 = vmpackc.low %vm2175_vm5, %vm9205_vm6  ;;  %vm2371_vm9 = vcmask 64512   ;;  %vm3524_vm12 = vcmask 39936   ;;  %vm3541_vm13 = vcmask 1044480  }
 0x1c0   : > { %v1803_v8 = vld [vmem:[%s1790_s23] sm:$0xf]  ;;  %v1888_v18 = vadd.f32 %v1887_v15, %v1886_v14  ;;  %s10563_s26 = sld [smem:[#allocation32_spill]]  ;;  %s7429_s15 = sshll.u32 %s9754_s18, 3 }
 0x1c1   : > { %7755 = vmatpush3.msk.msra.mxu1 %vm1812_vm1, %v1806_v7  ;;  %v1807_v13 = vld [vmem:[%s10559_s3] sm:$0xf]  ;;  %v7436_v7 = vld [vmem:[#allocation8] ss:$0 sm:$0xff]  ;;  %s10564_s1 = sld [smem:[#allocation60_spill]]  ;;  %s10566_s11 = sld [smem:[#allocation51_spill]] }
 0x1c2   : > { %7757 = vmatmul.mubr.msk.f32.vlgmr.msra.gmra.mrb[0].mxu1 %vm1808_vm2, %v1803_v8  ;;  %8213 = vmatprep.subr.bf16.mxu1 %v9202_v0  ;;  %v2170_v15 = vld [vmem:[%s9496_s12] sm:$0xff]  ;;  %s10565_s18 = sld [smem:[#allocation52_spill]]  ;;  %s10567_s23 = sld [smem:[#allocation58_spill]] }
 0x1c3   : > { %8215 = vmatpush3.bf16.msra.mxu1 %v8214_v9  ;;  %7767 = vmatprep.mubr.msk.f32.mxu1 %vm9203_vm0, %v9204_v1  ;;  %v1990_v22 = vld [vmem:[%s10560_s10] sm:$0xff]  ;;  %v1991_v23 = vld [vmem:[%s10560_s10 + $0x8] sm:$0xff]  ;;  %v1992_v25 = vld [vmem:[%s10560_s10 + $0x10] sm:$0xff]  ;;  %s10454_s3 = smov 64   ;;  %s10471_s4 = smov 96  }
 0x1c4   : > { %8216 = vmatprep.subr.bf16.mxu1 %v9202_v0  ;;  %v8220_v24 = vpack.c.bf16 %v1991_v23, %v1990_v22  ;;  %v1993_v26 = vld [vmem:[%s10560_s10 + $0x18] sm:$0xff]  ;;  %v1994_v28 = vld [vmem:[%s10560_s10 + $0x20] sm:$0xff]  ;;  %v1995_v29 = vld [vmem:[%s10560_s10 + $0x28] sm:$0xff]  ;;  %s10599_s5 = sld [smem:[#allocation62_spill]]  ;;  %p10609_p0 = scmp.ne.s32.totalorder %s10538_s7, 0 }
 0x1c5   : > { %v8223_v27 = vpack.c.bf16 %v1993_v26, %v1992_v25  ;;  %v8226_v30 = vpack.c.bf16 %v1995_v29, %v1994_v28  ;;  %v1996_v31 = vld [vmem:[%s10560_s10 + $0x30] sm:$0xff]  ;;  %v1997_v32 = vld [vmem:[%s10560_s10 + $0x38] sm:$0xff]  ;;  %v1998_v34 = vld [vmem:[%s10560_s10 + $0x40] sm:$0xff] }
 0x1c6   : > { %8221 = vmatpush3.bf16.msra.mxu0 %v8220_v24  ;;  %v8229_v33 = vpack.c.bf16 %v1997_v32, %v1996_v31  ;;  %v1999_v35 = vld [vmem:[%s10560_s10 + $0x48] sm:$0xff]  ;;  %v2000_v37 = vld [vmem:[%s10560_s10 + $0x50] sm:$0xff]  ;;  %v2001_v38 = vld [vmem:[%s10560_s10 + $0x58] sm:$0xff]  ;;  %s1786_s14 = scalar_lea.vmem %s10563_s26, %s7429_s15  ;;  %s10470_s26 = smov 88  }
 0x1c7   : > { %8218 = vmatpush3.bf16.msra.mxu1 %v8217_v12  ;;  %8222 = vmatprep.subr.bf16.mxu0 %v9202_v0  ;;  %v8232_v36 = vpack.c.bf16 %v1999_v35, %v1998_v34  ;;  %v8235_v39 = vpack.c.bf16 %v2001_v38, %v2000_v37  ;;  %v2002_v40 = vld [vmem:[%s10560_s10 + $0x60] sm:$0xff]  ;;  %v2003_v41 = vld [vmem:[%s10560_s10 + $0x68] sm:$0xff]  ;;  %v2004_v43 = vld [vmem:[%s10560_s10 + $0x70] sm:$0xff]  ;;  %s10568_s15 = sld [smem:[#allocation59_spill]] }
 0x1c8   : > { %8243 = vmatprep.subr.bf16.mxu1 %v9202_v0  ;;  %v8238_v42 = vpack.c.bf16 %v2003_v41, %v2002_v40  ;;  %v2005_v44 = vld [vmem:[%s10560_s10 + $0x78] sm:$0xff]  ;;  %v2083_v46 = vld [vmem:[%s10561_s2] sm:$0xff]  ;;  %v2084_v47 = vld [vmem:[%s10561_s2 + $0x8] sm:$0xff] }
 0x1c9   : > { %v8241_v45 = vpack.c.bf16 %v2005_v44, %v2004_v43  ;;  %v8244_v48 = vpack.c.bf16 %v2084_v47, %v2083_v46  ;;  %v2085_v2 = vld [vmem:[%s10561_s2 + $0x10] sm:$0xff]  ;;  %v2086_v3 = vld [vmem:[%s10561_s2 + $0x18] sm:$0xff]  ;;  %v2168_v5 = vld [vmem:[%s10562_s28] sm:$0xff]  ;;  %v1794_v46 = vlaneseq  ;;  %s10583_s2 = sld [smem:[#allocation50_spill]] }
 0x1ca   : > { %8224 = vmatpush3.bf16.msra.mxu0 %v8223_v27  ;;  %v8247_v4 = vpack.c.bf16 %v2086_v3, %v2085_v2  ;;  %v2169_v6 = vld [vmem:[%s10562_s28 + $0x8] sm:$0x3]  ;;  %v2167_v12 = vld [vmem:[%s1786_s14] sm:$0xff]  ;;  %v2281_v28 = vld [vmem:[%s10564_s1 + $0x10] sm:$0xff] }
 0x1cb   : > { %8225 = vmatprep.subr.bf16.mxu0 %v9202_v0  ;;  %v8250_v9 = vpack.c.bf16 %v2169_v6, %v2168_v5  ;;  %v2279_v25 = vld [vmem:[%s10564_s1] sm:$0xff]  ;;  %v2280_v26 = vld [vmem:[%s10564_s1 + $0x8] sm:$0xff]  ;;  %v2282_v29 = vld [vmem:[%s10564_s1 + $0x18] sm:$0xff]  ;;  %v9852_v47 = vshrl.u32 %v1794_v46, 7  ;;  %s10582_s1 = sld [smem:[#allocation49_spill]] }
 0x1cc   : > { %v8254_v27 = vpack.c.bf16 %v2280_v26, %v2279_v25  ;;  %v7441_v35 = vld [vmem:[%s10565_s18] ss:$0 sm:$0xff]  ;;  %s10468_s18 = smov 120  }
 0x1cd   : > { %v7442_v37 = vld [vmem:[%s10566_s11] ss:$0 sm:$0xff]  ;;  %s10569_s14 = smov %s10568_s15  ;;  %s10452_s11 = smov 56  }
 0x1ce   : > { %8227 = vmatpush3.bf16.msra.mxu0 %v8226_v30  ;;  %v8257_v30 = vpack.c.bf16 %v2282_v29, %v2281_v28  ;;  %v7443_v40 = vld [vmem:[%s10567_s23] ss:$0 sm:$0xff]  ;;  %s10460_s23 = smov 80  }
 0x1cf   : > { %8228 = vmatprep.subr.bf16.mxu0 %v9202_v0  ;;  %v2363_v3 = vld [vmem:[%s10568_s15] sm:$0xff]  ;;  %s10466_s15 = smov 112  }
 0x1d2   : > { %8230 = vmatpush3.bf16.msra.mxu0 %v8229_v33 }
 0x1d3   : > { %8231 = vmatprep.subr.bf16.mxu0 %v9202_v0 }
 0x1d6   : > { %8233 = vmatpush3.bf16.msra.mxu0 %v8232_v36 }
 0x1d7   : > { %8234 = vmatprep.subr.bf16.mxu0 %v9202_v0 }
 0x1da   : > { %8236 = vmatpush3.bf16.msra.mxu0 %v8235_v39 }
 0x1db   : > { %8237 = vmatprep.subr.bf16.mxu0 %v9202_v0 }
 0x1de   : > { %8239 = vmatpush3.bf16.msra.mxu0 %v8238_v42 }
 0x1df   : > { %8240 = vmatprep.subr.bf16.mxu0 %v9202_v0 }
 0x1e2   : > { %8242 = vmatpush3.bf16.msra.mxu0 %v8241_v45 }
 0x1e3   : > { %7859 = vmatprep.subr.mxu0 %v9204_v1 }
 0x295   : > { %v1882_v16 = vpop.f32.mrb[0].mxu1 }
 0x296   : > { %v1883_v17 = vadd.f32 %v1882_v16, %v1807_v13  ;;  %v7758_v19 = vpop.f32.mrb[1].mxu1 }
 0x298   : > { %v1890_v20 = vrot.slane %v1883_v17, 7 }
 0x29a   : > { %v1893_v21 = vsel %vm1892_vm3, %v1888_v18, %v1890_v20 }
 0x29b   : > { %7768 = vmatmul.mubr.msk.f32.vlgmr.msra.gmra.mrb[2].mxu1 %vm1905_vm4, %v1893_v21 }
 0x29c   : > { %7813 = vmatprep.mubr.msk.f32.mxu1 %vm9203_vm0, %v9204_v1  ;;  %8245 = vmatpush3.bf16.msra.mxu1 %v8244_v48  ;;  %v9854_v48 = vand.u32 127, %v1794_v46 }
 0x29d   : > { %8246 = vmatprep.subr.bf16.mxu1 %v9202_v0 }
 0x29e   : > { %vm1798_vm10 = vcmp.ge.s32.totalorder %v9852_v47, %v9854_v48 }
 0x2a0   : > { %8248 = vmatpush3.bf16.msra.mxu1 %v8247_v4 }
 0x2a1   : > { %8249 = vmatprep.subr.bf16.mxu1 %v9202_v0 }
 0x36e   : > { %v1975_v50 = vpop.f32.mrb[2].mxu1 }
 0x36f   : > { %v1976_v51 = vadd.f32 %v7434_v49, %v1975_v50  ;;  %v7769_v52 = vpop.f32.mrb[3].mxu1  ;;  %v9209_v49 = vmov -1e+30  }
 0x370   : > { %v9859_v50 = vsel %vm1798_vm10, 0.0, %v9209_v49 }
 0x371   : > { %v1980_v53 = vand.u32 2147483647, %v1976_v51  ;;  %v1979_v59 = vmax.f32 %v1976_v51, 0.0 }
 0x373   : > { %v1981_v54 = vsub.f32 0.0, %v1980_v53 }
 0x375   : > { %v1982_v55 = vmul.f32 1.442695, %v1981_v54 }
 0x377   : > { %8589 = vpow2.f32 %v1982_v55 }
 0x381   : > { %v8590_v56 = vpop.eup %8589 }
 0x382   : > { %v1984_v57 = vadd.f32 1.0, %v8590_v56 }
 0x384   : > { %8591 = vlog2.f32 %v1984_v57 }
 0x38e   : > { %v8592_v58 = vpop.eup %8591 }
 0x38f   : > { %v1986_v60 = vmul.f32 0.6931472, %v8592_v58 }
 0x391   : > { %v1987_v61 = vadd.f32 %v1986_v60, %v1979_v59 }
 0x393   : > { %8593 = vtanh.f32 %v1987_v61 }
 0x39d   : > { %v8594_v62 = vpop.eup %8593 }
 0x39e   : > { %v1989_v63 = vmul.f32 %v8594_v62, %v1976_v51 }
 0x3a0   : > { %7803 = vmatmul.mubr.f32.vlgmr.msra.gmra.mrb[0].mxu0 %v1989_v63 }
 0x3a1   : > { %7861 = vmatprep.mubr.msk.f32.mxu0 %vm9203_vm0, %v9204_v1  ;;  %7860 = vmatpush3.msra.mxu0 %v2363_v3 }
 0x3a2   : > { %7869 = vmatprep.subr.mxu0 %v9204_v1 }
 0x473   : > { %v2079_v8 = vpop.f32.mrb[0].mxu0 }
 0x474   : > { %v2080_v10 = vadd.f32 %v7436_v7, %v2079_v8  ;;  %v7804_v11 = vpop.f32.mrb[1].mxu0 }
 0x476   : > { %7814 = vmatmul.mubr.msk.f32.vlgmr.msra.gmra.mrb[4].mxu1 %vm1905_vm4, %v2080_v10 }
 0x477   : > { %8252 = vmatpush3.bf16.msk.msra.mxu1 %vm8251_vm7, %v8250_v9  ;;  %7820 = vmatprep.mubr.msk.f32.mxu1 %vm9203_vm0, %v9204_v1 }
 0x478   : > { %8253 = vmatprep.subr.bf16.mxu1 %v9202_v0 }
 0x47a   : > { %7821 = vmatmul.mubr.msk.f32.vlgmr.msra.gmra.mrb[6].mxu1 %vm2171_vm8, %v2167_v12 }
 0x47b   : > { %7831 = vmatprep.mubr.msk.f32.mxu1 %vm9203_vm0, %v9204_v1  ;;  %8255 = vmatpush3.bf16.msra.mxu1 %v8254_v27 }
 0x47c   : > { %8256 = vmatprep.subr.bf16.mxu1 %v9202_v0 }
 0x47f   : > { %8258 = vmatpush3.bf16.msra.mxu1 %v8257_v30 }
 0x480   : > { %7834 = vmatprep.subr.mxu1 %v9204_v1 }
 0x549   : > { %v9816_v13 = vpop.f32.mrb[4].mxu1 }
 0x54a   : > { %v7815_v14 = vpop.f32.mrb[5].mxu1 }
 0x54d   : > { %v2245_v16 = vpop.f32.mrb[6].mxu1 }
 0x54e   : > { %v9819_v17 = vadd.f32 %v2245_v16, %v2170_v15  ;;  %v7822_v18 = vpop.f32.mrb[7].mxu1 }
 0x550   : > { %v2251_v19 = vsel %vm1905_vm4, %v9819_v17, 0.0 }
 0x551   : > { %2252 = vadd.xlane.f32.xlu0 %v2251_v19 }
 0x5de   : > { %v2253_v20 = vpop.xlane.xlu0 %2252 }
 0x5df   : > { %v2255_v21 = vmul.f32 0.03125, %v2253_v20 }
 0x5e1   : > { %v2256_v22 = vsub.f32 %v9819_v17, %v2255_v21 }
 0x5e3   : > { %v2257_v23 = vmul.f32 %v2256_v22, %v2256_v22 }
 0x5e5   : > { %v2258_v24 = vsel %vm1905_vm4, %v2257_v23, 0.0 }
 0x5e6   : > { %2259 = vadd.xlane.f32.xlu0 %v2258_v24  ;;  %v2364_v24 = vld [vmem:[%s10569_s14 + $0x8] sm:$0xff] }
 0x673   : > { %v2260_v31 = vpop.xlane.xlu0 %2259 }
 0x674   : > { %v2261_v32 = vmul.f32 0.03125, %v2260_v31 }
 0x676   : > { %v2262_v33 = vadd.f32 1e-05, %v2261_v32 }
 0x678   : > { %8595 = vrsqrt.f32 %v2262_v33 }
 0x682   : > { %v8596_v34 = vpop.eup %8595 }
 0x683   : > { %v2264_v36 = vmul.f32 %v8596_v34, %v2256_v22 }
 0x685   : > { %v2271_v38 = vmul.f32 %v7441_v35, %v2264_v36 }
 0x687   : > { %v2278_v39 = vadd.f32 %v7442_v37, %v2271_v38 }
 0x689   : > { %7832 = vmatmul.mubr.msk.f32.vlgmr.msra.gmra.mrb[8].mxu1 %vm1905_vm4, %v2278_v39 }
 0x68a   : > { %7836 = vmatprep.mubr.msk.f32.mxu1 %vm9203_vm0, %v9204_v1 }
 0x75c   : > { %v2359_v41 = vpop.f32.mrb[8].mxu1 }
 0x75d   : > { %v9837_v42 = vadd.f32 %v7443_v40, %v2359_v41  ;;  %v7833_v43 = vpop.f32.mrb[9].mxu1 }
 0x75f   : > { %2457 = vrot.lane.b32.xlu0 %v9837_v42, %s10454_s3  ;;  %2369 = vrot.lane.b32.xlu1 %v9837_v42, %s10471_s4  ;;  %s10458_s3 = smov 72  }
 0x763   : > { %2535 = vrot.lane.b32.xlu0 %v9837_v42, %s10470_s26 }
 0x7d1   : > { %v2370_v44 = vpop.permute.xlu1 %2369  ;;  %v2458_v45 = vpop.permute.xlu0 %2457 }
 0x7d2   : > { %7835 = vmatpush3.xpose.msk.msra.mxu1 %vm2371_vm9, %v2370_v44 }
 0x7d3   : > { %7839 = vmatprep.subr.mxu1 %v9204_v1 }
 0x7d5   : > { %7837 = vmatmul.mubr.msk.f32.vlgmr.msra.gmra.mrb[10].mxu1 %vm2371_vm9, %v9837_v42  ;;  %v2536_v60 = vpop.permute.xlu0 %2535 }
 0x7d6   : > { %7840 = vmatpush3.msra.mxu1 %v2458_v45  ;;  %7841 = vmatprep.mubr.msk.f32.mxu1 %vm9203_vm0, %v9204_v1 }
 0x7d7   : > { %7844 = vmatprep.subr.mxu1 %v9204_v1 }
 0x8a8   : > { %v2442_v51 = vpop.f32.mrb[10].mxu1 }
 0x8a9   : > { %v2443_v52 = vadd.f32 %v2442_v51, %v9859_v50  ;;  %v7838_v53 = vpop.f32.mrb[11].mxu1  ;;  %v2365_v51 = vld [vmem:[%s10569_s14 + $0x10] sm:$0xff] }
 0x8ab   : > { %v2446_v54 = vsel %vm2371_vm9, %v2443_v52, -inf }
 0x8ac   : > { %2447 = vmax.xlane.f32.xlu1 %v2446_v54 }
 0x939   : > { %v2448_v55 = vpop.xlane.xlu1 %2447 }
 0x93a   : > { %v2449_v56 = vsub.f32 %v2443_v52, %v2448_v55 }
 0x93c   : > { %v2450_v57 = vmul.f32 1.442695, %v2449_v56 }
 0x93e   : > { %8597 = vpow2.f32 %v2450_v57 }
 0x948   : > { %v8598_v58 = vpop.eup %8597 }
 0x949   : > { %v2452_v59 = vsel %vm2371_vm9, %v8598_v58, 0.0 }
 0x94a   : > { %2453 = vadd.xlane.f32.xlu0 %v2452_v59 }
 0x960   : > { %2533 = vrot.lane.b32.xlu0 %v9837_v42, %s10468_s18 }
 0x9d7   : > { %v2454_v61 = vpop.xlane.xlu0 %2453 }
 0x9d8   : > { %8599 = vrcp.f32 %v2454_v61 }
 0x9db   : > { %v2534_v2 = vpop.permute.xlu0 %2533 }
 0x9e2   : > { %v8600_v62 = vpop.eup %8599 }
 0x9e3   : > { %v2456_v63 = vmul.f32 %v8600_v62, %v8598_v58 }
 0x9e5   : > { %7842 = vmatmul.mubr.msk.f32.vlgmr.msra.gmra.mrb[12].mxu1 %vm2371_vm9, %v2456_v63 }
 0x9e6   : > { %7845 = vmatpush3.xpose.msk.msra.mxu1 %vm2371_vm9, %v2536_v60  ;;  %7846 = vmatprep.mubr.msk.f32.mxu1 %vm9203_vm0, %v9204_v1 }
 0x9e7   : > { %7849 = vmatprep.subr.mxu1 %v9204_v1 }
 0x9e9   : > { %7847 = vmatmul.mubr.msk.f32.vlgmr.msra.gmra.mrb[14].mxu1 %vm2371_vm9, %v2534_v2  ;;  %v2366_v2 = vld [vmem:[%s10569_s14 + $0x18] sm:$0xff] }
 0x9ea   : > { %7851 = vmatprep.mubr.msk.f32.mxu1 %vm9203_vm0, %v9204_v1 }
 0xab8   : > { %v2529_v4 = vpop.f32.mrb[12].mxu1 }
 0xab9   : > { %v7843_v5 = vpop.f32.mrb[13].mxu1  ;;  %7862 = vmatmul.mubr.msk.f32.vlgmr.msra.gmra.mrb[2].mxu0 %vm2371_vm9, %v2529_v4 }
 0xaba   : > { %7871 = vmatprep.mubr.msk.f32.mxu0 %vm9203_vm0, %v9204_v1 }
 0xabc   : > { %v2607_v6 = vpop.f32.mrb[14].mxu1 }
 0xabd   : > { %v2608_v7 = vadd.f32 %v2607_v6, %v9859_v50  ;;  %v7848_v8 = vpop.f32.mrb[15].mxu1 }
 0xabf   : > { %v2611_v9 = vsel %vm2371_vm9, %v2608_v7, -inf }
 0xac0   : > { %2612 = vmax.xlane.f32.xlu1 %v2611_v9 }
 0xad1   : > { %2622 = vrot.lane.b32.xlu1 %v9837_v42, %s10452_s11  ;;  %s10456_s11 = smov 48  }
 0xad5   : > { %2846 = vrot.lane.b32.xlu1 %v9837_v42, %s10460_s23  ;;  %s10570_s23 = sld [smem:[#allocation33_spill]] }
 0xad9   : > { %2844 = vrot.lane.b32.xlu1 %v9837_v42, %s10466_s15  ;;  %s10575_s15 = sld [smem:[#allocation44_spill]] }
 0xadb   : > { %v7437_v8 = vld [vmem:[%s10570_s23] ss:$0 sm:$0xff]  ;;  %s10574_s23 = sld [smem:[#allocation53_spill]] }
 0xadc   : > { %v9938_v9 = vadd.f32 %v7437_v8, %v9816_v13 }
 0xb4d   : > { %v2613_v10 = vpop.xlane.xlu1 %2612 }
 0xb4e   : > { %v2614_v11 = vsub.f32 %v2608_v7, %v2613_v10 }
 0xb50   : > { %v2615_v12 = vmul.f32 1.442695, %v2614_v11 }
 0xb51   : > { %v2623_v14 = vpop.permute.xlu1 %2622 }
 0xb52   : > { %8601 = vpow2.f32 %v2615_v12  ;;  %7850 = vmatpush3.msra.mxu1 %v2623_v14 }
 0xb53   : > { %7854 = vmatprep.subr.mxu1 %v9204_v1 }
 0xb55   : > { %v2847_v25 = vpop.permute.xlu1 %2846 }
 0xb59   : > { %v2845_v28 = vpop.permute.xlu1 %2844 }
 0xb5c   : > { %v8602_v15 = vpop.eup %8601 }
 0xb5d   : > { %v2617_v16 = vsel %vm2371_vm9, %v8602_v15, 0.0 }
 0xb5e   : > { %2618 = vadd.xlane.f32.xlu0 %v2617_v16 }
 0xb74   : > { %2933 = vrot.lane.b32.xlu0 %v9837_v42, %s10456_s11  ;;  %s10464_s11 = smov 104  }
 0xb78   : > { %3085 = vrot.lane.b32.xlu0 %v9837_v42, %s10458_s3  ;;  %s10462_s3 = smov 40  }
 0xb8c   : > { %v2840_v18 = vpop.f32.mrb[2].mxu0 }
 0xb8d   : > { %v7863_v19 = vpop.f32.mrb[3].mxu0 }
 0xbeb   : > { %v2619_v20 = vpop.xlane.xlu0 %2618 }
 0xbec   : > { %8603 = vrcp.f32 %v2619_v20 }
 0xbef   : > { %v2934_v21 = vpop.permute.xlu0 %2933 }
 0xbf0   : > { %7870 = vmatpush3.msra.mxu0 %v2934_v21 }
 0xbf1   : > { %7879 = vmatprep.subr.mxu0 %v9204_v1 }
 0xbf3   : > { %v3086_v41 = vpop.permute.xlu0 %3085 }
 0xbf6   : > { %v8604_v22 = vpop.eup %8603 }
 0xbf7   : > { %v2621_v23 = vmul.f32 %v8604_v22, %v8602_v15 }
 0xbf9   : > { %7852 = vmatmul.mubr.msk.f32.vlgmr.msra.gmra.mrb[16].mxu1 %vm2371_vm9, %v2621_v23 }
 0xbfa   : > { %7855 = vmatpush3.msra.mxu1 %v2364_v24  ;;  %7856 = vmatprep.mubr.msk.f32.mxu1 %vm9203_vm0, %v9204_v1 }
 0xbfb   : > { %7864 = vmatprep.subr.mxu1 %v9204_v1 }
 0xccc   : > { %v2694_v26 = vpop.f32.mrb[16].mxu1 }
 0xccd   : > { %v7853_v27 = vpop.f32.mrb[17].mxu1  ;;  %7857 = vmatmul.mubr.msk.f32.vlgmr.msra.gmra.mrb[18].mxu1 %vm2371_vm9, %v2694_v26 }
 0xcce   : > { %7865 = vmatpush3.xpose.msk.msra.mxu1 %vm2371_vm9, %v2847_v25  ;;  %7866 = vmatprep.mubr.msk.f32.mxu1 %vm9203_vm0, %v9204_v1 }
 0xccf   : > { %7874 = vmatprep.subr.mxu1 %v9204_v1 }
 0xcd1   : > { %7867 = vmatmul.mubr.msk.f32.vlgmr.msra.gmra.mrb[20].mxu1 %vm2371_vm9, %v2845_v28 }
 0xcd2   : > { %7876 = vmatprep.mubr.msk.f32.mxu1 %vm9203_vm0, %v9204_v1  ;;  %7875 = vmatpush3.msra.mxu1 %v2365_v51 }
 0xcd3   : > { %7884 = vmatprep.subr.mxu1 %v9204_v1 }
 0xda0   : > { %v2767_v29 = vpop.f32.mrb[18].mxu1 }
 0xda1   : > { %v2841_v30 = vadd.f32 %v2840_v18, %v2767_v29  ;;  %v7858_v31 = vpop.f32.mrb[19].mxu1 }
 0xda4   : > { %v2918_v32 = vpop.f32.mrb[20].mxu1 }
 0xda5   : > { %v2919_v33 = vadd.f32 %v2918_v32, %v9859_v50  ;;  %v7868_v34 = vpop.f32.mrb[21].mxu1 }
 0xda7   : > { %v2922_v35 = vsel %vm2371_vm9, %v2919_v33, -inf }
 0xda8   : > { %2923 = vmax.xlane.f32.xlu1 %v2922_v35 }
 0xe35   : > { %v2924_v36 = vpop.xlane.xlu1 %2923 }
 0xe36   : > { %v2925_v37 = vsub.f32 %v2919_v33, %v2924_v36  ;;  %v7463_v36 = vld [vmem:[%s10574_s23] ss:$0 sm:$0xff]  ;;  %s10578_s23 = smov 104  }
 0xe38   : > { %v2926_v38 = vmul.f32 1.442695, %v2925_v37 }
 0xe3a   : > { %8605 = vpow2.f32 %v2926_v38 }
 0xe44   : > { %v8606_v39 = vpop.eup %8605 }
 0xe45   : > { %v2928_v40 = vsel %vm2371_vm9, %v8606_v39, 0.0 }
 0xe46   : > { %2929 = vadd.xlane.f32.xlu0 %v2928_v40  ;;  %v7464_v40 = vld [vmem:[%s10575_s15] ss:$0 sm:$0xff]  ;;  %s10576_s15 = smov 112  }
 0xe5c   : > { %3083 = vrot.lane.b32.xlu0 %v9837_v42, %s10464_s11  ;;  %s10572_s11 = sld [smem:[#allocation46_spill]] }
 0xe62   : > { %v3359_v25 = vld [vmem:[%s10572_s11] sm:$0xff]  ;;  %v3360_v26 = vld [vmem:[%s10572_s11 + $0x8] sm:$0xff]  ;;  %v3362_v28 = vld [vmem:[%s10572_s11 + $0x18] sm:$0xff] }
 0xe63   : > { %v8260_v27 = vpack.c.bf16 %v3360_v26, %v3359_v25 }
 0xed3   : > { %v2930_v43 = vpop.xlane.xlu0 %2929 }
 0xed4   : > { %8607 = vrcp.f32 %v2930_v43 }
 0xed7   : > { %v3084_v46 = vpop.permute.xlu0 %3083 }
 0xede   : > { %v8608_v44 = vpop.eup %8607 }
 0xedf   : > { %v2932_v45 = vmul.f32 %v8608_v44, %v8606_v39 }
 0xee1   : > { %7872 = vmatmul.mubr.msk.f32.vlgmr.msra.gmra.mrb[4].mxu0 %vm2371_vm9, %v2932_v45 }
 0xee2   : > { %7880 = vmatpush3.xpose.msk.msra.mxu0 %vm2371_vm9, %v3086_v41  ;;  %7881 = vmatprep.mubr.msk.f32.mxu0 %vm9203_vm0, %v9204_v1 }
 0xee3   : > { %7889 = vmatprep.subr.mxu0 %v9204_v1 }
 0xee5   : > { %7882 = vmatmul.mubr.msk.f32.vlgmr.msra.gmra.mrb[6].mxu0 %vm2371_vm9, %v3084_v46  ;;  %v7431_v46 = vadd.s32 4294967295, %v9854_v48 }
 0xee6   : > { %7891 = vmatprep.mubr.msk.f32.mxu0 %vm9203_vm0, %v9204_v1  ;;  %7890 = vmatpush3.msra.mxu0 %v2366_v2 }
 0xee7   : > { %7905 = vmatprep.subr.mxu0 %v9204_v1  ;;  %vm1801_vm11 = vcmp.ge.s32.totalorder %v9852_v47, %v7431_v46 }
 0xee8   : > { %v9984_v51 = vsel %vm1801_vm11, 0.0, %v9209_v49 }
 0xfb4   : > { %v3005_v52 = vpop.f32.mrb[4].mxu0 }
 0xfb5   : > { %v7873_v53 = vpop.f32.mrb[5].mxu0  ;;  %7877 = vmatmul.mubr.msk.f32.vlgmr.msra.gmra.mrb[22].mxu1 %vm2371_vm9, %v3005_v52 }
 0xfb6   : > { %7886 = vmatprep.mubr.msk.f32.mxu1 %vm9203_vm0, %v9204_v1 }
 0xfb8   : > { %v3157_v54 = vpop.f32.mrb[6].mxu0 }
 0xfb9   : > { %v3158_v55 = vadd.f32 %v3157_v54, %v9859_v50  ;;  %v7883_v56 = vpop.f32.mrb[7].mxu0 }
 0xfbb   : > { %v3161_v57 = vsel %vm2371_vm9, %v3158_v55, -inf }
 0xfbc   : > { %3162 = vmax.xlane.f32.xlu1 %v3161_v57 }
 0xfcd   : > { %3172 = vrot.lane.b32.xlu1 %v9837_v42, %s10462_s3  ;;  %s10571_s3 = sld [smem:[#allocation57_spill]] }
 0xfd3   : > { %v7461_v12 = vld [vmem:[%s10571_s3] ss:$0 sm:$0xff]  ;;  %s10573_s3 = sld [smem:[#allocation54_spill]] }
 0xfd9   : > { %v7462_v34 = vld [vmem:[%s10573_s3] ss:$0 sm:$0xff]  ;;  %s10577_s3 = sld [smem:[#allocation45_spill]] }
0x1049   : > { %v3163_v58 = vpop.xlane.xlu1 %3162 }
0x104a   : > { %v3164_v59 = vsub.f32 %v3158_v55, %v3163_v58 }
0x104c   : > { %v3165_v60 = vmul.f32 1.442695, %v3164_v59 }
0x104d   : > { %v3173_v61 = vpop.permute.xlu1 %3172 }
0x104e   : > { %8609 = vpow2.f32 %v3165_v60  ;;  %7885 = vmatpush3.msra.mxu1 %v3173_v61 }
0x104f   : > { %8259 = vmatprep.subr.bf16.mxu1 %v9202_v0 }
0x1058   : > { %v8610_v62 = vpop.eup %8609 }
0x1059   : > { %v3167_v63 = vsel %vm2371_vm9, %v8610_v62, 0.0 }
0x105a   : > { %3168 = vadd.xlane.f32.xlu0 %v3167_v63 }
0x1088   : > { %v3078_v3 = vpop.f32.mrb[22].mxu1 }
0x1089   : > { %v3082_v4 = vadd.f32 %v3078_v3, %v2841_v30  ;;  %v7878_v42 = vpop.f32.mrb[23].mxu1 }
0x10e7   : > { %v3169_v5 = vpop.xlane.xlu0 %3168 }
0x10e8   : > { %8611 = vrcp.f32 %v3169_v5 }
0x10f2   : > { %v8612_v6 = vpop.eup %8611 }
0x10f3   : > { %v3171_v7 = vmul.f32 %v8612_v6, %v8610_v62 }
0x10f5   : > { %7887 = vmatmul.mubr.msk.f32.vlgmr.msra.gmra.mrb[24].mxu1 %vm2371_vm9, %v3171_v7 }
0x10f6   : > { %7902 = vmatprep.mubr.msk.f32.mxu1 %vm9203_vm0, %v9204_v1  ;;  %8261 = vmatpush3.bf16.msra.mxu1 %v8260_v27 }
0x10f7   : > { %8262 = vmatprep.subr.bf16.mxu1 %v9202_v0 }
0x11c8   : > { %v3244_v10 = vpop.f32.mrb[24].mxu1 }
0x11c9   : > { %v7888_v11 = vpop.f32.mrb[25].mxu1  ;;  %7892 = vmatmul.mubr.msk.f32.vlgmr.msra.gmra.mrb[8].mxu0 %vm2371_vm9, %v3244_v10 }
0x11ca   : > { %7906 = vmatpush3.xpose.msk.msra.mxu0 %vm2371_vm9, %v9938_v9  ;;  %7907 = vmatprep.mubr.msk.f32.mxu0 %vm9203_vm0, %v9204_v1 }
0x11cb   : > { %7910 = vmatprep.subr.mxu0 %v9204_v1 }
0x129c   : > { %v3317_v14 = vpop.f32.mrb[8].mxu0 }
0x129d   : > { %v3321_v15 = vadd.f32 %v3317_v14, %v3082_v4  ;;  %v7893_v16 = vpop.f32.mrb[9].mxu0  ;;  %v3443_v14 = vld [vmem:[%s10577_s3] sm:$0xff] }
0x129f   : > { %v3328_v13 = vadd.f32 %v7461_v12, %v3321_v15  ;;  %v3444_v15 = vld [vmem:[%s10577_s3 + $0x8] sm:$0xff] }
0x12a1   : > { %v9948_v18 = vadd.f32 %v3328_v13, %v9819_v17  ;;  %v3361_v17 = vld [vmem:[%s10572_s11 + $0x10] sm:$0xff] }
0x12a2   : > { %v8263_v29 = vpack.c.bf16 %v3362_v28, %v3361_v17 }
0x12a3   : > { %v3332_v19 = vsel %vm1905_vm4, %v9948_v18, 0.0 }
0x12a4   : > { %3333 = vadd.xlane.f32.xlu1 %v3332_v19  ;;  %8264 = vmatpush3.bf16.msra.mxu1 %v8263_v29 }
0x12a5   : > { %7915 = vmatprep.subr.mxu1 %v9204_v1 }
0x1331   : > { %v3334_v20 = vpop.xlane.xlu1 %3333 }
0x1332   : > { %v3335_v21 = vmul.f32 0.03125, %v3334_v20 }
0x1334   : > { %v3336_v22 = vsub.f32 %v9948_v18, %v3335_v21 }
0x1336   : > { %v3337_v23 = vmul.f32 %v3336_v22, %v3336_v22 }
0x1338   : > { %v3338_v24 = vsel %vm1905_vm4, %v3337_v23, 0.0 }
0x1339   : > { %3339 = vadd.xlane.f32.xlu0 %v3338_v24 }
0x134f   : > { %3616 = vrot.lane.b32.xlu0 %v9938_v9, %s10468_s18 }
0x13c6   : > { %v3340_v30 = vpop.xlane.xlu0 %3339 }
0x13c7   : > { %v3341_v31 = vmul.f32 0.03125, %v3340_v30 }
0x13c9   : > { %v3342_v32 = vadd.f32 1e-05, %v3341_v31 }
0x13ca   : > { %v3617_v39 = vpop.permute.xlu0 %3616 }
0x13cb   : > { %8613 = vrsqrt.f32 %v3342_v32 }
0x13d5   : > { %v8614_v33 = vpop.eup %8613 }
0x13d6   : > { %v3344_v35 = vmul.f32 %v8614_v33, %v3336_v22 }
0x13d8   : > { %v3351_v37 = vmul.f32 %v7462_v34, %v3344_v35 }
0x13da   : > { %v3358_v38 = vadd.f32 %v7463_v36, %v3351_v37 }
0x13dc   : > { %7903 = vmatmul.mubr.msk.f32.vlgmr.msra.gmra.mrb[26].mxu1 %vm1905_vm4, %v3358_v38 }
0x13dd   : > { %7916 = vmatpush3.xpose.msk.msra.mxu1 %vm2371_vm9, %v3617_v39  ;;  %7917 = vmatprep.mubr.msk.f32.mxu1 %vm9203_vm0, %v9204_v1 }
0x13de   : > { %7925 = vmatprep.subr.mxu1 %v9204_v1 }
0x14af   : > { %v3439_v41 = vpop.f32.mrb[26].mxu1 }
0x14b0   : > { %v9970_v43 = vadd.f32 %v7464_v40, %v3439_v41  ;;  %v7904_v44 = vpop.f32.mrb[27].mxu1 }
0x14b2   : > { %3614 = vrot.lane.b32.xlu1 %v9970_v43, %s10468_s18  ;;  %7908 = vmatmul.mubr.msk.f32.vlgmr.msra.gmra.mrb[10].mxu0 %vm2371_vm9, %v9970_v43  ;;  %s10579_s18 = smov 80  }
0x14b3   : > { %7912 = vmatprep.mubr.msk.f32.mxu0 %vm9203_vm0, %v9204_v1 }
0x1524   : > { %v3615_v45 = vpop.permute.xlu1 %3614 }
0x1525   : > { %7918 = vmatmul.mubr.msk.f32.vlgmr.msra.gmra.mrb[28].mxu1 %vm2371_vm9, %v3615_v45 }
0x1526   : > { %7927 = vmatprep.mubr.msk.f32.mxu1 %vm9203_vm0, %v9204_v1  ;;  %7926 = vmatpush3.msra.mxu1 %v3444_v15 }
0x1527   : > { %7935 = vmatprep.subr.mxu1 %v9204_v1 }
0x1585   : > { %v3520_v52 = vpop.f32.mrb[10].mxu0 }
0x1586   : > { %v3521_v53 = vadd.f32 %v3520_v52, %v9984_v51  ;;  %v7909_v54 = vpop.f32.mrb[11].mxu0 }
0x1588   : > { %v3525_v55 = vsel %vm3524_vm12, %v3521_v53, -inf }
0x1589   : > { %3526 = vmax.xlane.f32.xlu0 %v3525_v55 }
0x15f8   : > { %v3688_v56 = vpop.f32.mrb[28].mxu1 }
0x15f9   : > { %v3689_v57 = vadd.f32 %v3688_v56, %v9984_v51  ;;  %v7919_v58 = vpop.f32.mrb[29].mxu1 }
0x15fb   : > { %v3692_v59 = vsel %vm3524_vm12, %v3689_v57, -inf }
0x15fc   : > { %3693 = vmax.xlane.f32.xlu1 %v3692_v59 }
0x160d   : > { %3703 = vrot.lane.b32.xlu1 %v9938_v9, %s10470_s26  ;;  %s10580_s26 = smov 72  }
0x1616   : > { %v3527_v47 = vpop.xlane.xlu0 %3526 }
0x1617   : > { %v3528_v48 = vsub.f32 %v3521_v53, %v3527_v47 }
0x1619   : > { %v3529_v49 = vmul.f32 1.442695, %v3528_v48  ;;  %v3446_v48 = vld [vmem:[%s10577_s3 + $0x18] sm:$0xff] }
0x161b   : > { %8615 = vpow2.f32 %v3529_v49 }
0x1625   : > { %v8616_v60 = vpop.eup %8615 }
0x1626   : > { %v3531_v61 = vsel %vm3524_vm12, %v8616_v60, 0.0 }
0x1627   : > { %3532 = vadd.xlane.f32.xlu0 %v3531_v61 }
0x1689   : > { %v3694_v62 = vpop.xlane.xlu1 %3693 }
0x168a   : > { %v3695_v63 = vsub.f32 %v3689_v57, %v3694_v62 }
0x168c   : > { %v3696_v2 = vmul.f32 1.442695, %v3695_v63 }
0x168d   : > { %v3704_v10 = vpop.permute.xlu1 %3703 }
0x168e   : > { %8617 = vpow2.f32 %v3696_v2 }
0x1698   : > { %v8618_v3 = vpop.eup %8617 }
0x1699   : > { %v3698_v4 = vsel %vm3524_vm12, %v8618_v3, 0.0 }
0x169a   : > { %3699 = vadd.xlane.f32.xlu0 %v3698_v4 }
0x16b0   : > { %3536 = vrot.lane.b32.xlu0 %v9938_v9, %s10471_s4  ;;  %s10581_s4 = sld [smem:[#allocation43_spill]] }
0x16b4   : > { %3928 = vrot.lane.b32.xlu0 %v9938_v9, %s10576_s15  ;;  %v3533_v42 = vpop.xlane.xlu0 %3532 }
0x16b5   : > { %8619 = vrcp.f32 %v3533_v42 }
0x16b6   : > { %v7486_v42 = vld [vmem:[%s10581_s4] ss:$0 sm:$0xff]  ;;  %s10584_s4 = sld [smem:[#allocation56_spill]] }
0x16b8   : > { %3926 = vrot.lane.b32.xlu0 %v9970_v43, %s10576_s15 }
0x16bf   : > { %v8620_v6 = vpop.eup %8619 }
0x16c0   : > { %v3535_v7 = vmul.f32 %v8620_v6, %v8616_v60 }
0x1727   : > { %v3700_v5 = vpop.xlane.xlu0 %3699 }
0x1728   : > { %8621 = vrcp.f32 %v3700_v5 }
0x172b   : > { %v3537_v8 = vpop.permute.xlu0 %3536 }
0x172c   : > { %7911 = vmatpush3.msk.msra.mxu0 %vm3541_vm13, %v3537_v8 }
0x172d   : > { %7913 = vmatmul.mubr.msk.f32.vlgmr.msra.gmra.mrb[12].mxu0 %vm3524_vm12, %v3535_v7  ;;  %7920 = vmatprep.subr.mxu0 %v9204_v1 }
0x172e   : > { %7921 = vmatpush3.msk.msra.mxu0 %vm3541_vm13, %v3704_v10  ;;  %7922 = vmatprep.mubr.msk.f32.mxu0 %vm9203_vm0, %v9204_v1 }
0x172f   : > { %7930 = vmatprep.subr.mxu0 %v9204_v1  ;;  %v3929_v19 = vpop.permute.xlu0 %3928 }
0x1732   : > { %v8622_v11 = vpop.eup %8621 }
0x1733   : > { %v3702_v12 = vmul.f32 %v8622_v11, %v8618_v3  ;;  %v3927_v22 = vpop.permute.xlu0 %3926 }
0x1735   : > { %7923 = vmatmul.mubr.msk.f32.vlgmr.msra.gmra.mrb[14].mxu0 %vm3524_vm12, %v3702_v12 }
0x1736   : > { %7932 = vmatprep.mubr.msk.f32.mxu0 %vm9203_vm0, %v9204_v1  ;;  %7931 = vmatpush3.msra.mxu0 %v3443_v14 }
0x1737   : > { %7940 = vmatprep.subr.mxu0 %v9204_v1 }
0x1800   : > { %v3610_v16 = vpop.f32.mrb[12].mxu0 }
0x1801   : > { %v7914_v13 = vpop.f32.mrb[13].mxu0  ;;  %7933 = vmatmul.mubr.msk.f32.vlgmr.msra.gmra.mrb[16].mxu0 %vm2371_vm9, %v3610_v16 }
0x1802   : > { %7942 = vmatprep.mubr.msk.f32.mxu0 %vm9203_vm0, %v9204_v1 }
0x1808   : > { %v3776_v20 = vpop.f32.mrb[14].mxu0 }
0x1809   : > { %v7924_v21 = vpop.f32.mrb[15].mxu0  ;;  %7928 = vmatmul.mubr.msk.f32.vlgmr.msra.gmra.mrb[30].mxu1 %vm2371_vm9, %v3776_v20  ;;  %v4444_v20 = vld [vmem:[%s10582_s1 + $0x8] sm:$0xff] }
0x180a   : > { %7936 = vmatpush3.xpose.msk.msra.mxu1 %vm2371_vm9, %v3929_v19  ;;  %7937 = vmatprep.mubr.msk.f32.mxu1 %vm9203_vm0, %v9204_v1  ;;  %v4443_v19 = vld [vmem:[%s10582_s1] sm:$0xff] }
0x180b   : > { %7945 = vmatprep.subr.mxu1 %v9204_v1  ;;  %v8266_v21 = vpack.c.bf16 %v4444_v20, %v4443_v19 }
0x180d   : > { %7938 = vmatmul.mubr.msk.f32.vlgmr.msra.gmra.mrb[32].mxu1 %vm2371_vm9, %v3927_v22  ;;  %v4446_v22 = vld [vmem:[%s10582_s1 + $0x18] sm:$0xff] }
0x180e   : > { %7947 = vmatprep.mubr.msk.f32.mxu1 %vm9203_vm0, %v9204_v1 }
0x18d4   : > { %v3922_v23 = vpop.f32.mrb[16].mxu0 }
0x18d5   : > { %v7934_v24 = vpop.f32.mrb[17].mxu0 }
0x18d6   : > { %v4536_v24 = vld [vmem:[%s10583_s2] sm:$0xff] }
0x18dc   : > { %v3849_v25 = vpop.f32.mrb[30].mxu1 }
0x18dd   : > { %v3923_v26 = vadd.f32 %v3922_v23, %v3849_v25  ;;  %v7929_v27 = vpop.f32.mrb[31].mxu1  ;;  %v4537_v25 = vld [vmem:[%s10583_s2 + $0x8] sm:$0xff] }
0x18e0   : > { %v4000_v17 = vpop.f32.mrb[32].mxu1 }
0x18e1   : > { %v4001_v28 = vadd.f32 %v4000_v17, %v9984_v51  ;;  %v7939_v29 = vpop.f32.mrb[33].mxu1 }
0x18e3   : > { %v4004_v30 = vsel %vm3524_vm12, %v4001_v28, -inf }
0x18e4   : > { %4005 = vmax.xlane.f32.xlu1 %v4004_v30  ;;  %v7487_v30 = vld [vmem:[%s10584_s4] ss:$0 sm:$0xff]  ;;  %s10587_s4 = sld [smem:[#allocation48_spill]] }
0x18f5   : > { %4168 = vrot.lane.b32.xlu1 %v9938_v9, %s10578_s23 }
0x18f9   : > { %4166 = vrot.lane.b32.xlu1 %v9970_v43, %s10578_s23  ;;  %v3445_v43 = vld [vmem:[%s10577_s3 + $0x10] sm:$0xff]  ;;  %s10585_s3 = sld [smem:[#allocation55_spill]] }
0x18fa   : > { %7946 = vmatpush3.msra.mxu1 %v3445_v43  ;;  %v4543_v43 = vld [vmem:[%s10583_s2 + $0x38] sm:$0xff] }
0x18fb   : > { %7955 = vmatprep.subr.mxu1 %v9204_v1 }
0x1971   : > { %v4006_v31 = vpop.xlane.xlu1 %4005 }
0x1972   : > { %v4007_v32 = vsub.f32 %v4001_v28, %v4006_v31 }
0x1974   : > { %v4008_v33 = vmul.f32 1.442695, %v4007_v32  ;;  %v7488_v32 = vld [vmem:[%s10585_s3] ss:$0 sm:$0xff]  ;;  %s10586_s3 = sld [smem:[#allocation47_spill]] }
0x1975   : > { %v4169_v39 = vpop.permute.xlu1 %4168 }
0x1976   : > { %8623 = vpow2.f32 %v4008_v33 }
0x1979   : > { %v4167_v41 = vpop.permute.xlu1 %4166 }
0x1980   : > { %v8624_v34 = vpop.eup %8623 }
0x1981   : > { %v4010_v35 = vsel %vm3524_vm12, %v8624_v34, 0.0 }
0x1982   : > { %4011 = vadd.xlane.f32.xlu0 %v4010_v35  ;;  %v4538_v35 = vld [vmem:[%s10583_s2 + $0x10] sm:$0xff] }
0x1998   : > { %4015 = vrot.lane.b32.xlu0 %v9938_v9, %s10579_s18 }
0x1a0f   : > { %v4012_v36 = vpop.xlane.xlu0 %4011 }
0x1a10   : > { %8625 = vrcp.f32 %v4012_v36  ;;  %v4539_v36 = vld [vmem:[%s10583_s2 + $0x18] sm:$0xff] }
0x1a13   : > { %v4016_v37 = vpop.permute.xlu0 %4015 }
0x1a14   : > { %7941 = vmatpush3.msk.msra.mxu0 %vm3541_vm13, %v4016_v37  ;;  %v8275_v37 = vpack.c.bf16 %v4539_v36, %v4538_v35  ;;  %v7494_v36 = vld [vmem:[#allocation19] ss:$0 sm:$0xff] }
0x1a15   : > { %7950 = vmatprep.subr.mxu0 %v9204_v1 }
0x1a1a   : > { %v8626_v38 = vpop.eup %8625 }
0x1a1b   : > { %v4014_v40 = vmul.f32 %v8626_v38, %v8624_v34  ;;  %v4540_v38 = vld [vmem:[%s10583_s2 + $0x20] sm:$0xff] }
0x1a1d   : > { %7943 = vmatmul.mubr.msk.f32.vlgmr.msra.gmra.mrb[18].mxu0 %vm3524_vm12, %v4014_v40 }
0x1a1e   : > { %7951 = vmatpush3.xpose.msk.msra.mxu0 %vm2371_vm9, %v4169_v39  ;;  %7952 = vmatprep.mubr.msk.f32.mxu0 %vm9203_vm0, %v9204_v1  ;;  %v4541_v39 = vld [vmem:[%s10583_s2 + $0x28] sm:$0xff] }
0x1a1f   : > { %7960 = vmatprep.subr.mxu0 %v9204_v1  ;;  %v8278_v40 = vpack.c.bf16 %v4541_v39, %v4540_v38 }
0x1a21   : > { %7953 = vmatmul.mubr.msk.f32.vlgmr.msra.gmra.mrb[20].mxu0 %vm2371_vm9, %v4167_v41  ;;  %v4542_v41 = vld [vmem:[%s10583_s2 + $0x30] sm:$0xff] }
0x1a22   : > { %7962 = vmatprep.mubr.msk.f32.mxu0 %vm9203_vm0, %v9204_v1  ;;  %7961 = vmatpush3.msra.mxu0 %v3446_v48 }
0x1a23   : > { %8271 = vmatprep.subr.bf16.mxu0 %v9202_v0 }
0x1af0   : > { %v4088_v44 = vpop.f32.mrb[18].mxu0 }
0x1af1   : > { %v7944_v45 = vpop.f32.mrb[19].mxu0  ;;  %7948 = vmatmul.mubr.msk.f32.vlgmr.msra.gmra.mrb[34].mxu1 %vm2371_vm9, %v4088_v44  ;;  %v8281_v44 = vpack.c.bf16 %v4543_v43, %v4542_v41 }
0x1af2   : > { %7957 = vmatprep.mubr.msk.f32.mxu1 %vm9203_vm0, %v9204_v1  ;;  %v4544_v45 = vld [vmem:[%s10583_s2 + $0x40] sm:$0xff] }
0x1af4   : > { %v4240_v46 = vpop.f32.mrb[20].mxu0 }
0x1af5   : > { %v4241_v52 = vadd.f32 %v4240_v46, %v9984_v51  ;;  %v7954_v53 = vpop.f32.mrb[21].mxu0  ;;  %v4545_v46 = vld [vmem:[%s10583_s2 + $0x48] sm:$0xff] }
0x1af6   : > { %v4546_v53 = vld [vmem:[%s10583_s2 + $0x50] sm:$0xff] }
0x1af7   : > { %v4244_v54 = vsel %vm3524_vm12, %v4241_v52, -inf }
0x1af8   : > { %4245 = vmax.xlane.f32.xlu0 %v4244_v54  ;;  %v4547_v54 = vld [vmem:[%s10583_s2 + $0x58] sm:$0xff] }
0x1b0e   : > { %4255 = vrot.lane.b32.xlu0 %v9938_v9, %s10580_s26 }
0x1b85   : > { %v4246_v55 = vpop.xlane.xlu0 %4245 }
0x1b86   : > { %v4247_v56 = vsub.f32 %v4241_v52, %v4246_v55  ;;  %v8284_v52 = vpack.c.bf16 %v4545_v46, %v4544_v45  ;;  %v8287_v55 = vpack.c.bf16 %v4547_v54, %v4546_v53 }
0x1b88   : > { %v4248_v57 = vmul.f32 1.442695, %v4247_v56  ;;  %v4548_v56 = vld [vmem:[%s10583_s2 + $0x60] sm:$0xff] }
0x1b89   : > { %v4256_v58 = vpop.permute.xlu0 %4255 }
0x1b8a   : > { %8627 = vpow2.f32 %v4248_v57  ;;  %7956 = vmatpush3.msk.msra.mxu1 %vm3541_vm13, %v4256_v58  ;;  %v4549_v57 = vld [vmem:[%s10583_s2 + $0x68] sm:$0xff] }
0x1b8b   : > { %8265 = vmatprep.subr.bf16.mxu1 %v9202_v0  ;;  %v8290_v58 = vpack.c.bf16 %v4549_v57, %v4548_v56 }
0x1b94   : > { %v8628_v59 = vpop.eup %8627 }
0x1b95   : > { %v4250_v47 = vsel %vm3524_vm12, %v8628_v59, 0.0 }
0x1b96   : > { %4251 = vadd.xlane.f32.xlu1 %v4250_v47  ;;  %v4551_v47 = vld [vmem:[%s10583_s2 + $0x78] sm:$0xff] }
0x1bc4   : > { %v4161_v49 = vpop.f32.mrb[34].mxu1 }
0x1bc5   : > { %v4165_v60 = vadd.f32 %v4161_v49, %v3923_v26  ;;  %v7949_v61 = vpop.f32.mrb[35].mxu1  ;;  %v8272_v26 = vpack.c.bf16 %v4537_v25, %v4536_v24  ;;  %v7489_v49 = vld [vmem:[%s10586_s3] ss:$0 sm:$0xff]  ;;  %s10589_s3 = sld [smem:[#allocation69_spill]] }
0x1c23   : > { %v4252_v62 = vpop.xlane.xlu1 %4251 }
0x1c24   : > { %8629 = vrcp.f32 %v4252_v62 }
0x1c2e   : > { %v8630_v63 = vpop.eup %8629 }
0x1c2f   : > { %v4254_v2 = vmul.f32 %v8630_v63, %v8628_v59  ;;  %v4550_v59 = vld [vmem:[%s10583_s2 + $0x70] sm:$0xff]  ;;  %s10594_s2 = sld [smem:[#allocation73_spill]] }
0x1c30   : > { %v8293_v48 = vpack.c.bf16 %v4551_v47, %v4550_v59 }
0x1c31   : > { %7958 = vmatmul.mubr.msk.f32.vlgmr.msra.gmra.mrb[36].mxu1 %vm3524_vm12, %v4254_v2 }
0x1c32   : > { %7973 = vmatprep.mubr.msk.f32.mxu1 %vm9203_vm0, %v9204_v1  ;;  %8267 = vmatpush3.bf16.msra.mxu1 %v8266_v21 }
0x1c33   : > { %8268 = vmatprep.subr.bf16.mxu1 %v9202_v0 }
0x1d04   : > { %v4328_v3 = vpop.f32.mrb[36].mxu1 }
0x1d05   : > { %v7959_v4 = vpop.f32.mrb[37].mxu1  ;;  %7963 = vmatmul.mubr.msk.f32.vlgmr.msra.gmra.mrb[22].mxu0 %vm2371_vm9, %v4328_v3 }
0x1d06   : > { %8008 = vmatprep.mubr.msk.f32.mxu0 %vm9203_vm0, %v9204_v1  ;;  %8273 = vmatpush3.bf16.msra.mxu0 %v8272_v26 }
0x1d07   : > { %8274 = vmatprep.subr.bf16.mxu0 %v9202_v0 }
0x1d0a   : > { %8276 = vmatpush3.bf16.msra.mxu0 %v8275_v37 }
0x1d0b   : > { %8277 = vmatprep.subr.bf16.mxu0 %v9202_v0 }
0x1d0e   : > { %8279 = vmatpush3.bf16.msra.mxu0 %v8278_v40 }
0x1d0f   : > { %8280 = vmatprep.subr.bf16.mxu0 %v9202_v0 }
0x1d12   : > { %8282 = vmatpush3.bf16.msra.mxu0 %v8281_v44 }
0x1d13   : > { %8283 = vmatprep.subr.bf16.mxu0 %v9202_v0 }
0x1d16   : > { %8285 = vmatpush3.bf16.msra.mxu0 %v8284_v52 }
0x1d17   : > { %8286 = vmatprep.subr.bf16.mxu0 %v9202_v0 }
0x1d1a   : > { %8288 = vmatpush3.bf16.msra.mxu0 %v8287_v55 }
0x1d1b   : > { %8289 = vmatprep.subr.bf16.mxu0 %v9202_v0 }
0x1d1e   : > { %8291 = vmatpush3.bf16.msra.mxu0 %v8290_v58 }
0x1d1f   : > { %8292 = vmatprep.subr.bf16.mxu0 %v9202_v0 }
0x1d22   : > { %8294 = vmatpush3.bf16.msra.mxu0 %v8293_v48 }
0x1d23   : > { %8047 = vmatprep.subr.mxu0 %v9204_v1 }
0x1dd8   : > { %v4401_v5 = vpop.f32.mrb[22].mxu0 }
0x1dd9   : > { %v4405_v6 = vadd.f32 %v4401_v5, %v4165_v60  ;;  %v7964_v7 = vpop.f32.mrb[23].mxu0 }
0x1ddb   : > { %v4412_v8 = vadd.f32 %v7486_v42, %v4405_v6 }
0x1ddd   : > { %v10066_v10 = vadd.f32 %v4412_v8, %v9948_v18  ;;  %v4445_v18 = vld [vmem:[%s10582_s1 + $0x10] sm:$0xff]  ;;  %s10588_s1 = sld [smem:[#allocation74_spill]] }
0x1dde   : > { %v8269_v23 = vpack.c.bf16 %v4446_v22, %v4445_v18 }
0x1ddf   : > { %v4416_v11 = vsel %vm1905_vm4, %v10066_v10, 0.0 }
0x1de0   : > { %4417 = vadd.xlane.f32.xlu1 %v4416_v11  ;;  %8270 = vmatpush3.bf16.msra.mxu1 %v8269_v23 }
0x1de1   : > { %8295 = vmatprep.subr.bf16.mxu1 %v9202_v0 }
0x1de3   : > { %v4660_v23 = vld [vmem:[%s10588_s1] sm:$0xff]  ;;  %v4661_v24 = vld [vmem:[%s10588_s1 + $0x8] sm:$0xff]  ;;  %v4662_v25 = vld [vmem:[%s10588_s1 + $0x10] sm:$0xff] }
0x1de4   : > { %v4663_v26 = vld [vmem:[%s10588_s1 + $0x18] sm:$0xff]  ;;  %s10593_s1 = smov 120  }
0x1e6d   : > { %v4418_v12 = vpop.xlane.xlu1 %4417 }
0x1e6e   : > { %v4419_v14 = vmul.f32 0.03125, %v4418_v12  ;;  %v7491_v12 = vld [vmem:[%s10587_s4] ss:$0 sm:$0xff]  ;;  %s10590_s4 = smov 96  }
0x1e70   : > { %v4420_v15 = vsub.f32 %v10066_v10, %v4419_v14 }
0x1e72   : > { %v4421_v16 = vmul.f32 %v4420_v15, %v4420_v15 }
0x1e74   : > { %v4422_v13 = vsel %vm1905_vm4, %v4421_v16, 0.0 }
0x1e75   : > { %4423 = vadd.xlane.f32.xlu1 %v4422_v13 }
0x1f02   : > { %v4424_v27 = vpop.xlane.xlu1 %4423 }
0x1f03   : > { %v4425_v17 = vmul.f32 0.03125, %v4424_v27  ;;  %v8299_v27 = vpack.c.bf16 %v4663_v26, %v4662_v25 }
0x1f05   : > { %v4426_v28 = vadd.f32 1e-05, %v4425_v17 }
0x1f07   : > { %8631 = vrsqrt.f32 %v4426_v28 }
0x1f11   : > { %v8632_v29 = vpop.eup %8631 }
0x1f12   : > { %v4428_v31 = vmul.f32 %v8632_v29, %v4420_v15 }
0x1f14   : > { %v4435_v33 = vmul.f32 %v7487_v30, %v4428_v31  ;;  %v7492_v31 = vld [vmem:[#allocation10] ss:$0 sm:$0xff] }
0x1f16   : > { %v4442_v34 = vadd.f32 %v7488_v32, %v4435_v33  ;;  %v7493_v33 = vld [vmem:[%s10589_s3] ss:$0 sm:$0xff]  ;;  %s10591_s3 = smov 64  }
0x1f18   : > { %7974 = vmatmul.mubr.msk.f32.vlgmr.msra.gmra.mrb[38].mxu1 %vm1905_vm4, %v4442_v34 }
0x1f19   : > { %8019 = vmatprep.mubr.msk.f32.mxu1 %vm9203_vm0, %v9204_v1 }
0x1feb   : > { %v4523_v60 = vpop.f32.mrb[38].mxu1 }
0x1fec   : > { %v4524_v61 = vadd.f32 %v7489_v49, %v4523_v60  ;;  %v7975_v62 = vpop.f32.mrb[39].mxu1  ;;  %v4744_v49 = vld [vmem:[%s10594_s2] sm:$0xff] }
0x1fee   : > { %v4528_v63 = vmul.f32 0.044715, %v4524_v61  ;;  %v4527_v6 = vmul.f32 0.5, %v4524_v61 }
0x1ff0   : > { %v4529_v2 = vmul.f32 %v4528_v63, %v4524_v61 }
0x1ff2   : > { %v4530_v3 = vmul.f32 %v4529_v2, %v4524_v61 }
0x1ff4   : > { %v4531_v4 = vadd.f32 %v4530_v3, %v4524_v61 }
0x1ff6   : > { %v4532_v42 = vmul.f32 0.7978846, %v4531_v4 }
0x1ff8   : > { %8633 = vtanh.f32 %v4532_v42 }
0x2002   : > { %v8634_v5 = vpop.eup %8633 }
0x2003   : > { %v4534_v7 = vadd.f32 1.0, %v8634_v5 }
0x2005   : > { %v4535_v8 = vmul.f32 %v4534_v7, %v4527_v6 }
0x2007   : > { %8009 = vmatmul.mubr.f32.vlgmr.msra.gmra.mrb[24].mxu0 %v4535_v8 }
0x2008   : > { %8049 = vmatprep.mubr.msk.f32.mxu0 %vm9203_vm0, %v9204_v1  ;;  %8048 = vmatpush3.msra.mxu0 %v4744_v49 }
0x2009   : > { %8057 = vmatprep.subr.mxu0 %v9204_v1 }
0x20da   : > { %v4618_v11 = vpop.f32.mrb[24].mxu0 }
0x20db   : > { %v4622_v14 = vadd.f32 %v4618_v11, %v10066_v10  ;;  %v8010_v15 = vpop.f32.mrb[25].mxu0  ;;  %v8296_v10 = vpack.c.bf16 %v4661_v24, %v4660_v23 }
0x20dd   : > { %v10112_v16 = vadd.f32 %v7491_v12, %v4622_v14  ;;  %8297 = vmatpush3.bf16.msra.mxu1 %v8296_v10 }
0x20de   : > { %8298 = vmatprep.subr.bf16.mxu1 %v9202_v0 }
0x20df   : > { %v4633_v13 = vsel %vm1905_vm4, %v10112_v16, 0.0 }
0x20e0   : > { %4634 = vadd.xlane.f32.xlu1 %v4633_v13 }
0x20e1   : > { %8300 = vmatpush3.bf16.msra.mxu1 %v8299_v27 }
0x20e2   : > { %8022 = vmatprep.subr.mxu1 %v9204_v1 }
0x216d   : > { %v4635_v19 = vpop.xlane.xlu1 %4634 }
0x216e   : > { %v4636_v20 = vmul.f32 0.03125, %v4635_v19  ;;  %v4745_v19 = vld [vmem:[%s10594_s2 + $0x8] sm:$0xff] }
0x2170   : > { %v4637_v21 = vsub.f32 %v10112_v16, %v4636_v20 }
0x2172   : > { %v4638_v18 = vmul.f32 %v4637_v21, %v4637_v21 }
0x2174   : > { %v4639_v22 = vsel %vm1905_vm4, %v4638_v18, 0.0 }
0x2175   : > { %4640 = vadd.xlane.f32.xlu1 %v4639_v22 }
0x2202   : > { %v4641_v17 = vpop.xlane.xlu1 %4640 }
0x2203   : > { %v4642_v28 = vmul.f32 0.03125, %v4641_v17 }
0x2205   : > { %v4643_v29 = vadd.f32 1e-05, %v4642_v28 }
0x2207   : > { %8635 = vrsqrt.f32 %v4643_v29 }
0x2211   : > { %v8636_v30 = vpop.eup %8635 }
0x2212   : > { %v4645_v32 = vmul.f32 %v8636_v30, %v4637_v21 }
0x2214   : > { %v4652_v34 = vmul.f32 %v7492_v31, %v4645_v32 }
0x2216   : > { %v4659_v35 = vadd.f32 %v7493_v33, %v4652_v34 }
0x2218   : > { %8020 = vmatmul.mubr.msk.f32.vlgmr.msra.gmra.mrb[40].mxu1 %vm1905_vm4, %v4659_v35 }
0x2219   : > { %8024 = vmatprep.mubr.msk.f32.mxu1 %vm9203_vm0, %v9204_v1 }
0x22eb   : > { %v4740_v37 = vpop.f32.mrb[40].mxu1 }
0x22ec   : > { %v10128_v38 = vadd.f32 %v7494_v36, %v4740_v37  ;;  %v8021_v39 = vpop.f32.mrb[41].mxu1 }
0x22ee   : > { %4750 = vrot.lane.b32.xlu0 %v10128_v38, %s10590_s4  ;;  %s10592_s4 = smov 88  }
0x2360   : > { %v4751_v40 = vpop.permute.xlu0 %4750 }
0x2361   : > { %8023 = vmatpush3.xpose.msk.msra.mxu1 %vm2371_vm9, %v4751_v40  ;;  %v4746_v40 = vld [vmem:[%s10594_s2 + $0x10] sm:$0xff] }
0x2362   : > { %8027 = vmatprep.subr.mxu1 %v9204_v1 }
0x2364   : > { %8025 = vmatmul.mubr.msk.f32.vlgmr.msra.gmra.mrb[42].mxu1 %vm2371_vm9, %v10128_v38 }
0x2365   : > { %8029 = vmatprep.mubr.msk.f32.mxu1 %vm9203_vm0, %v9204_v1 }
0x2437   : > { %v4822_v41 = vpop.f32.mrb[42].mxu1 }
0x2438   : > { %v4823_v43 = vadd.f32 %v4822_v41, %v9859_v50  ;;  %v8026_v44 = vpop.f32.mrb[43].mxu1 }
0x243a   : > { %v4826_v45 = vsel %vm2371_vm9, %v4823_v43, -inf }
0x243b   : > { %4827 = vmax.xlane.f32.xlu1 %v4826_v45 }
0x244c   : > { %4837 = vrot.lane.b32.xlu1 %v10128_v38, %s10591_s3 }
0x2450   : > { %4915 = vrot.lane.b32.xlu1 %v10128_v38, %s10592_s4  ;;  %s10595_s4 = smov 56  }
0x2454   : > { %4913 = vrot.lane.b32.xlu1 %v10128_v38, %s10593_s1 }
0x24c8   : > { %v4828_v46 = vpop.xlane.xlu1 %4827 }
0x24c9   : > { %v4829_v52 = vsub.f32 %v4823_v43, %v4828_v46 }
0x24cb   : > { %v4830_v53 = vmul.f32 1.442695, %v4829_v52 }
0x24cc   : > { %v4838_v54 = vpop.permute.xlu1 %4837 }
0x24cd   : > { %8637 = vpow2.f32 %v4830_v53  ;;  %8028 = vmatpush3.msra.mxu1 %v4838_v54 }
0x24ce   : > { %8032 = vmatprep.subr.mxu1 %v9204_v1 }
0x24d0   : > { %v4916_v59 = vpop.permute.xlu1 %4915 }
0x24d4   : > { %v4914_v48 = vpop.permute.xlu1 %4913 }
0x24d7   : > { %v8638_v55 = vpop.eup %8637 }
0x24d8   : > { %v4832_v56 = vsel %vm2371_vm9, %v8638_v55, 0.0 }
0x24d9   : > { %4833 = vadd.xlane.f32.xlu0 %v4832_v56 }
0x2566   : > { %v4834_v57 = vpop.xlane.xlu0 %4833 }
0x2567   : > { %8639 = vrcp.f32 %v4834_v57 }
0x2571   : > { %v8640_v58 = vpop.eup %8639 }
0x2572   : > { %v4836_v47 = vmul.f32 %v8640_v58, %v8638_v55  ;;  %v4747_v58 = vld [vmem:[%s10594_s2 + $0x18] sm:$0xff]  ;;  %s10598_s2 = sld [smem:[#allocation64_spill]] }
0x2574   : > { %8030 = vmatmul.mubr.msk.f32.vlgmr.msra.gmra.mrb[44].mxu1 %vm2371_vm9, %v4836_v47 }
0x2575   : > { %8033 = vmatpush3.xpose.msk.msra.mxu1 %vm2371_vm9, %v4916_v59  ;;  %8034 = vmatprep.mubr.msk.f32.mxu1 %vm9203_vm0, %v9204_v1 }
0x2576   : > { %8037 = vmatprep.subr.mxu1 %v9204_v1 }
0x2578   : > { %8035 = vmatmul.mubr.msk.f32.vlgmr.msra.gmra.mrb[46].mxu1 %vm2371_vm9, %v4914_v48 }
0x2579   : > { %8039 = vmatprep.mubr.msk.f32.mxu1 %vm9203_vm0, %v9204_v1 }
0x2647   : > { %v4909_v60 = vpop.f32.mrb[44].mxu1 }
0x2648   : > { %v8031_v61 = vpop.f32.mrb[45].mxu1  ;;  %8050 = vmatmul.mubr.msk.f32.vlgmr.msra.gmra.mrb[26].mxu0 %vm2371_vm9, %v4909_v60 }
0x2649   : > { %8059 = vmatprep.mubr.msk.f32.mxu0 %vm9203_vm0, %v9204_v1 }
0x264b   : > { %v4987_v62 = vpop.f32.mrb[46].mxu1 }
0x264c   : > { %v4988_v63 = vadd.f32 %v4987_v62, %v9859_v50  ;;  %v8036_v2 = vpop.f32.mrb[47].mxu1 }
0x264e   : > { %v4991_v3 = vsel %vm2371_vm9, %v4988_v63, -inf }
0x264f   : > { %4992 = vmax.xlane.f32.xlu1 %v4991_v3 }
0x26dc   : > { %v4993_v4 = vpop.xlane.xlu1 %4992 }
0x26dd   : > { %v4994_v42 = vsub.f32 %v4988_v63, %v4993_v4  ;;  %v7512_v63 = vld [vmem:[#allocation17] ss:$0 sm:$0xff] }
0x26df   : > { %v4995_v5 = vmul.f32 1.442695, %v4994_v42 }
0x26e1   : > { %8641 = vpow2.f32 %v4995_v5 }
0x26eb   : > { %v8642_v6 = vpop.eup %8641 }
0x26ec   : > { %v4997_v7 = vsel %vm2371_vm9, %v8642_v6, 0.0 }
0x26ed   : > { %4998 = vadd.xlane.f32.xlu0 %v4997_v7 }
0x2703   : > { %5002 = vrot.lane.b32.xlu0 %v10128_v38, %s10595_s4 }
0x2707   : > { %5226 = vrot.lane.b32.xlu0 %v10128_v38, %s10579_s18  ;;  %s10596_s18 = smov 48  }
0x270b   : > { %5224 = vrot.lane.b32.xlu0 %v10128_v38, %s10576_s15 }
0x271b   : > { %v5220_v8 = vpop.f32.mrb[26].mxu0 }
0x271c   : > { %v8051_v11 = vpop.f32.mrb[27].mxu0 }
0x277a   : > { %v4999_v12 = vpop.xlane.xlu0 %4998 }
0x277b   : > { %8643 = vrcp.f32 %v4999_v12 }
0x277e   : > { %v5003_v14 = vpop.permute.xlu0 %5002 }
0x277f   : > { %8038 = vmatpush3.msra.mxu1 %v5003_v14 }
0x2780   : > { %8042 = vmatprep.subr.mxu1 %v9204_v1 }
0x2782   : > { %v5227_v20 = vpop.permute.xlu0 %5226 }
0x2785   : > { %v8644_v15 = vpop.eup %8643 }
0x2786   : > { %v5001_v13 = vmul.f32 %v8644_v15, %v8642_v6  ;;  %v5225_v22 = vpop.permute.xlu0 %5224  ;;  %v5739_v15 = vld [vmem:[%s10598_s2] sm:$0xff] }
0x2788   : > { %8040 = vmatmul.mubr.msk.f32.vlgmr.msra.gmra.mrb[48].mxu1 %vm2371_vm9, %v5001_v13 }
0x2789   : > { %8043 = vmatpush3.msra.mxu1 %v4745_v19  ;;  %8044 = vmatprep.mubr.msk.f32.mxu1 %vm9203_vm0, %v9204_v1  ;;  %v5741_v19 = vld [vmem:[%s10598_s2 + $0x10] sm:$0xff] }
0x278a   : > { %8052 = vmatprep.subr.mxu1 %v9204_v1 }
0x285b   : > { %v5074_v21 = vpop.f32.mrb[48].mxu1 }
0x285c   : > { %v8041_v18 = vpop.f32.mrb[49].mxu1  ;;  %8045 = vmatmul.mubr.msk.f32.vlgmr.msra.gmra.mrb[50].mxu1 %vm2371_vm9, %v5074_v21 }
0x285d   : > { %8053 = vmatpush3.xpose.msk.msra.mxu1 %vm2371_vm9, %v5227_v20  ;;  %8054 = vmatprep.mubr.msk.f32.mxu1 %vm9203_vm0, %v9204_v1  ;;  %v5742_v20 = vld [vmem:[%s10598_s2 + $0x18] sm:$0xff] }
0x285e   : > { %8062 = vmatprep.subr.mxu1 %v9204_v1  ;;  %v8305_v21 = vpack.c.bf16 %v5742_v20, %v5741_v19 }
0x2860   : > { %8055 = vmatmul.mubr.msk.f32.vlgmr.msra.gmra.mrb[52].mxu1 %vm2371_vm9, %v5225_v22 }
0x2861   : > { %8064 = vmatprep.mubr.msk.f32.mxu1 %vm9203_vm0, %v9204_v1  ;;  %8063 = vmatpush3.msra.mxu1 %v4746_v40 }
0x2862   : > { %8072 = vmatprep.subr.mxu1 %v9204_v1 }
0x292f   : > { %v5147_v23 = vpop.f32.mrb[50].mxu1 }
0x2930   : > { %v5221_v24 = vadd.f32 %v5220_v8, %v5147_v23  ;;  %v8046_v10 = vpop.f32.mrb[51].mxu1 }
0x2933   : > { %v5298_v25 = vpop.f32.mrb[52].mxu1 }
0x2934   : > { %v5299_v26 = vadd.f32 %v5298_v25, %v9859_v50  ;;  %v8056_v27 = vpop.f32.mrb[53].mxu1  ;;  %v7513_v25 = vld [vmem:[#allocation13] ss:$0 sm:$0xff] }
0x2935   : > { %v7514_v27 = vld [vmem:[#allocation11] ss:$0 sm:$0xff] }
0x2936   : > { %v5302_v17 = vsel %vm2371_vm9, %v5299_v26, -inf }
0x2937   : > { %5303 = vmax.xlane.f32.xlu1 %v5302_v17 }
0x2948   : > { %5313 = vrot.lane.b32.xlu1 %v10128_v38, %s10596_s18 }
0x294c   : > { %5465 = vrot.lane.b32.xlu1 %v10128_v38, %s10580_s26  ;;  %s10597_s26 = smov 40  }
0x2950   : > { %5463 = vrot.lane.b32.xlu1 %v10128_v38, %s10578_s23 }
0x29c4   : > { %v5304_v28 = vpop.xlane.xlu1 %5303 }
0x29c5   : > { %v5305_v29 = vsub.f32 %v5299_v26, %v5304_v28 }
0x29c7   : > { %v5306_v30 = vmul.f32 1.442695, %v5305_v29 }
0x29c8   : > { %v5314_v31 = vpop.permute.xlu1 %5313 }
0x29c9   : > { %8645 = vpow2.f32 %v5306_v30  ;;  %8058 = vmatpush3.msra.mxu0 %v5314_v31  ;;  %v7515_v30 = vld [vmem:[%s10599_s5] ss:$0 sm:$0xff]  ;;  %s9218_s5 = smov 24  }
0x29ca   : > { %8067 = vmatprep.subr.mxu0 %v9204_v1 }
0x29cc   : > { %v5466_v36 = vpop.permute.xlu1 %5465 }
0x29d0   : > { %v5464_v39 = vpop.permute.xlu1 %5463 }
0x29d3   : > { %v8646_v32 = vpop.eup %8645 }
0x29d4   : > { %v5308_v33 = vsel %vm2371_vm9, %v8646_v32, 0.0 }
0x29d5   : > { %5309 = vadd.xlane.f32.xlu0 %v5308_v33 }
0x2a62   : > { %v5310_v34 = vpop.xlane.xlu0 %5309 }
0x2a63   : > { %8647 = vrcp.f32 %v5310_v34 }
0x2a6d   : > { %v8648_v35 = vpop.eup %8647 }
0x2a6e   : > { %v5312_v37 = vmul.f32 %v8648_v35, %v8646_v32 }
0x2a70   : > { %8060 = vmatmul.mubr.msk.f32.vlgmr.msra.gmra.mrb[28].mxu0 %vm2371_vm9, %v5312_v37 }
0x2a71   : > { %8068 = vmatpush3.xpose.msk.msra.mxu0 %vm2371_vm9, %v5466_v36  ;;  %8069 = vmatprep.mubr.msk.f32.mxu0 %vm9203_vm0, %v9204_v1 }
0x2a72   : > { %8077 = vmatprep.subr.mxu0 %v9204_v1 }
0x2a74   : > { %8070 = vmatmul.mubr.msk.f32.vlgmr.msra.gmra.mrb[30].mxu0 %vm2371_vm9, %v5464_v39 }
0x2a75   : > { %8079 = vmatprep.mubr.msk.f32.mxu0 %vm9203_vm0, %v9204_v1  ;;  %8078 = vmatpush3.msra.mxu0 %v4747_v58 }
0x2a76   : > { %8093 = vmatprep.subr.mxu0 %v9204_v1 }
0x2b43   : > { %v5385_v41 = vpop.f32.mrb[28].mxu0 }
0x2b44   : > { %v8061_v43 = vpop.f32.mrb[29].mxu0  ;;  %8065 = vmatmul.mubr.msk.f32.vlgmr.msra.gmra.mrb[54].mxu1 %vm2371_vm9, %v5385_v41 }
0x2b45   : > { %8074 = vmatprep.mubr.msk.f32.mxu1 %vm9203_vm0, %v9204_v1 }
0x2b47   : > { %v5537_v44 = vpop.f32.mrb[30].mxu0 }
0x2b48   : > { %v5538_v45 = vadd.f32 %v5537_v44, %v9859_v50  ;;  %v8071_v46 = vpop.f32.mrb[31].mxu0 }
0x2b4a   : > { %v5541_v52 = vsel %vm2371_vm9, %v5538_v45, -inf }
0x2b4b   : > { %5542 = vmax.xlane.f32.xlu1 %v5541_v52 }
0x2bd8   : > { %v5543_v53 = vpop.xlane.xlu1 %5542 }
0x2bd9   : > { %v5544_v54 = vsub.f32 %v5538_v45, %v5543_v53 }
0x2bdb   : > { %v5545_v55 = vmul.f32 1.442695, %v5544_v54 }
0x2bdd   : > { %8649 = vpow2.f32 %v5545_v55 }
0x2be7   : > { %v8650_v56 = vpop.eup %8649 }
0x2be8   : > { %v5547_v57 = vsel %vm2371_vm9, %v8650_v56, 0.0 }
0x2be9   : > { %5548 = vadd.xlane.f32.xlu0 %v5547_v57 }
0x2bff   : > { %5552 = vrot.lane.b32.xlu0 %v10128_v38, %s10597_s26 }
0x2c17   : > { %v5458_v50 = vpop.f32.mrb[54].mxu1 }
0x2c18   : > { %v5462_v59 = vadd.f32 %v5458_v50, %v5221_v24  ;;  %v8066_v47 = vpop.f32.mrb[55].mxu1 }
0x2c76   : > { %v5549_v48 = vpop.xlane.xlu0 %5548 }
0x2c77   : > { %8651 = vrcp.f32 %v5549_v48 }
0x2c7a   : > { %v5553_v49 = vpop.permute.xlu0 %5552 }
0x2c7b   : > { %8073 = vmatpush3.msra.mxu1 %v5553_v49 }
0x2c7c   : > { %8301 = vmatprep.subr.bf16.mxu1 %v9202_v0 }
0x2c81   : > { %v8652_v60 = vpop.eup %8651 }
0x2c82   : > { %v5551_v61 = vmul.f32 %v8652_v60, %v8650_v56 }
0x2c84   : > { %8075 = vmatmul.mubr.msk.f32.vlgmr.msra.gmra.mrb[56].mxu1 %vm2371_vm9, %v5551_v61 }
0x2c85   : > { %8090 = vmatprep.mubr.msk.f32.mxu1 %vm9203_vm0, %v9204_v1 }
0x2d57   : > { %v5624_v38 = vpop.f32.mrb[56].mxu1 }
0x2d58   : > { %v8076_v62 = vpop.f32.mrb[57].mxu1  ;;  %8080 = vmatmul.mubr.msk.f32.vlgmr.msra.gmra.mrb[32].mxu0 %vm2371_vm9, %v5624_v38 }
0x2d59   : > { %8095 = vmatprep.mubr.msk.f32.mxu0 %vm9203_vm0, %v9204_v1 }
0x2e2b   : > { %v5697_v2 = vpop.f32.mrb[32].mxu0 }
0x2e2c   : > { %v5701_v3 = vadd.f32 %v5697_v2, %v5462_v59  ;;  %v8081_v4 = vpop.f32.mrb[33].mxu0 }
0x2e2e   : > { %v5708_v42 = vadd.f32 %v7512_v63, %v5701_v3 }
0x2e30   : > { %v10222_v5 = vadd.f32 %v5708_v42, %v10112_v16  ;;  %v5740_v16 = vld [vmem:[%s10598_s2 + $0x8] sm:$0xff] }
0x2e31   : > { %v8302_v13 = vpack.c.bf16 %v5740_v16, %v5739_v15 }
0x2e32   : > { %v5712_v6 = vsel %vm1905_vm4, %v10222_v5, 0.0 }
0x2e33   : > { %5713 = vadd.xlane.f32.xlu0 %v5712_v6  ;;  %8303 = vmatpush3.bf16.msra.mxu1 %v8302_v13 }
0x2e34   : > { %8304 = vmatprep.subr.bf16.mxu1 %v9202_v0 }
0x2e37   : > { %8306 = vmatpush3.bf16.msra.mxu1 %v8305_v21 }
0x2e38   : > { %8103 = vmatprep.subr.mxu1 %v9204_v1 }
0x2ec0   : > { %v5714_v7 = vpop.xlane.xlu0 %5713 }
0x2ec1   : > { %v5715_v8 = vmul.f32 0.03125, %v5714_v7 }
0x2ec3   : > { %v5716_v11 = vsub.f32 %v10222_v5, %v5715_v8 }
0x2ec5   : > { %v5717_v12 = vmul.f32 %v5716_v11, %v5716_v11 }
0x2ec7   : > { %v5718_v14 = vsel %vm1905_vm4, %v5717_v12, 0.0 }
0x2ec8   : > { %5719 = vadd.xlane.f32.xlu1 %v5718_v14 }
0x2ed9   : > { %5828 = vrot.lane.b32.xlu1 %v9938_v9, %s10591_s3  ;;  %s10600_s3 = sld [smem:[#allocation63_spill]] }
0x2edd   : > { %5995 = vrot.lane.b32.xlu1 %v9938_v9, %s10595_s4  ;;  %s10601_s4 = sld [smem:[#allocation61_spill]] }
0x2edf   : > { %v5823_v63 = vld [vmem:[%s10600_s3] sm:$0xff]  ;;  %v5824_v2 = vld [vmem:[%s10600_s3 + $0x8] sm:$0xff] }
0x2f55   : > { %v5720_v18 = vpop.xlane.xlu1 %5719 }
0x2f56   : > { %v5721_v22 = vmul.f32 0.03125, %v5720_v18 }
0x2f58   : > { %v5722_v23 = vadd.f32 1e-05, %v5721_v22 }
0x2f59   : > { %v5829_v24 = vpop.permute.xlu1 %5828 }
0x2f5a   : > { %8653 = vrsqrt.f32 %v5722_v23  ;;  %8094 = vmatpush3.xpose.msk.msra.mxu0 %vm2371_vm9, %v5829_v24 }
0x2f5b   : > { %8098 = vmatprep.subr.mxu0 %v9204_v1 }
0x2f5d   : > { %v5996_v29 = vpop.permute.xlu1 %5995 }
0x2f64   : > { %v8654_v10 = vpop.eup %8653 }
0x2f65   : > { %v5724_v26 = vmul.f32 %v8654_v10, %v5716_v11 }
0x2f67   : > { %v5731_v17 = vmul.f32 %v7513_v25, %v5724_v26 }
0x2f69   : > { %v5738_v28 = vadd.f32 %v7514_v27, %v5731_v17 }
0x2f6b   : > { %8091 = vmatmul.mubr.msk.f32.vlgmr.msra.gmra.mrb[58].mxu1 %vm1905_vm4, %v5738_v28 }
0x2f6c   : > { %8104 = vmatpush3.xpose.msk.msra.mxu1 %vm2371_vm9, %v5996_v29  ;;  %8105 = vmatprep.mubr.msk.f32.mxu1 %vm9203_vm0, %v9204_v1 }
0x2f6d   : > { %8113 = vmatprep.subr.mxu1 %v9204_v1 }
0x303e   : > { %v5819_v31 = vpop.f32.mrb[58].mxu1 }
0x303f   : > { %v10246_v32 = vadd.f32 %v7515_v30, %v5819_v31  ;;  %v8092_v33 = vpop.f32.mrb[59].mxu1  ;;  %v5825_v30 = vld [vmem:[%s10600_s3 + $0x10] sm:$0xff] }
0x3041   : > { %5993 = vrot.lane.b32.xlu0 %v10246_v32, %s10593_s1  ;;  %8096 = vmatmul.mubr.msk.f32.vlgmr.msra.gmra.mrb[34].mxu0 %vm2371_vm9, %v10246_v32  ;;  %s9219_s1 = smov 32  }
0x3042   : > { %8100 = vmatprep.mubr.msk.f32.mxu0 %vm9203_vm0, %v9204_v1 }
0x30b3   : > { %v5994_v34 = vpop.permute.xlu0 %5993 }
0x30b4   : > { %8106 = vmatmul.mubr.msk.f32.vlgmr.msra.gmra.mrb[60].mxu1 %vm2371_vm9, %v5994_v34 }
0x30b5   : > { %8115 = vmatprep.mubr.msk.f32.mxu1 %vm9203_vm0, %v9204_v1  ;;  %8114 = vmatpush3.msra.mxu1 %v5824_v2 }
0x30b6   : > { %8123 = vmatprep.subr.mxu1 %v9204_v1 }
0x3114   : > { %v5901_v35 = vpop.f32.mrb[34].mxu0 }
0x3115   : > { %v5902_v36 = vadd.f32 %v5901_v35, %v9984_v51  ;;  %v8097_v37 = vpop.f32.mrb[35].mxu0 }
0x3117   : > { %v5905_v39 = vsel %vm3524_vm12, %v5902_v36, -inf }
0x3118   : > { %5906 = vmax.xlane.f32.xlu1 %v5905_v39 }
0x3187   : > { %v6067_v40 = vpop.f32.mrb[60].mxu1 }
0x3188   : > { %v6068_v41 = vadd.f32 %v6067_v40, %v9984_v51  ;;  %v8107_v43 = vpop.f32.mrb[61].mxu1 }
0x318a   : > { %v6071_v44 = vsel %vm3524_vm12, %v6068_v41, -inf }
0x318b   : > { %6072 = vmax.xlane.f32.xlu0 %v6071_v44  ;;  %v5826_v44 = vld [vmem:[%s10600_s3 + $0x18] sm:$0xff] }
0x31a1   : > { %6082 = vrot.lane.b32.xlu0 %v9938_v9, %s9218_s5  ;;  %s10604_s5 = sld [smem:[#allocation68_spill]] }
0x31a5   : > { %v5907_v45 = vpop.xlane.xlu1 %5906 }
0x31a6   : > { %v5908_v46 = vsub.f32 %v5902_v36, %v5907_v45 }
0x31a8   : > { %v5909_v52 = vmul.f32 1.442695, %v5908_v46 }
0x31aa   : > { %8655 = vpow2.f32 %v5909_v52 }
0x31b4   : > { %v8656_v53 = vpop.eup %8655 }
0x31b5   : > { %v5911_v54 = vsel %vm3524_vm12, %v8656_v53, 0.0 }
0x31b6   : > { %5912 = vadd.xlane.f32.xlu1 %v5911_v54 }
0x3218   : > { %v6073_v55 = vpop.xlane.xlu0 %6072 }
0x3219   : > { %v6074_v56 = vsub.f32 %v6068_v41, %v6073_v55 }
0x321b   : > { %v6075_v57 = vmul.f32 1.442695, %v6074_v56 }
0x321c   : > { %v6083_v61 = vpop.permute.xlu0 %6082 }
0x321d   : > { %8657 = vpow2.f32 %v6075_v57  ;;  %v7537_v57 = vld [vmem:[%s10601_s4] ss:$0 sm:$0xff]  ;;  %s10608_s4 = sld [smem:[#allocation40_spill]] }
0x3227   : > { %v8658_v58 = vpop.eup %8657 }
0x3228   : > { %v6077_v50 = vsel %vm3524_vm12, %v8658_v58, 0.0 }
0x3229   : > { %6078 = vadd.xlane.f32.xlu1 %v6077_v50 }
0x323a   : > { %5916 = vrot.lane.b32.xlu1 %v9938_v9, %s9219_s1  ;;  %s10605_s1 = sld [smem:[#allocation65_spill]] }
0x323e   : > { %6307 = vrot.lane.b32.xlu1 %v9938_v9, %s10596_s18  ;;  %s10602_s18 = sld [smem:[#allocation67_spill]] }
0x3242   : > { %6305 = vrot.lane.b32.xlu1 %v10246_v32, %s10576_s15  ;;  %s9220_s15 = smov 16  }
0x3243   : > { %v5913_v59 = vpop.xlane.xlu1 %5912 }
0x3244   : > { %8659 = vrcp.f32 %v5913_v59  ;;  %v6822_v2 = vld [vmem:[%s10602_s18] sm:$0xff] }
0x324e   : > { %v8660_v48 = vpop.eup %8659 }
0x324f   : > { %v5915_v49 = vmul.f32 %v8660_v48, %v8656_v53 }
0x32b6   : > { %v6079_v47 = vpop.xlane.xlu1 %6078 }
0x32b7   : > { %8661 = vrcp.f32 %v6079_v47 }
0x32ba   : > { %v5917_v60 = vpop.permute.xlu1 %5916 }
0x32bb   : > { %8099 = vmatpush3.msk.msra.mxu0 %vm3541_vm13, %v5917_v60 }
0x32bc   : > { %8101 = vmatmul.mubr.msk.f32.vlgmr.msra.gmra.mrb[36].mxu0 %vm3524_vm12, %v5915_v49  ;;  %8108 = vmatprep.subr.mxu0 %v9204_v1 }
0x32bd   : > { %8109 = vmatpush3.msk.msra.mxu0 %vm3541_vm13, %v6083_v61  ;;  %8110 = vmatprep.mubr.msk.f32.mxu0 %vm9203_vm0, %v9204_v1 }
0x32be   : > { %8118 = vmatprep.subr.mxu0 %v9204_v1  ;;  %v6308_v42 = vpop.permute.xlu1 %6307 }
0x32c1   : > { %v8662_v38 = vpop.eup %8661 }
0x32c2   : > { %v6081_v62 = vmul.f32 %v8662_v38, %v8658_v58  ;;  %v6306_v8 = vpop.permute.xlu1 %6305 }
0x32c4   : > { %8111 = vmatmul.mubr.msk.f32.vlgmr.msra.gmra.mrb[38].mxu0 %vm3524_vm12, %v6081_v62 }
0x32c5   : > { %8120 = vmatprep.mubr.msk.f32.mxu0 %vm9203_vm0, %v9204_v1  ;;  %8119 = vmatpush3.msra.mxu0 %v5823_v63 }
0x32c6   : > { %8128 = vmatprep.subr.mxu0 %v9204_v1 }
0x338f   : > { %v5989_v3 = vpop.f32.mrb[36].mxu0 }
0x3390   : > { %v8102_v4 = vpop.f32.mrb[37].mxu0  ;;  %8121 = vmatmul.mubr.msk.f32.vlgmr.msra.gmra.mrb[40].mxu0 %vm2371_vm9, %v5989_v3 }
0x3391   : > { %8130 = vmatprep.mubr.msk.f32.mxu0 %vm9203_vm0, %v9204_v1 }
0x3397   : > { %v6155_v6 = vpop.f32.mrb[38].mxu0 }
0x3398   : > { %v8112_v7 = vpop.f32.mrb[39].mxu0  ;;  %8116 = vmatmul.mubr.msk.f32.vlgmr.msra.gmra.mrb[62].mxu1 %vm2371_vm9, %v6155_v6 }
0x3399   : > { %8124 = vmatpush3.xpose.msk.msra.mxu1 %vm2371_vm9, %v6308_v42  ;;  %8125 = vmatprep.mubr.msk.f32.mxu1 %vm9203_vm0, %v9204_v1  ;;  %v6915_v7 = vld [vmem:[%s10604_s5] sm:$0xff] }
0x339a   : > { %8133 = vmatprep.subr.mxu1 %v9204_v1 }
0x339c   : > { %8126 = vmatmul.mubr.msk.f32.vlgmr.msra.gmra.mrb[64].mxu1 %vm2371_vm9, %v6306_v8  ;;  %v6916_v8 = vld [vmem:[%s10604_s5 + $0x8] sm:$0xff] }
0x339d   : > { %8135 = vmatprep.mubr.msk.f32.mxu1 %vm9203_vm0, %v9204_v1  ;;  %8134 = vmatpush3.msra.mxu1 %v5825_v30 }
0x339e   : > { %8143 = vmatprep.subr.mxu1 %v9204_v1 }
0x3463   : > { %v6301_v11 = vpop.f32.mrb[40].mxu0 }
0x3464   : > { %v8122_v12 = vpop.f32.mrb[41].mxu0 }
0x346b   : > { %v6228_v14 = vpop.f32.mrb[62].mxu1 }
0x346c   : > { %v6302_v15 = vadd.f32 %v6301_v11, %v6228_v14  ;;  %v8117_v16 = vpop.f32.mrb[63].mxu1  ;;  %v8314_v11 = vpack.c.bf16 %v6916_v8, %v6915_v7 }
0x346f   : > { %v6379_v13 = vpop.f32.mrb[64].mxu1 }
0x3470   : > { %v6380_v19 = vadd.f32 %v6379_v13, %v9984_v51  ;;  %v8127_v20 = vpop.f32.mrb[65].mxu1  ;;  %v7538_v13 = vld [vmem:[#allocation16] ss:$0 sm:$0xff] }
0x3471   : > { %v7539_v20 = vld [vmem:[#allocation14] ss:$0 sm:$0xff] }
0x3472   : > { %v6383_v21 = vsel %vm3524_vm12, %v6380_v19, -inf }
0x3473   : > { %6384 = vmax.xlane.f32.xlu1 %v6383_v21 }
0x3484   : > { %6394 = vrot.lane.b32.xlu1 %v9938_v9, %s9220_s15  ;;  %s10606_s15 = sld [smem:[#allocation66_spill]] }
0x3488   : > { %6545 = vrot.lane.b32.xlu1 %v10246_v32, %s10578_s23  ;;  %s9221_s23 = smov 8  }
0x3500   : > { %v6385_v18 = vpop.xlane.xlu1 %6384 }
0x3501   : > { %v6386_v22 = vsub.f32 %v6380_v19, %v6385_v18 }
0x3503   : > { %v6387_v23 = vmul.f32 1.442695, %v6386_v22  ;;  %v6917_v22 = vld [vmem:[%s10604_s5 + $0x10] sm:$0xff] }
0x3504   : > { %v6395_v24 = vpop.permute.xlu1 %6394 }
0x3505   : > { %8663 = vpow2.f32 %v6387_v23  ;;  %8129 = vmatpush3.msk.msra.mxu0 %vm3541_vm13, %v6395_v24  ;;  %v6918_v23 = vld [vmem:[%s10604_s5 + $0x18] sm:$0xff] }
0x3506   : > { %8138 = vmatprep.subr.mxu0 %v9204_v1  ;;  %v8317_v24 = vpack.c.bf16 %v6918_v23, %v6917_v22 }
0x3508   : > { %v6546_v29 = vpop.permute.xlu1 %6545 }
0x350f   : > { %v8664_v10 = vpop.eup %8663 }
0x3510   : > { %v6389_v25 = vsel %vm3524_vm12, %v8664_v10, 0.0 }
0x3511   : > { %6390 = vadd.xlane.f32.xlu0 %v6389_v25  ;;  %v6920_v25 = vld [vmem:[%s10604_s5 + $0x28] sm:$0xff] }
0x3527   : > { %6547 = vrot.lane.b32.xlu0 %v9938_v9, %s10597_s26  ;;  %s10603_s26 = smov %s10602_s18  ;;  %s1780_s18 = sand.u32 1, %s9123_s16  }
0x3528   : > { %v6823_v3 = vld [vmem:[%s10603_s26 + $0x8] sm:$0xff]  ;;  %v6825_v42 = vld [vmem:[%s10603_s26 + $0x18] sm:$0xff]  ;;  %s7125_s6 = scalar_lea.sflag [#allocation4], %s1780_s18 }
0x3529   : > { %v8308_v4 = vpack.c.bf16 %v6823_v3, %v6822_v2 }
0x359e   : > { %v6391_v26 = vpop.xlane.xlu0 %6390 }
0x359f   : > { %8665 = vrcp.f32 %v6391_v26 }
0x35a2   : > { %v6548_v28 = vpop.permute.xlu0 %6547 }
0x35a9   : > { %v8666_v27 = vpop.eup %8665 }
0x35aa   : > { %v6393_v17 = vmul.f32 %v8666_v27, %v8664_v10  ;;  %v6919_v10 = vld [vmem:[%s10604_s5 + $0x20] sm:$0xff]  ;;  %v6921_v27 = vld [vmem:[%s10604_s5 + $0x30] sm:$0xff] }
0x35ab   : > { %v8320_v26 = vpack.c.bf16 %v6920_v25, %v6919_v10 }
0x35ac   : > { %8131 = vmatmul.mubr.msk.f32.vlgmr.msra.gmra.mrb[42].mxu0 %vm3524_vm12, %v6393_v17  ;;  %v6922_v17 = vld [vmem:[%s10604_s5 + $0x38] sm:$0xff] }
0x35ad   : > { %8139 = vmatpush3.xpose.msk.msra.mxu0 %vm2371_vm9, %v6548_v28  ;;  %8140 = vmatprep.mubr.msk.f32.mxu0 %vm9203_vm0, %v9204_v1  ;;  %v8323_v28 = vpack.c.bf16 %v6922_v17, %v6921_v27 }
0x35ae   : > { %8148 = vmatprep.subr.mxu0 %v9204_v1 }
0x35b0   : > { %8141 = vmatmul.mubr.msk.f32.vlgmr.msra.gmra.mrb[44].mxu0 %vm2371_vm9, %v6546_v29  ;;  %v6924_v29 = vld [vmem:[%s10604_s5 + $0x48] sm:$0xff] }
0x35b1   : > { %8150 = vmatprep.mubr.msk.f32.mxu0 %vm9203_vm0, %v9204_v1  ;;  %8149 = vmatpush3.msra.mxu0 %v5826_v44 }
0x35b2   : > { %8313 = vmatprep.subr.bf16.mxu0 %v9202_v0 }
0x367f   : > { %v6467_v31 = vpop.f32.mrb[42].mxu0 }
0x3680   : > { %v8132_v32 = vpop.f32.mrb[43].mxu0  ;;  %8136 = vmatmul.mubr.msk.f32.vlgmr.msra.gmra.mrb[66].mxu1 %vm2371_vm9, %v6467_v31  ;;  %v6925_v31 = vld [vmem:[%s10604_s5 + $0x50] sm:$0xff] }
0x3681   : > { %8145 = vmatprep.mubr.msk.f32.mxu1 %vm9203_vm0, %v9204_v1  ;;  %v6926_v32 = vld [vmem:[%s10604_s5 + $0x58] sm:$0xff] }
0x3683   : > { %v6619_v33 = vpop.f32.mrb[44].mxu0 }
0x3684   : > { %v6620_v34 = vadd.f32 %v6619_v33, %v9984_v51  ;;  %v8142_v35 = vpop.f32.mrb[45].mxu0  ;;  %v8329_v33 = vpack.c.bf16 %v6926_v32, %v6925_v31 }
0x3685   : > { %v6928_v35 = vld [vmem:[%s10604_s5 + $0x68] sm:$0xff] }
0x3686   : > { %v6623_v36 = vsel %vm3524_vm12, %v6620_v34, -inf }
0x3687   : > { %6624 = vmax.xlane.f32.xlu1 %v6623_v36 }
0x3714   : > { %v6625_v37 = vpop.xlane.xlu1 %6624 }
0x3715   : > { %v6626_v39 = vsub.f32 %v6620_v34, %v6625_v37  ;;  %v6927_v34 = vld [vmem:[%s10604_s5 + $0x60] sm:$0xff]  ;;  %v6929_v37 = vld [vmem:[%s10604_s5 + $0x70] sm:$0xff] }
0x3716   : > { %v8332_v36 = vpack.c.bf16 %v6928_v35, %v6927_v34 }
0x3717   : > { %v6627_v40 = vmul.f32 1.442695, %v6626_v39  ;;  %v6930_v39 = vld [vmem:[%s10604_s5 + $0x78] sm:$0xff] }
0x3719   : > { %8667 = vpow2.f32 %v6627_v40  ;;  %v8335_v40 = vpack.c.bf16 %v6930_v39, %v6929_v37 }
0x3723   : > { %v8668_v41 = vpop.eup %8667 }
0x3724   : > { %v6629_v43 = vsel %vm3524_vm12, %v8668_v41, 0.0 }
0x3725   : > { %6630 = vadd.xlane.f32.xlu0 %v6629_v43 }
0x373b   : > { %6634 = vrot.lane.b32.xlu0 %v9938_v9, %s9221_s23  ;;  %s10607_s23 = sld [smem:[#allocation41_spill]] }
0x3741   : > { %v7039_v3 = vld [vmem:[%s10607_s23] sm:$0xff] }
0x3753   : > { %v6540_v51 = vpop.f32.mrb[66].mxu1 }
0x3754   : > { %v6544_v45 = vadd.f32 %v6540_v51, %v6302_v15  ;;  %v8137_v46 = vpop.f32.mrb[67].mxu1 }
0x37b2   : > { %v6631_v52 = vpop.xlane.xlu0 %6630 }
0x37b3   : > { %8669 = vrcp.f32 %v6631_v52 }
0x37b6   : > { %v6635_v53 = vpop.permute.xlu0 %6634 }
0x37b7   : > { %8144 = vmatpush3.msk.msra.mxu1 %vm3541_vm13, %v6635_v53 }
0x37b8   : > { %8307 = vmatprep.subr.bf16.mxu1 %v9202_v0 }
0x37bd   : > { %v8670_v54 = vpop.eup %8669 }
0x37be   : > { %v6633_v55 = vmul.f32 %v8670_v54, %v8668_v41  ;;  %v7540_v41 = vld [vmem:[%s10605_s1] ss:$0 sm:$0xff]  ;;  %s7428_s1 = sshll.u32 %s1780_s18, 3 }
0x37bf   : > { %s1782_s2 = scalar_lea.vmem [#allocation23], %s7428_s1 }
0x37c0   : > { %8146 = vmatmul.mubr.msk.f32.vlgmr.msra.gmra.mrb[68].mxu1 %vm3524_vm12, %v6633_v55  ;;  %s7138_s3 = sshll.u32 %s1782_s2, 4  ;;  %s10388_s3 = int_to_ptr.vmem [resolvable:$true] %s7138_s3 }
0x37c1   : > { %8161 = vmatprep.mubr.msk.f32.mxu1 %vm9203_vm0, %v9204_v1  ;;  %8309 = vmatpush3.bf16.msra.mxu1 %v8308_v4  ;;  %v7040_v4 = vld [vmem:[%s10607_s23 + $0x8] sm:$0xff]  ;;  %s9041_s8 = scalar_lea.vmem %s10388_s3, 128 }
0x37c2   : > { %8310 = vmatprep.subr.bf16.mxu1 %v9202_v0  ;;  %p9042_p2 = scmp.ne.s32.totalorder %s10388_s3, %s9041_s8 }
0x37c4   : > { %p9043_p3 = pnand %p9042_p2, %p10609_p0 }
0x37c6   : > { %p9044_p4 = pneg %p9043_p3 }
0x3893   : > { %v6707_v9 = vpop.f32.mrb[68].mxu1 }
0x3894   : > { %v8147_v56 = vpop.f32.mrb[69].mxu1  ;;  %8151 = vmatmul.mubr.msk.f32.vlgmr.msra.gmra.mrb[46].mxu0 %vm2371_vm9, %v6707_v9 }
0x3895   : > { %8196 = vmatprep.mubr.msk.f32.mxu0 %vm9203_vm0, %v9204_v1  ;;  %8315 = vmatpush3.bf16.msra.mxu0 %v8314_v11 }
0x3896   : > { %8316 = vmatprep.subr.bf16.mxu0 %v9202_v0 }
0x3899   : > { %8318 = vmatpush3.bf16.msra.mxu0 %v8317_v24 }
0x389a   : > { %8319 = vmatprep.subr.bf16.mxu0 %v9202_v0 }
0x389d   : > { %8321 = vmatpush3.bf16.msra.mxu0 %v8320_v26 }
0x389e   : > { %8322 = vmatprep.subr.bf16.mxu0 %v9202_v0 }
0x38a1   : > { %8324 = vmatpush3.bf16.msra.mxu0 %v8323_v28 }
0x38a2   : > { %8325 = vmatprep.subr.bf16.mxu0 %v9202_v0 }
0x3967   : > { %v6780_v58 = vpop.f32.mrb[46].mxu0 }
0x3968   : > { %v6784_v50 = vadd.f32 %v6780_v58, %v6544_v45  ;;  %v8152_v59 = vpop.f32.mrb[47].mxu0 }
0x396a   : > { %v6791_v47 = vadd.f32 %v7537_v57, %v6784_v50  ;;  %v7542_v50 = vld [vmem:[%s10606_s15] ss:$0 sm:$0xff]  ;;  %s7548_s15 = sshll.u32 %s9524_s0, 7  ;;  %s9222_s0 = smov [#allocation23]  }
0x396c   : > { %v10333_v48 = vadd.f32 %v6791_v47, %v10222_v5  ;;  %v6824_v5 = vld [vmem:[%s10603_s26 + $0x10] sm:$0xff] }
0x396d   : > { %v8311_v6 = vpack.c.bf16 %v6825_v42, %v6824_v5  ;;  %v8338_v5 = vpack.c.bf16 %v7040_v4, %v7039_v3  ;;  %v7042_v42 = vld [vmem:[%s10607_s23 + $0x18] sm:$0xff] }
0x396e   : > { %v6795_v49 = vsel %vm1905_vm4, %v10333_v48, 0.0 }
0x396f   : > { %6796 = vadd.xlane.f32.xlu1 %v6795_v49  ;;  %8312 = vmatpush3.bf16.msra.mxu1 %v8311_v6 }
0x3970   : > { %8337 = vmatprep.subr.bf16.mxu1 %v9202_v0 }
0x39fc   : > { %v6797_v60 = vpop.xlane.xlu1 %6796 }
0x39fd   : > { %v6798_v61 = vmul.f32 0.03125, %v6797_v60 }
0x39ff   : > { %v6799_v38 = vsub.f32 %v10333_v48, %v6798_v61 }
0x3a01   : > { %v6800_v62 = vmul.f32 %v6799_v38, %v6799_v38 }
0x3a03   : > { %v6801_v63 = vsel %vm1905_vm4, %v6800_v62, 0.0 }
0x3a04   : > { %6802 = vadd.xlane.f32.xlu1 %v6801_v63 }
0x3a91   : > { %v6803_v12 = vpop.xlane.xlu1 %6802 }
0x3a92   : > { %v6804_v14 = vmul.f32 0.03125, %v6803_v12 }
0x3a94   : > { %v6805_v15 = vadd.f32 1e-05, %v6804_v14  ;;  %v7543_v14 = vld [vmem:[#allocation22] ss:$0 sm:$0xff] }
0x3a96   : > { %8671 = vrsqrt.f32 %v6805_v15 }
0x3aa0   : > { %v8672_v16 = vpop.eup %8671 }
0x3aa1   : > { %v6807_v19 = vmul.f32 %v8672_v16, %v6799_v38  ;;  %v7544_v16 = vld [vmem:[#allocation20] ss:$0 sm:$0xff] }
0x3aa3   : > { %v6814_v21 = vmul.f32 %v7538_v13, %v6807_v19 }
0x3aa5   : > { %v6821_v18 = vadd.f32 %v7539_v20, %v6814_v21 }
0x3aa7   : > { %8162 = vmatmul.mubr.msk.f32.vlgmr.msra.gmra.mrb[70].mxu1 %vm1905_vm4, %v6821_v18 }
0x3aa8   : > { %8207 = vmatprep.mubr.msk.f32.mxu1 %vm9203_vm0, %v9204_v1  ;;  %v6923_v1 = vld [vmem:[%s10604_s5 + $0x40] sm:$0xff]  ;;  %8339 = vmatpush3.bf16.msra.mxu1 %v8338_v5  ;;  %s10386_s5 = scalar_lea.hbm %s9501_s21, %s7548_s15 }
0x3aa9   : > { %v8326_v30 = vpack.c.bf16 %v6924_v29, %v6923_v1  ;;  %8340 = vmatprep.subr.bf16.mxu1 %v9202_v0 }
0x3aab   : > { %8327 = vmatpush3.bf16.msra.mxu0 %v8326_v30 }
0x3aac   : > { %8328 = vmatprep.subr.bf16.mxu0 %v9202_v0 }
0x3aaf   : > { %8330 = vmatpush3.bf16.msra.mxu0 %v8329_v33 }
0x3ab0   : > { %8331 = vmatprep.subr.bf16.mxu0 %v9202_v0 }
0x3ab3   : > { %8333 = vmatpush3.bf16.msra.mxu0 %v8332_v36 }
0x3ab4   : > { %8334 = vmatprep.subr.bf16.mxu0 %v9202_v0  ;;  %v7545_v0 = vld [vmem:[%s10608_s4] ss:$0 sm:$0xff]  ;;  %s9045_s4 = sshll.u32 %s9222_s0, 4  ;;  %s9046_s4 = int_to_ptr.vmem [resolvable:$false] %s9045_s4 }
0x3ab5   : > { %s9047_s1 = scalar_lea.vmem %s9046_s4, 256  ;;  %p9048_p12 = scmp.lt.s32.totalorder %s10388_s3, %s9046_s4 }
0x3ab6   : > { %p9049_p5 = scmp.lt.s32.totalorder %s9047_s1, %s9041_s8 }
0x3ab7   : > { %8336 = vmatpush3.bf16.msra.mxu0 %v8335_v40 }
0x3ab8   : > { %p9050_p6 = por %p9049_p5, %p9048_p12 }
0x3aba   : > { %p9051_p9 = pnand %p9050_p6, %p9044_p4 }
0x3b7a   : > { %v6902_v43 = vpop.f32.mrb[70].mxu1 }
0x3b7b   : > { %v6903_v44 = vadd.f32 %v7540_v41, %v6902_v43  ;;  %v8163_v51 = vpop.f32.mrb[71].mxu1 }
0x3b7d   : > { %v6907_v45 = vmul.f32 0.044715, %v6903_v44  ;;  %v6906_v9 = vmul.f32 0.5, %v6903_v44 }
0x3b7f   : > { %v6908_v46 = vmul.f32 %v6907_v45, %v6903_v44 }
0x3b81   : > { %v6909_v52 = vmul.f32 %v6908_v46, %v6903_v44 }
0x3b83   : > { %v6910_v53 = vadd.f32 %v6909_v52, %v6903_v44 }
0x3b85   : > { %v6911_v54 = vmul.f32 0.7978846, %v6910_v53 }
0x3b87   : > { %8673 = vtanh.f32 %v6911_v54 }
0x3b91   : > { %v8674_v55 = vpop.eup %8673 }
0x3b92   : > { %v6913_v56 = vadd.f32 1.0, %v8674_v55 }
0x3b94   : > { %v6914_v57 = vmul.f32 %v6913_v56, %v6906_v9 }
0x3b96   : > { %8197 = vmatmul.mubr.f32.vlgmr.msra.gmra.mrb[48].mxu0 %v6914_v57 }
0x3c69   : > { %v6997_v58 = vpop.f32.mrb[48].mxu0 }
0x3c6a   : > { %v7001_v59 = vadd.f32 %v6997_v58, %v10333_v48  ;;  %v8198_v47 = vpop.f32.mrb[49].mxu0  ;;  %v7041_v48 = vld [vmem:[%s10607_s23 + $0x10] sm:$0xff] }
0x3c6b   : > { %v8341_v6 = vpack.c.bf16 %v7042_v42, %v7041_v48 }
0x3c6c   : > { %v7009_v49 = vadd.f32 %v7542_v50, %v7001_v59 }
0x3c6d   : > { %8342 = vmatpush3.bf16.msra.mxu1 %v8341_v6 }
0x3c6e   : > { %v7012_v60 = vsel %vm1905_vm4, %v7009_v49, 0.0 }
0x3c6f   : > { %7013 = vadd.xlane.f32.xlu1 %v7012_v60 }
0x3cfc   : > { %v7014_v61 = vpop.xlane.xlu1 %7013 }
0x3cfd   : > { %v7015_v38 = vmul.f32 0.03125, %v7014_v61 }
0x3cff   : > { %v7016_v62 = vsub.f32 %v7009_v49, %v7015_v38 }
0x3d01   : > { %v7017_v63 = vmul.f32 %v7016_v62, %v7016_v62 }
0x3d03   : > { %v7018_v2 = vsel %vm1905_vm4, %v7017_v63, 0.0 }
0x3d04   : > { %7019 = vadd.xlane.f32.xlu1 %v7018_v2 }
0x3d91   : > { %v7020_v7 = vpop.xlane.xlu1 %7019 }
0x3d92   : > { %v7021_v8 = vmul.f32 0.03125, %v7020_v7 }
0x3d94   : > { %v7022_v11 = vadd.f32 1e-05, %v7021_v8 }
0x3d96   : > { %8675 = vrsqrt.f32 %v7022_v11 }
0x3da0   : > { %v8676_v12 = vpop.eup %8675 }
0x3da1   : > { %v7024_v15 = vmul.f32 %v8676_v12, %v7016_v62 }
0x3da3   : > { %v7031_v13 = vmul.f32 %v7543_v14, %v7024_v15 }
0x3da5   : > { %v7038_v19 = vadd.f32 %v7544_v16, %v7031_v13 }
0x3da7   : > { %8208 = vmatmul.mubr.msk.f32.vlgmr.msra.gmra.mrb[72].mxu1 %vm1905_vm4, %v7038_v19 }
0x3e7a   : > { %v7119_v20 = vpop.f32.mrb[72].mxu1 }
0x3e7b   : > { %v7120_v21 = vadd.f32 %v7545_v0, %v7119_v20  ;;  %v8209_v18 = vpop.f32.mrb[73].mxu1 }
0x3e7d   : > { %7123 = vst [vmem:[%s1782_s2] sm:$0xff] %v7120_v21 }
0x3e7e   : > { %9054 = shalt.err (!%p9051_p9)
}
0x3e7f   : > { %s9055_s2 = scalar_lea.hbm %s10386_s5, 128  ;;  %s9059_s18 = scalar_lea.hbm %s9501_s21, 256 }
0x3e80   : > { %p9056_p10 = scmp.ne.s32.totalorder %s10386_s5, %s9055_s2  ;;  %p9060_p11 = scmp.lt.u32.totalorder %s10386_s5, %s9501_s21 }
0x3e81   : > { %p9061_p13 = scmp.lt.u32.totalorder %s9059_s18, %s9055_s2  ;;  %p9063_p2 = scmp.lt.u32.totalorder %s9055_s2, %s10386_s5 }
0x3e82   : > { %p9057_p7 = pnand %p9056_p10, %p10609_p0 }
0x3e83   : > { %p9062_p1 = por %p9061_p13, %p9060_p11 }
0x3e84   : > { %p9058_p8 = pneg %p9057_p7 }
0x3e85   : > { %p9064_p3 = por %p9063_p2, %p9062_p1 }
0x3e87   : > { %p9065_p4 = pnand %p9064_p3, %p9058_p8 }
0x3e89   : > { %9068 = shalt.err (!%p9065_p4)
}
0x3e8a   : > { %8395 = dma.vmem_to_hbm [thread:$0]  (%p10609_p0), %s10388_s3, 128, %s10386_s5, %s7125_s6  }
0x3e8b PF: > { %s10610_s8 = sld [smem:[#allocation75_spill]]  ;;  %s10611_s15 = sld [smem:[#allocation79_spill]] }
0x3e8c   : > { %p8467_p12 = scmp.ge.s32.totalorder %s9131_s22, 2 }
0x3e91   : > { %s7150_s0 = sand.u32 1, %s10610_s8   ;;  %p10612_p5 = scmp.ne.s32.totalorder %s10611_s15, 0 }
0x3e92   : > { %s7151_s4 = scalar_lea.sflag [#allocation4], %s7150_s0 }
0x3e93   : > { %p8438_p6 = pnand %p8467_p12, %p10612_p5 }
0x3e95   : > { %9114 = dma.done.wait (!%p8438_p6), %s7151_s4, 128  }
0x3e96   : > { %9116 = vsyncadd (!%p8438_p6), %s7151_s4, 4294967168  ;;  %s10613_s22 = sld [smem:[#allocation77_spill]]  ;;  %s10614_s1 = sld [smem:[#allocation76_spill]] }
0x3e97   : > { %s10615_s18 = sld [smem:[#allocation78_spill]]  ;;  %s10616_s15 = smov %s9123_s16 }
0x3e9c   : > { %p126_p9 = scmp.ge.s32.totalorder %s10613_s22, 4   ;;  %s10617_s16 = smov %s10614_s1 }
0x3e9e   :  { %128 = sbr.rel (!%p126_p9) target bundleno = 109 (0x6d), region = 384 }
0x3ea5   :  { %7156 = vsyncpa [#allocation3], 1 }
0x3ea6   :  { %7158 = vsyncpa [#allocation3 + $0x1], 1 }
0x3ea7   :  { %7159 = vsyncpa [#allocation6], 1 }
0x3ea8   :  { %7160 = vsyncpa [#allocation9], 1 }
0x3ea9   :  { %7161 = vsyncpa [#allocation12], 1 }
0x3eaa   :  { %7162 = vsyncpa [#allocation15], 1 }
0x3eab   :  { %7163 = vsyncpa [#allocation18], 1 }
0x3eac   :  { %7164 = vsyncpa [#allocation21], 1 }
0x3ead   :  { %7165 = vsyncpa [#allocation4], 1 }
0x3eae   :  { %7167 = vsyncpa [#allocation4 + $0x1], 1 }

</bundles_post_ra>
